<compile_context>
chip_gen: v6e
topology: v6e:2x2x1
jax: 0.10.0
libtpu: 0.0.40
codegen_flags: <defaults>
</compile_context>

<pallas_src>
import functools
import math

import jax
import jax.numpy as jnp
from jax.experimental import pallas as pl
from jax.experimental.pallas import tpu as pltpu

_VMEM_LIMIT = 48 * 1024 * 1024  # <= 64 MiB v7x physical, leaves pipeline headroom


# ----------------------------------------------------------------------------
# helpers
# ----------------------------------------------------------------------------
def _round_up(x, m):
    return (x + m - 1) // m * m


def _pad_to(a, shape):
    if tuple(a.shape) == tuple(shape):
        return a
    return jnp.pad(a, [(0, s - d) for d, s in zip(a.shape, shape)])


# ----------------------------------------------------------------------------
# Tiled linear:  out = act(x @ w + b)   (bf16 MXU operands, f32 accumulator)
# ----------------------------------------------------------------------------
def _linear_kernel(x_ref, w_ref, b_ref, o_ref, acc_ref, *, activation):
    @pl.when(pl.program_id(2) == 0)
    def _():
        acc_ref[...] = jnp.zeros_like(acc_ref)

    acc_ref[...] += jnp.dot(x_ref[...].astype(jnp.bfloat16),
                            w_ref[...].astype(jnp.bfloat16),
                            preferred_element_type=jnp.float32)

    @pl.when(pl.program_id(2) == pl.num_programs(2) - 1)
    def _():
        out = acc_ref[...] + b_ref[...].astype(jnp.float32)
        if activation == "relu":
            out = jnp.maximum(out, 0.0)
        o_ref[...] = out.astype(o_ref.dtype)


def pallas_linear(x, w, b, activation=None, tm=512, tn=512, tk=512):
    """x: [M, K], w: [K, N], b: [N] -> [M, N]  (tiled, pipelined, accumulated)."""
    M, K = x.shape
    N = w.shape[1]
    Mp, Kp, Np = _round_up(M, 8), _round_up(K, 128), _round_up(N, 128)
    tm, tk, tn = min(tm, Mp), min(tk, Kp), min(tn, Np)
    Mp, Kp, Np = _round_up(Mp, tm), _round_up(Kp, tk), _round_up(Np, tn)
    xp = _pad_to(x, (Mp, Kp))
    wp = _pad_to(w, (Kp, Np))
    bp = _pad_to(b.reshape(1, N), (1, Np))

    out = pl.pallas_call(
        functools.partial(_linear_kernel, activation=activation),
        out_shape=jax.ShapeDtypeStruct((Mp, Np), x.dtype),
        grid=(Mp // tm, Np // tn, Kp // tk),
        in_specs=[
            pl.BlockSpec((tm, tk), lambda i, j, k: (i, k)),
            pl.BlockSpec((tk, tn), lambda i, j, k: (k, j)),
            pl.BlockSpec((1, tn), lambda i, j, k: (0, j)),
        ],
        out_specs=pl.BlockSpec((tm, tn), lambda i, j, k: (i, j)),
        scratch_shapes=[pltpu.VMEM((tm, tn), jnp.float32)],
        compiler_params=pltpu.CompilerParams(
            dimension_semantics=("parallel", "parallel", "arbitrary"),
            vmem_limit_bytes=_VMEM_LIMIT),
    )(xp, wp, bp)
    if (Mp, Np) != (M, N):
        out = out[:M, :N]
    return out


# ----------------------------------------------------------------------------
# Fused residual-add + LayerNorm (mem-bound; stays f32)
# ----------------------------------------------------------------------------
def _add_layernorm_kernel(x_ref, r_ref, g_ref, b_ref, o_ref, *, eps):
    x = x_ref[...].astype(jnp.float32) + r_ref[...].astype(jnp.float32)
    mu = jnp.mean(x, axis=-1, keepdims=True)
    var = jnp.mean((x - mu) * (x - mu), axis=-1, keepdims=True)
    y = (x - mu) * jax.lax.rsqrt(var + eps)
    y = y * g_ref[...].astype(jnp.float32) + b_ref[...].astype(jnp.float32)
    o_ref[...] = y.astype(o_ref.dtype)


def pallas_add_layernorm(x, res, gamma, beta, eps=1e-5, tm=256):
    """LayerNorm(x + res); x/res: [M, D], gamma/beta: [D] -> [M, D]."""
    M, D = x.shape
    Mp = _round_up(M, 8)
    tm = min(tm, Mp)
    Mp = _round_up(Mp, tm)
    xp = _pad_to(x, (Mp, D))
    rp = _pad_to(res, (Mp, D))
    out = pl.pallas_call(
        functools.partial(_add_layernorm_kernel, eps=eps),
        out_shape=jax.ShapeDtypeStruct((Mp, D), x.dtype),
        grid=(Mp // tm,),
        in_specs=[
            pl.BlockSpec((tm, D), lambda i: (i, 0)),
            pl.BlockSpec((tm, D), lambda i: (i, 0)),
            pl.BlockSpec((1, D), lambda i: (0, 0)),
            pl.BlockSpec((1, D), lambda i: (0, 0)),
        ],
        out_specs=pl.BlockSpec((tm, D), lambda i: (i, 0)),
        compiler_params=pltpu.CompilerParams(dimension_semantics=("parallel",),
                                             vmem_limit_bytes=_VMEM_LIMIT),
    )(xp, rp, gamma.reshape(1, D), beta.reshape(1, D))
    return out[:M] if Mp != M else out


# ----------------------------------------------------------------------------
# Multi-head attention.
#   * grid = (batch, Tq-tile), both parallel (feeds both v7x TensorCores).
#   * dk % 128 == 0  -> per-head lane slices, contraction over dk only
#                       (no n_heads x MXU FLOP inflation), results written
#                       into disjoint lane slices of a VMEM accumulator.
#   * dk % 128 != 0  -> lane-mask fallback (accumulated in VMEM scratch).
#   * causal mask built in-kernel from iota; no mask tensors DMA'd at all.
# ----------------------------------------------------------------------------
def _mha_kernel(q_ref, k_ref, v_ref, o_ref, acc_scr, *, n_heads, scale, causal):
    q = q_ref[0]                               # [tq, D] (f32 in VMEM)
    k = k_ref[0]                               # [Tk, D]
    v = v_ref[0]                               # [Tk, D]
    tq, D = q.shape
    Tk = k.shape[0]
    dk = D // n_heads
    sliced = (dk % 128 == 0)

    if causal:
        row = (pl.program_id(1) * tq
               + jax.lax.broadcasted_iota(jnp.int32, (tq, Tk), 0))
        col = jax.lax.broadcasted_iota(jnp.int32, (tq, Tk), 1)
        neg = jnp.where(row >= col, 0.0, -1e9).astype(jnp.float32)

    if not sliced:
        head_of_lane = jax.lax.broadcasted_iota(jnp.int32, (1, D), 1) // dk
        acc_scr[...] = jnp.zeros_like(acc_scr)

    for h in range(n_heads):
        if sliced:
            qh = q[:, h * dk:(h + 1) * dk].astype(jnp.bfloat16)   # [tq, dk]
            kh = k[:, h * dk:(h + 1) * dk].astype(jnp.bfloat16)   # [Tk, dk]
            vh = v[:, h * dk:(h + 1) * dk].astype(jnp.bfloat16)   # [Tk, dk]
        else:
            sel = head_of_lane == h
            qh = jnp.where(sel, q, 0.0).astype(jnp.bfloat16)      # head lanes only
            kh = k.astype(jnp.bfloat16)
            vh = jnp.where(sel, v, 0.0).astype(jnp.bfloat16)

        # bf16 MXU operands, f32 accumulation.
        s = jax.lax.dot_general(qh, kh, (((1,), (1,)), ((), ())),
                                preferred_element_type=jnp.float32) * scale
        if causal:
            s = s + neg
        s = s - jnp.max(s, axis=-1, keepdims=True)
        e = jnp.exp(s)                                            # f32 softmax
        p = e * pl.reciprocal(jnp.sum(e, axis=-1, keepdims=True), approx=True)
        ctx = jnp.dot(p.astype(jnp.bfloat16), vh,
                      preferred_element_type=jnp.float32)
        if sliced:
            acc_scr[:, h * dk:(h + 1) * dk] = ctx                 # disjoint lanes
        else:
            acc_scr[...] += ctx                                   # head lanes only

    o_ref[0] = acc_scr[...].astype(o_ref.dtype)


def pallas_mha(q, k, v, n_heads, causal=False, tq_block=256):
    """q: [B, Tq, D], k/v: [B, Tk, D] -> [B, Tq, D]."""
    B, Tq, D = q.shape
    Tk = k.shape[1]
    scale = 1.0 / math.sqrt(D // n_heads)
    tq = tq_block if (Tq % tq_block == 0) else Tq     # no kv padding allowed
    kern = functools.partial(_mha_kernel, n_heads=n_heads, scale=scale,
                             causal=causal)
    # TODO(synk): flash-style Tk tiling (kv grid axis marked "arbitrary" with
    # online m/l/acc scratch) for long sequences; full-Tk blocks are fine here.
    return pl.pallas_call(
        kern,
        out_shape=jax.ShapeDtypeStruct((B, Tq, D), q.dtype),
        grid=(B, Tq // tq),
        in_specs=[
            pl.BlockSpec((1, tq, D), lambda b, qi: (b, qi, 0)),
            pl.BlockSpec((1, Tk, D), lambda b, qi: (b, 0, 0)),
            pl.BlockSpec((1, Tk, D), lambda b, qi: (b, 0, 0)),
        ],
        out_specs=pl.BlockSpec((1, tq, D), lambda b, qi: (b, qi, 0)),
        scratch_shapes=[pltpu.VMEM((tq, D), jnp.float32)],
        compiler_params=pltpu.CompilerParams(
            dimension_semantics=("parallel", "parallel"),
            vmem_limit_bytes=_VMEM_LIMIT),
    )(q, k, v)


# ----------------------------------------------------------------------------
# Fused shared-embedding output projection + cross-entropy (online LSE).
# Logits never hit HBM; emb is used as-is (no emb.T); bf16 MXU operands.
# ----------------------------------------------------------------------------
def _logits_ce_kernel(y_ref, emb_ref, lab_ref, nll_ref, m_scr, l_scr, p_scr,
                      *, vocab_size, tv):
    vi = pl.program_id(1)

    @pl.when(vi == 0)
    def _():
        m_scr[...] = jnp.full_like(m_scr, -1e30)
        l_scr[...] = jnp.zeros_like(l_scr)
        p_scr[...] = jnp.zeros_like(p_scr)

    y = y_ref[...].astype(jnp.bfloat16)                       # [tm, D]
    e = emb_ref[...].astype(jnp.bfloat16)                     # [tv, D]
    logits = jax.lax.dot_general(y, e, (((1,), (1,)), ((), ())),
                                 preferred_element_type=jnp.float32)  # [tm, tv]
    col = vi * tv + jax.lax.broadcasted_iota(jnp.int32, logits.shape, 1)
    logits = jnp.where(col < vocab_size, logits, -1e30)       # mask vocab padding

    lab = lab_ref[...]                                        # [tm, 1] int32
    p_scr[...] += jnp.sum(jnp.where(col == lab, logits, 0.0),
                          axis=-1, keepdims=True)

    m_new = jnp.maximum(m_scr[...], jnp.max(logits, axis=-1, keepdims=True))
    alpha = jnp.exp(m_scr[...] - m_new)
    l_scr[...] = alpha * l_scr[...] + jnp.sum(jnp.exp(logits - m_new),
                                              axis=-1, keepdims=True)
    m_scr[...] = m_new

    @pl.when(vi == pl.num_programs(1) - 1)
    def _():
        lse = m_scr[...] + jnp.log(l_scr[...])
        nll_ref[...] = (lse - p_scr[...]).astype(nll_ref.dtype)


def pallas_shared_embedding_cross_entropy(y, emb, labels, tm=512, tv=512):
    """y: [N, D], emb: [V, D], labels: [N] int -> scalar mean NLL."""
    N, D = y.shape
    V = emb.shape[0]
    Np, Vp = _round_up(N, 8), _round_up(V, 128)
    tm, tv = min(tm, Np), min(tv, Vp)
    Np, Vp = _round_up(Np, tm), _round_up(Vp, tv)
    yp = _pad_to(y, (Np, D))
    ep = _pad_to(emb, (Vp, D))
    lp = _pad_to(labels.astype(jnp.int32).reshape(N, 1), (Np, 1))

    nll = pl.pallas_call(
        functools.partial(_logits_ce_kernel, vocab_size=V, tv=tv),
        out_shape=jax.ShapeDtypeStruct((Np, 1), jnp.float32),
        grid=(Np // tm, Vp // tv),
        in_specs=[
            pl.BlockSpec((tm, D), lambda i, j: (i, 0)),
            pl.BlockSpec((tv, D), lambda i, j: (j, 0)),
            pl.BlockSpec((tm, 1), lambda i, j: (i, 0)),
        ],
        out_specs=pl.BlockSpec((tm, 1), lambda i, j: (i, 0)),
        scratch_shapes=[pltpu.VMEM((tm, 1), jnp.float32),
                        pltpu.VMEM((tm, 1), jnp.float32),
                        pltpu.VMEM((tm, 1), jnp.float32)],
        compiler_params=pltpu.CompilerParams(
            dimension_semantics=("parallel", "arbitrary"),
            vmem_limit_bytes=_VMEM_LIMIT),
    )(yp, ep, lp)
    return jnp.mean(nll[:N, 0])            # CrossEntropyLoss 'mean' reduction


# ----------------------------------------------------------------------------
# Model glue (plain JAX around the Pallas kernels)
# ----------------------------------------------------------------------------
def sinusoid_pos_encoding(length, d_model):
    pos = jnp.arange(length, dtype=jnp.float32)[:, None]
    i = jnp.arange(d_model, dtype=jnp.float32)[None, :]
    angle = pos / jnp.power(10000.0, (2.0 * jnp.floor(i / 2.0)) / d_model)
    return jnp.where(jnp.mod(jnp.arange(d_model), 2) == 0,
                     jnp.sin(angle), jnp.cos(angle))


def self_attention(x, p, n_heads, causal):
    B, T, D = x.shape
    x2d = x.reshape(B * T, D)
    # separate lane-dense Q/K/V projections: no XLA slicing / extra HBM copies
    q = pallas_linear(x2d, p["wq"], p["bq"]).reshape(B, T, D)
    k = pallas_linear(x2d, p["wk"], p["bk"]).reshape(B, T, D)
    v = pallas_linear(x2d, p["wv"], p["bv"]).reshape(B, T, D)
    ctx = pallas_mha(q, k, v, n_heads, causal=causal)
    out = pallas_linear(ctx.reshape(B * T, D), p["wo"], p["bo"])
    return out.reshape(B, T, D)


def cross_attention(x_q, x_kv, p, n_heads):
    B, Tq, D = x_q.shape
    Tk = x_kv.shape[1]
    kv2d = x_kv.reshape(B * Tk, D)
    q = pallas_linear(x_q.reshape(B * Tq, D), p["wq"], p["bq"]).reshape(B, Tq, D)
    k = pallas_linear(kv2d, p["wk"], p["bk"]).reshape(B, Tk, D)
    v = pallas_linear(kv2d, p["wv"], p["bv"]).reshape(B, Tk, D)
    ctx = pallas_mha(q, k, v, n_heads, causal=False)
    out = pallas_linear(ctx.reshape(B * Tq, D), p["wo"], p["bo"])
    return out.reshape(B, Tq, D)


def feed_forward(x2d, p):
    h = pallas_linear(x2d, p["w1"], p["b1"], activation="relu")
    return pallas_linear(h, p["w2"], p["b2"])


def encoder_block(x, p, n_heads):
    B, T, D = x.shape
    attn = self_attention(x, p["attn"], n_heads, causal=False)
    h = pallas_add_layernorm(x.reshape(B * T, D), attn.reshape(B * T, D),
                             p["ln1_g"], p["ln1_b"])
    ff = feed_forward(h, p["ffn"])
    h = pallas_add_layernorm(h, ff, p["ln2_g"], p["ln2_b"])
    return h.reshape(B, T, D)


def decoder_block(y, enc, p, n_heads):
    B, T, D = y.shape
    sa = self_attention(y, p["self_attn"], n_heads, causal=True)
    h = pallas_add_layernorm(y.reshape(B * T, D), sa.reshape(B * T, D),
                             p["ln1_g"], p["ln1_b"])
    ca = cross_attention(h.reshape(B, T, D), enc, p["cross_attn"], n_heads)
    h = pallas_add_layernorm(h, ca.reshape(B * T, D), p["ln2_g"], p["ln2_b"])
    ff = feed_forward(h, p["ffn"])
    h = pallas_add_layernorm(h, ff, p["ln3_g"], p["ln3_b"])
    return h.reshape(B, T, D)


def transformer_loss(params, inputs, targets, cfg):
    n_heads, d_model = cfg["n_heads"], cfg["d_model"]
    B, T_in, F = inputs.shape

    # ---------------- encoder ----------------
    x = pallas_linear(inputs.reshape(B * T_in, F),
                      params["enc_in_w"], params["enc_in_b"]).reshape(B, T_in, d_model)
    x = x + sinusoid_pos_encoding(T_in, d_model)[None]
    # TODO(synk): forward() receives no input lengths, so the encoder/cross
    # attention masks are all-ones and therefore omitted (no mask tensors at all).
    for blk in params["enc_blocks"]:
        x = encoder_block(x, blk, n_heads)
    enc_states = x

    # ---------------- decoder ----------------
    target_in = targets[:, :-1]
    target_out = targets[:, 1:]
    U = target_in.shape[1]
    y = jnp.take(params["embedding"], target_in, axis=0) * math.sqrt(d_model)
    y = y + sinusoid_pos_encoding(U, d_model)[None]
    for blk in params["dec_blocks"]:
        y = decoder_block(y, enc_states, blk, n_heads)

    # fused shared-embedding output projection + cross entropy
    return pallas_shared_embedding_cross_entropy(
        y.reshape(B * U, d_model), params["embedding"], target_out.reshape(-1))


# ----------------------------------------------------------------------------
# Deterministic parameter init
# ----------------------------------------------------------------------------
def _dense(key, fan_in, fan_out):
    return jax.random.normal(key, (fan_in, fan_out), jnp.float32) * 0.02


def init_attn(key, d_model):
    k1, k2, k3, k4 = jax.random.split(key, 4)
    z = lambda: jnp.zeros((d_model,), jnp.float32)
    return {
        "wq": _dense(k1, d_model, d_model), "bq": z(),
        "wk": _dense(k2, d_model, d_model), "bk": z(),
        "wv": _dense(k3, d_model, d_model), "bv": z(),
        "wo": _dense(k4, d_model, d_model), "bo": z(),
    }


def init_ffn(key, d_model, d_ff):
    k1, k2 = jax.random.split(key)
    return {
        "w1": _dense(k1, d_model, d_ff), "b1": jnp.zeros((d_ff,), jnp.float32),
        "w2": _dense(k2, d_ff, d_model), "b2": jnp.zeros((d_model,), jnp.float32),
    }


def init_params(key, cfg):
    d_model, d_ff = cfg["d_model"], cfg["d_ff"]
    vocab, inp = cfg["vocab_size"], cfg["input_size"]
    keys = jax.random.split(key, 2 + cfg["num_enc_blocks"] + cfg["num_dec_blocks"])
    ones = lambda: jnp.ones((d_model,), jnp.float32)
    zeros = lambda: jnp.zeros((d_model,), jnp.float32)
    p = {
        "enc_in_w": _dense(keys[0], inp, d_model),
        "enc_in_b": jnp.zeros((d_model,), jnp.float32),
        "embedding": jax.random.normal(keys[1], (vocab, d_model), jnp.float32) * 0.02,
        "enc_blocks": [],
        "dec_blocks": [],
    }
    for i in range(cfg["num_enc_blocks"]):
        ka, kf = jax.random.split(keys[2 + i])
        p["enc_blocks"].append({
            "attn": init_attn(ka, d_model),
            "ffn": init_ffn(kf, d_model, d_ff),
            "ln1_g": ones(), "ln1_b": zeros(),
            "ln2_g": ones(), "ln2_b": zeros(),
        })
    for i in range(cfg["num_dec_blocks"]):
        ks, kc, kf = jax.random.split(keys[2 + cfg["num_enc_blocks"] + i], 3)
        p["dec_blocks"].append({
            "self_attn": init_attn(ks, d_model),
            "cross_attn": init_attn(kc, d_model),
            "ffn": init_ffn(kf, d_model, d_ff),
            "ln1_g": ones(), "ln1_b": zeros(),
            "ln2_g": ones(), "ln2_b": zeros(),
            "ln3_g": ones(), "ln3_b": zeros(),
        })
    return p


# ----------------------------------------------------------------------------
# Main
# ----------------------------------------------------------------------------
if __name__ == "__main__":
    # dk = d_model // n_heads = 128 -> exercises the per-head lane-slice path
    # (no n_heads x MXU FLOP inflation); dk < 128 falls back to lane masking.
    cfg = dict(input_size=16, vocab_size=32, d_model=256, n_heads=2, d_ff=512,
               num_enc_blocks=2, num_dec_blocks=2)

    key = jax.random.PRNGKey(0)
    kp, ki, kt = jax.random.split(key, 3)

    B, T_in, U = 2, 8, 7
    inputs = jax.random.normal(ki, (B, T_in, cfg["input_size"]), jnp.float32)
    targets = jax.random.randint(kt, (B, U), 0, cfg["vocab_size"], dtype=jnp.int32)

    params = init_params(kp, cfg)

    loss_fn = jax.jit(functools.partial(transformer_loss, cfg=cfg))
    loss = loss_fn(params, inputs, targets)
    jax.block_until_ready(loss)
    assert loss.shape == () and bool(jnp.isfinite(loss))
    print("KERNEL_OK")
</pallas_src>

<mosaic_0001>
module attributes {stable_mosaic.version = 11 : i64} {
  func.func @_linear_kernel(%arg0: i32, %arg1: i32, %arg2: i32, %arg3: memref<16x256xf32, #tpu.memory_space<vmem>>, %arg4: memref<256x256xf32, #tpu.memory_space<vmem>>, %arg5: memref<1x256xf32, #tpu.memory_space<vmem>>, %arg6: memref<16x256xf32, #tpu.memory_space<vmem>>, %arg7: memref<16x256xf32, #tpu.memory_space<vmem>>) attributes {dimension_semantics = [#tpu.dimension_semantics<parallel>, #tpu.dimension_semantics<parallel>, #tpu.dimension_semantics<arbitrary>], iteration_bounds = array<i64: 1, 1, 1>, scalar_prefetch = 0 : i64, scratch_operands = 1 : i64, tpu.core_type = #tpu.core_type<tc>, window_params = [{transform_indices = @transform_0, window_bounds = array<i64: 16, 256>}, {transform_indices = @transform_1, window_bounds = array<i64: 256, 256>}, {transform_indices = @transform_2, window_bounds = array<i64: 1, 256>}, {transform_indices = @transform_3, window_bounds = array<i64: 16, 256>}]} {
    %c0_i32 = arith.constant 0 : i32
    %0 = arith.cmpi eq, %arg2, %c0_i32 : i32
    %1 = arith.extui %0 : i1 to i32
    %c0_i32_0 = arith.constant 0 : i32
    %2 = arith.cmpi ne, %1, %c0_i32_0 : i32
    scf.if %2 {
      %cst_10 = arith.constant 0.000000e+00 : f32
      %14 = vector.broadcast %cst_10 : f32 to vector<16x256xf32>
      %c0_11 = arith.constant 0 : index
      %c0_12 = arith.constant 0 : index
      %15 = vector.load %arg7[%c0_11, %c0_12] : memref<16x256xf32, #tpu.memory_space<vmem>>, vector<16x256xf32>
      tpu.vector_store %arg7[%c0_11, %c0_12], %14 {strides = array<i32>} : memref<16x256xf32, #tpu.memory_space<vmem>>, vector<16x256xf32>,
    } else {
    }
    %c0 = arith.constant 0 : index
    %c0_1 = arith.constant 0 : index
    %3 = vector.load %arg7[%c0, %c0_1] : memref<16x256xf32, #tpu.memory_space<vmem>>, vector<16x256xf32>
    %c0_2 = arith.constant 0 : index
    %c0_3 = arith.constant 0 : index
    %4 = vector.load %arg3[%c0_2, %c0_3] : memref<16x256xf32, #tpu.memory_space<vmem>>, vector<16x256xf32>
    %5 = arith.truncf %4 : vector<16x256xf32> to vector<16x256xbf16>
    %c0_4 = arith.constant 0 : index
    %c0_5 = arith.constant 0 : index
    %6 = vector.load %arg4[%c0_4, %c0_5] : memref<256x256xf32, #tpu.memory_space<vmem>>, vector<256x256xf32>
    %7 = arith.truncf %6 : vector<256x256xf32> to vector<256x256xbf16>
    %cst = arith.constant dense<0.000000e+00> : vector<16x256xf32>
    %8 = tpu.matmul %5, %7, %cst {dimension_numbers = #tpu.dot_dimension_numbers<[1], [0], [0], [1], [0, 0, 1, 1], [], []>} : vector<16x256xbf16>, vector<256x256xbf16>, vector<16x256xf32> -> vector<16x256xf32>
    %9 = arith.addf %3, %8 : vector<16x256xf32>
    %c0_6 = arith.constant 0 : index
    %c0_7 = arith.constant 0 : index
    %10 = vector.load %arg7[%c0_6, %c0_7] : memref<16x256xf32, #tpu.memory_space<vmem>>, vector<16x256xf32>
    tpu.vector_store %arg7[%c0_6, %c0_7], %9 {strides = array<i32>} : memref<16x256xf32, #tpu.memory_space<vmem>>, vector<16x256xf32>,
    %c0_i32_8 = arith.constant 0 : i32
    %11 = arith.cmpi eq, %arg2, %c0_i32_8 : i32
    %12 = arith.extui %11 : i1 to i32
    %c0_i32_9 = arith.constant 0 : i32
    %13 = arith.cmpi ne, %12, %c0_i32_9 : i32
    scf.if %13 {
      %c0_10 = arith.constant 0 : index
      %c0_11 = arith.constant 0 : index
      %14 = vector.load %arg7[%c0_10, %c0_11] : memref<16x256xf32, #tpu.memory_space<vmem>>, vector<16x256xf32>
      %c0_12 = arith.constant 0 : index
      %c0_13 = arith.constant 0 : index
      %15 = vector.load %arg5[%c0_12, %c0_13] : memref<1x256xf32, #tpu.memory_space<vmem>>, vector<1x256xf32>
      %16 = vector.broadcast %15 : vector<1x256xf32> to vector<16x256xf32>
      %17 = arith.addf %14, %16 : vector<16x256xf32>
      %c0_14 = arith.constant 0 : index
      %c0_15 = arith.constant 0 : index
      %18 = vector.load %arg6[%c0_14, %c0_15] : memref<16x256xf32, #tpu.memory_space<vmem>>, vector<16x256xf32>
      tpu.vector_store %arg6[%c0_14, %c0_15], %17 {strides = array<i32>} : memref<16x256xf32, #tpu.memory_space<vmem>>, vector<16x256xf32>,
    } else {
    }
    return
  }
  func.func @transform_0(%arg0: i32, %arg1: i32, %arg2: i32) -> (i32, i32) {
    %c0_i32 = arith.constant 0 : i32
    return %arg0, %arg2 : i32, i32
  }
  func.func @transform_1(%arg0: i32, %arg1: i32, %arg2: i32) -> (i32, i32) {
    %c0_i32 = arith.constant 0 : i32
    return %arg2, %arg1 : i32, i32
  }
  func.func @transform_2(%arg0: i32, %arg1: i32, %arg2: i32) -> (i32, i32) {
    %c0_i32 = arith.constant 0 : i32
    %c0_i32_0 = arith.constant 0 : i32
    return %c0_i32, %arg1 : i32, i32
  }
  func.func @transform_3(%arg0: i32, %arg1: i32, %arg2: i32) -> (i32, i32) {
    %c0_i32 = arith.constant 0 : i32
    return %arg0, %arg1 : i32, i32
  }
}

module attributes {stable_mosaic.version = 11 : i64} {
  func.func @_linear_kernel(%arg0: i32, %arg1: i32, %arg2: i32, %arg3: memref<16x128xf32, #tpu.memory_space<vmem>>, %arg4: memref<128x256xf32, #tpu.memory_space<vmem>>, %arg5: memref<1x256xf32, #tpu.memory_space<vmem>>, %arg6: memref<16x256xf32, #tpu.memory_space<vmem>>, %arg7: memref<16x256xf32, #tpu.memory_space<vmem>>) attributes {dimension_semantics = [#tpu.dimension_semantics<parallel>, #tpu.dimension_semantics<parallel>, #tpu.dimension_semantics<arbitrary>], iteration_bounds = array<i64: 1, 1, 1>, scalar_prefetch = 0 : i64, scratch_operands = 1 : i64, tpu.core_type = #tpu.core_type<tc>, window_params = [{transform_indices = @transform_0, window_bounds = array<i64: 16, 128>}, {transform_indices = @transform_1, window_bounds = array<i64: 128, 256>}, {transform_indices = @transform_2, window_bounds = array<i64: 1, 256>}, {transform_indices = @transform_3, window_bounds = array<i64: 16, 256>}]} {
    %c0_i32 = arith.constant 0 : i32
    %0 = arith.cmpi eq, %arg2, %c0_i32 : i32
    %1 = arith.extui %0 : i1 to i32
    %c0_i32_0 = arith.constant 0 : i32
    %2 = arith.cmpi ne, %1, %c0_i32_0 : i32
    scf.if %2 {
      %cst_10 = arith.constant 0.000000e+00 : f32
      %14 = vector.broadcast %cst_10 : f32 to vector<16x256xf32>
      %c0_11 = arith.constant 0 : index
      %c0_12 = arith.constant 0 : index
      %15 = vector.load %arg7[%c0_11, %c0_12] : memref<16x256xf32, #tpu.memory_space<vmem>>, vector<16x256xf32>
      tpu.vector_store %arg7[%c0_11, %c0_12], %14 {strides = array<i32>} : memref<16x256xf32, #tpu.memory_space<vmem>>, vector<16x256xf32>,
    } else {
    }
    %c0 = arith.constant 0 : index
    %c0_1 = arith.constant 0 : index
    %3 = vector.load %arg7[%c0, %c0_1] : memref<16x256xf32, #tpu.memory_space<vmem>>, vector<16x256xf32>
    %c0_2 = arith.constant 0 : index
    %c0_3 = arith.constant 0 : index
    %4 = vector.load %arg3[%c0_2, %c0_3] : memref<16x128xf32, #tpu.memory_space<vmem>>, vector<16x128xf32>
    %5 = arith.truncf %4 : vector<16x128xf32> to vector<16x128xbf16>
    %c0_4 = arith.constant 0 : index
    %c0_5 = arith.constant 0 : index
    %6 = vector.load %arg4[%c0_4, %c0_5] : memref<128x256xf32, #tpu.memory_space<vmem>>, vector<128x256xf32>
    %7 = arith.truncf %6 : vector<128x256xf32> to vector<128x256xbf16>
    %cst = arith.constant dense<0.000000e+00> : vector<16x256xf32>
    %8 = tpu.matmul %5, %7, %cst {dimension_numbers = #tpu.dot_dimension_numbers<[1], [0], [0], [1], [0, 0, 1, 1], [], []>} : vector<16x128xbf16>, vector<128x256xbf16>, vector<16x256xf32> -> vector<16x256xf32>
    %9 = arith.addf %3, %8 : vector<16x256xf32>
    %c0_6 = arith.constant 0 : index
    %c0_7 = arith.constant 0 : index
    %10 = vector.load %arg7[%c0_6, %c0_7] : memref<16x256xf32, #tpu.memory_space<vmem>>, vector<16x256xf32>
    tpu.vector_store %arg7[%c0_6, %c0_7], %9 {strides = array<i32>} : memref<16x256xf32, #tpu.memory_space<vmem>>, vector<16x256xf32>,
    %c0_i32_8 = arith.constant 0 : i32
    %11 = arith.cmpi eq, %arg2, %c0_i32_8 : i32
    %12 = arith.extui %11 : i1 to i32
    %c0_i32_9 = arith.constant 0 : i32
    %13 = arith.cmpi ne, %12, %c0_i32_9 : i32
    scf.if %13 {
      %c0_10 = arith.constant 0 : index
      %c0_11 = arith.constant 0 : index
      %14 = vector.load %arg7[%c0_10, %c0_11] : memref<16x256xf32, #tpu.memory_space<vmem>>, vector<16x256xf32>
      %c0_12 = arith.constant 0 : index
      %c0_13 = arith.constant 0 : index
      %15 = vector.load %arg5[%c0_12, %c0_13] : memref<1x256xf32, #tpu.memory_space<vmem>>, vector<1x256xf32>
      %16 = vector.broadcast %15 : vector<1x256xf32> to vector<16x256xf32>
      %17 = arith.addf %14, %16 : vector<16x256xf32>
      %c0_14 = arith.constant 0 : index
      %c0_15 = arith.constant 0 : index
      %18 = vector.load %arg6[%c0_14, %c0_15] : memref<16x256xf32, #tpu.memory_space<vmem>>, vector<16x256xf32>
      tpu.vector_store %arg6[%c0_14, %c0_15], %17 {strides = array<i32>} : memref<16x256xf32, #tpu.memory_space<vmem>>, vector<16x256xf32>,
    } else {
    }
    return
  }
  func.func @transform_0(%arg0: i32, %arg1: i32, %arg2: i32) -> (i32, i32) {
    %c0_i32 = arith.constant 0 : i32
    return %arg0, %arg2 : i32, i32
  }
  func.func @transform_1(%arg0: i32, %arg1: i32, %arg2: i32) -> (i32, i32) {
    %c0_i32 = arith.constant 0 : i32
    return %arg2, %arg1 : i32, i32
  }
  func.func @transform_2(%arg0: i32, %arg1: i32, %arg2: i32) -> (i32, i32) {
    %c0_i32 = arith.constant 0 : i32
    %c0_i32_0 = arith.constant 0 : i32
    return %c0_i32, %arg1 : i32, i32
  }
  func.func @transform_3(%arg0: i32, %arg1: i32, %arg2: i32) -> (i32, i32) {
    %c0_i32 = arith.constant 0 : i32
    return %arg0, %arg1 : i32, i32
  }
}

module attributes {stable_mosaic.version = 11 : i64} {
  func.func @_add_layernorm_kernel(%arg0: i32, %arg1: memref<16x256xf32, #tpu.memory_space<vmem>>, %arg2: memref<16x256xf32, #tpu.memory_space<vmem>>, %arg3: memref<1x256xf32, #tpu.memory_space<vmem>>, %arg4: memref<1x256xf32, #tpu.memory_space<vmem>>, %arg5: memref<16x256xf32, #tpu.memory_space<vmem>>) attributes {dimension_semantics = [#tpu.dimension_semantics<parallel>], iteration_bounds = array<i64: 1>, scalar_prefetch = 0 : i64, scratch_operands = 0 : i64, tpu.core_type = #tpu.core_type<tc>, window_params = [{transform_indices = @transform_0, window_bounds = array<i64: 16, 256>}, {transform_indices = @transform_1, window_bounds = array<i64: 16, 256>}, {pipeline_mode = #tpu.pipeline_mode<synchronous>, transform_indices = @transform_2, window_bounds = array<i64: 1, 256>}, {pipeline_mode = #tpu.pipeline_mode<synchronous>, transform_indices = @transform_3, window_bounds = array<i64: 1, 256>}, {transform_indices = @transform_4, window_bounds = array<i64: 16, 256>}]} {
    %c0 = arith.constant 0 : index
    %c0_0 = arith.constant 0 : index
    %0 = vector.load %arg1[%c0, %c0_0] : memref<16x256xf32, #tpu.memory_space<vmem>>, vector<16x256xf32>
    %c0_1 = arith.constant 0 : index
    %c0_2 = arith.constant 0 : index
    %1 = vector.load %arg2[%c0_1, %c0_2] : memref<16x256xf32, #tpu.memory_space<vmem>>, vector<16x256xf32>
    %2 = arith.addf %0, %1 : vector<16x256xf32>
    %cst = arith.constant dense<0.000000e+00> : vector<16xf32>
    %3 = vector.multi_reduction <add>, %2, %cst [1] : vector<16x256xf32> to vector<16xf32>
    %4 = vector.shape_cast %3 : vector<16xf32> to vector<16x1xf32>
    %cst_3 = arith.constant 2.560000e+02 : f32
    %5 = vector.broadcast %cst_3 : f32 to vector<16x1xf32>
    %6 = arith.divf %4, %5 : vector<16x1xf32>
    %7 = vector.broadcast %6 : vector<16x1xf32> to vector<16x256xf32>
    %8 = arith.subf %2, %7 : vector<16x256xf32>
    %9 = vector.broadcast %6 : vector<16x1xf32> to vector<16x256xf32>
    %10 = arith.subf %2, %9 : vector<16x256xf32>
    %11 = arith.mulf %8, %10 : vector<16x256xf32>
    %cst_4 = arith.constant dense<0.000000e+00> : vector<16xf32>
    %12 = vector.multi_reduction <add>, %11, %cst_4 [1] : vector<16x256xf32> to vector<16xf32>
    %13 = vector.shape_cast %12 : vector<16xf32> to vector<16x1xf32>
    %cst_5 = arith.constant 2.560000e+02 : f32
    %14 = vector.broadcast %cst_5 : f32 to vector<16x1xf32>
    %15 = arith.divf %13, %14 : vector<16x1xf32>
    %16 = vector.broadcast %6 : vector<16x1xf32> to vector<16x256xf32>
    %17 = arith.subf %2, %16 : vector<16x256xf32>
    %cst_6 = arith.constant 9.99999974E-6 : f32
    %18 = vector.broadcast %cst_6 : f32 to vector<16x1xf32>
    %19 = arith.addf %15, %18 : vector<16x1xf32>
    %20 = math.rsqrt %19 : vector<16x1xf32>
    %21 = vector.broadcast %20 : vector<16x1xf32> to vector<16x256xf32>
    %22 = arith.mulf %17, %21 : vector<16x256xf32>
    %c0_7 = arith.constant 0 : index
    %c0_8 = arith.constant 0 : index
    %23 = vector.load %arg3[%c0_7, %c0_8] : memref<1x256xf32, #tpu.memory_space<vmem>>, vector<1x256xf32>
    %24 = vector.broadcast %23 : vector<1x256xf32> to vector<16x256xf32>
    %25 = arith.mulf %22, %24 : vector<16x256xf32>
    %c0_9 = arith.constant 0 : index
    %c0_10 = arith.constant 0 : index
    %26 = vector.load %arg4[%c0_9, %c0_10] : memref<1x256xf32, #tpu.memory_space<vmem>>, vector<1x256xf32>
    %27 = vector.broadcast %26 : vector<1x256xf32> to vector<16x256xf32>
    %28 = arith.addf %25, %27 : vector<16x256xf32>
    %c0_11 = arith.constant 0 : index
    %c0_12 = arith.constant 0 : index
    %29 = vector.load %arg5[%c0_11, %c0_12] : memref<16x256xf32, #tpu.memory_space<vmem>>, vector<16x256xf32>
    tpu.vector_store %arg5[%c0_11, %c0_12], %28 {strides = array<i32>} : memref<16x256xf32, #tpu.memory_space<vmem>>, vector<16x256xf32>,
    return
  }
  func.func @transform_0(%arg0: i32) -> (i32, i32) {
    %c0_i32 = arith.constant 0 : i32
    %c0_i32_0 = arith.constant 0 : i32
    return %arg0, %c0_i32 : i32, i32
  }
  func.func @transform_1(%arg0: i32) -> (i32, i32) {
    %c0_i32 = arith.constant 0 : i32
    %c0_i32_0 = arith.constant 0 : i32
    return %arg0, %c0_i32 : i32, i32
  }
  func.func @transform_2(%arg0: i32) -> (i32, i32) {
    %c0_i32 = arith.constant 0 : i32
    %c0_i32_0 = arith.constant 0 : i32
    %c0_i32_1 = arith.constant 0 : i32
    return %c0_i32, %c0_i32_0 : i32, i32
  }
  func.func @transform_3(%arg0: i32) -> (i32, i32) {
    %c0_i32 = arith.constant 0 : i32
    %c0_i32_0 = arith.constant 0 : i32
    %c0_i32_1 = arith.constant 0 : i32
    return %c0_i32, %c0_i32_0 : i32, i32
  }
  func.func @transform_4(%arg0: i32) -> (i32, i32) {
    %c0_i32 = arith.constant 0 : i32
    %c0_i32_0 = arith.constant 0 : i32
    return %arg0, %c0_i32 : i32, i32
  }
}

module attributes {stable_mosaic.version = 11 : i64} {
  func.func @_mha_kernel(%arg0: i32, %arg1: i32, %arg2: memref<1x8x256xf32, #tpu.memory_space<vmem>>, %arg3: memref<1x8x256xf32, #tpu.memory_space<vmem>>, %arg4: memref<1x8x256xf32, #tpu.memory_space<vmem>>, %arg5: memref<1x8x256xf32, #tpu.memory_space<vmem>>, %arg6: memref<8x256xf32, #tpu.memory_space<vmem>>) attributes {dimension_semantics = [#tpu.dimension_semantics<parallel>, #tpu.dimension_semantics<parallel>], iteration_bounds = array<i64: 2, 1>, scalar_prefetch = 0 : i64, scratch_operands = 1 : i64, tpu.core_type = #tpu.core_type<tc>, window_params = [{transform_indices = @transform_0, window_bounds = array<i64: 1, 8, 256>}, {transform_indices = @transform_1, window_bounds = array<i64: 1, 8, 256>}, {transform_indices = @transform_2, window_bounds = array<i64: 1, 8, 256>}, {transform_indices = @transform_3, window_bounds = array<i64: 1, 8, 256>}]} {
    %c0 = arith.constant 0 : index
    %c0_0 = arith.constant 0 : index
    %c0_1 = arith.constant 0 : index
    %0 = vector.load %arg2[%c0, %c0_0, %c0_1] : memref<1x8x256xf32, #tpu.memory_space<vmem>>, vector<1x8x256xf32>
    %1 = vector.shape_cast %0 : vector<1x8x256xf32> to vector<8x256xf32>
    %c0_2 = arith.constant 0 : index
    %c0_3 = arith.constant 0 : index
    %c0_4 = arith.constant 0 : index
    %2 = vector.load %arg3[%c0_2, %c0_3, %c0_4] : memref<1x8x256xf32, #tpu.memory_space<vmem>>, vector<1x8x256xf32>
    %3 = vector.shape_cast %2 : vector<1x8x256xf32> to vector<8x256xf32>
    %c0_5 = arith.constant 0 : index
    %c0_6 = arith.constant 0 : index
    %c0_7 = arith.constant 0 : index
    %4 = vector.load %arg4[%c0_5, %c0_6, %c0_7] : memref<1x8x256xf32, #tpu.memory_space<vmem>>, vector<1x8x256xf32>
    %5 = vector.shape_cast %4 : vector<1x8x256xf32> to vector<8x256xf32>
    %6 = vector.extract_strided_slice %1 {offsets = [0, 0], sizes = [8, 128], strides = [1, 1]} : vector<8x256xf32> to vector<8x128xf32>
    %7 = arith.truncf %6 : vector<8x128xf32> to vector<8x128xbf16>
    %8 = vector.extract_strided_slice %3 {offsets = [0, 0], sizes = [8, 128], strides = [1, 1]} : vector<8x256xf32> to vector<8x128xf32>
    %9 = arith.truncf %8 : vector<8x128xf32> to vector<8x128xbf16>
    %10 = vector.extract_strided_slice %5 {offsets = [0, 0], sizes = [8, 128], strides = [1, 1]} : vector<8x256xf32> to vector<8x128xf32>
    %11 = arith.truncf %10 : vector<8x128xf32> to vector<8x128xbf16>
    %cst = arith.constant dense<0.000000e+00> : vector<8x8xf32>
    %12 = tpu.matmul %7, %9, %cst {dimension_numbers = #tpu.dot_dimension_numbers<[1], [1], [0], [0], [0, 0, 1, 0], [], []>} : vector<8x128xbf16>, vector<8x128xbf16>, vector<8x8xf32> -> vector<8x8xf32>
    %cst_8 = arith.constant 0.0883883461 : f32
    %13 = vector.broadcast %cst_8 : f32 to vector<8x8xf32>
    %14 = arith.mulf %12, %13 : vector<8x8xf32>
    %cst_9 = arith.constant dense<0xFF800000> : vector<8xf32>
    %15 = vector.multi_reduction <maximumf>, %14, %cst_9 [1] : vector<8x8xf32> to vector<8xf32>
    %16 = vector.shape_cast %15 : vector<8xf32> to vector<8x1xf32>
    %17 = vector.broadcast %16 : vector<8x1xf32> to vector<8x8xf32>
    %18 = arith.subf %14, %17 : vector<8x8xf32>
    %19 = math.exp %18 : vector<8x8xf32>
    %cst_10 = arith.constant dense<0.000000e+00> : vector<8xf32>
    %20 = vector.multi_reduction <add>, %19, %cst_10 [1] : vector<8x8xf32> to vector<8xf32>
    %21 = vector.shape_cast %20 : vector<8xf32> to vector<8x1xf32>
    %22 = tpu.reciprocal %21 {approx = true} : vector<8x1xf32> -> vector<8x1xf32>
    %23 = vector.broadcast %22 : vector<8x1xf32> to vector<8x8xf32>
    %24 = arith.mulf %19, %23 : vector<8x8xf32>
    %25 = arith.truncf %24 : vector<8x8xf32> to vector<8x8xbf16>
    %cst_11 = arith.constant dense<0.000000e+00> : vector<8x128xf32>
    %26 = tpu.matmul %25, %11, %cst_11 {dimension_numbers = #tpu.dot_dimension_numbers<[1], [0], [0], [1], [0, 0, 1, 1], [], []>} : vector<8x8xbf16>, vector<8x128xbf16>, vector<8x128xf32> -> vector<8x128xf32>
    %c0_12 = arith.constant 0 : index
    %c0_13 = arith.constant 0 : index
    %27 = vector.load %arg6[%c0_12, %c0_13] : memref<8x256xf32, #tpu.memory_space<vmem>>, vector<8x128xf32>
    tpu.vector_store %arg6[%c0_12, %c0_13], %26 {strides = array<i32>} : memref<8x256xf32, #tpu.memory_space<vmem>>, vector<8x128xf32>,
    %28 = vector.extract_strided_slice %1 {offsets = [0, 128], sizes = [8, 128], strides = [1, 1]} : vector<8x256xf32> to vector<8x128xf32>
    %29 = arith.truncf %28 : vector<8x128xf32> to vector<8x128xbf16>
    %30 = vector.extract_strided_slice %3 {offsets = [0, 128], sizes = [8, 128], strides = [1, 1]} : vector<8x256xf32> to vector<8x128xf32>
    %31 = arith.truncf %30 : vector<8x128xf32> to vector<8x128xbf16>
    %32 = vector.extract_strided_slice %5 {offsets = [0, 128], sizes = [8, 128], strides = [1, 1]} : vector<8x256xf32> to vector<8x128xf32>
    %33 = arith.truncf %32 : vector<8x128xf32> to vector<8x128xbf16>
    %cst_14 = arith.constant dense<0.000000e+00> : vector<8x8xf32>
    %34 = tpu.matmul %29, %31, %cst_14 {dimension_numbers = #tpu.dot_dimension_numbers<[1], [1], [0], [0], [0, 0, 1, 0], [], []>} : vector<8x128xbf16>, vector<8x128xbf16>, vector<8x8xf32> -> vector<8x8xf32>
    %cst_15 = arith.constant 0.0883883461 : f32
    %35 = vector.broadcast %cst_15 : f32 to vector<8x8xf32>
    %36 = arith.mulf %34, %35 : vector<8x8xf32>
    %cst_16 = arith.constant dense<0xFF800000> : vector<8xf32>
    %37 = vector.multi_reduction <maximumf>, %36, %cst_16 [1] : vector<8x8xf32> to vector<8xf32>
    %38 = vector.shape_cast %37 : vector<8xf32> to vector<8x1xf32>
    %39 = vector.broadcast %38 : vector<8x1xf32> to vector<8x8xf32>
    %40 = arith.subf %36, %39 : vector<8x8xf32>
    %41 = math.exp %40 : vector<8x8xf32>
    %cst_17 = arith.constant dense<0.000000e+00> : vector<8xf32>
    %42 = vector.multi_reduction <add>, %41, %cst_17 [1] : vector<8x8xf32> to vector<8xf32>
    %43 = vector.shape_cast %42 : vector<8xf32> to vector<8x1xf32>
    %44 = tpu.reciprocal %43 {approx = true} : vector<8x1xf32> -> vector<8x1xf32>
    %45 = vector.broadcast %44 : vector<8x1xf32> to vector<8x8xf32>
    %46 = arith.mulf %41, %45 : vector<8x8xf32>
    %47 = arith.truncf %46 : vector<8x8xf32> to vector<8x8xbf16>
    %cst_18 = arith.constant dense<0.000000e+00> : vector<8x128xf32>
    %48 = tpu.matmul %47, %33, %cst_18 {dimension_numbers = #tpu.dot_dimension_numbers<[1], [0], [0], [1], [0, 0, 1, 1], [], []>} : vector<8x8xbf16>, vector<8x128xbf16>, vector<8x128xf32> -> vector<8x128xf32>
    %c0_19 = arith.constant 0 : index
    %c128 = arith.constant 128 : index
    %49 = vector.load %arg6[%c0_19, %c128] : memref<8x256xf32, #tpu.memory_space<vmem>>, vector<8x128xf32>
    tpu.vector_store %arg6[%c0_19, %c128], %48 {strides = array<i32>} : memref<8x256xf32, #tpu.memory_space<vmem>>, vector<8x128xf32>,
    %c0_20 = arith.constant 0 : index
    %c0_21 = arith.constant 0 : index
    %50 = vector.load %arg6[%c0_20, %c0_21] : memref<8x256xf32, #tpu.memory_space<vmem>>, vector<8x256xf32>
    %c0_22 = arith.constant 0 : index
    %c0_23 = arith.constant 0 : index
    %c0_24 = arith.constant 0 : index
    %51 = vector.load %arg5[%c0_22, %c0_23, %c0_24] : memref<1x8x256xf32, #tpu.memory_space<vmem>>, vector<1x8x256xf32>
    %52 = vector.shape_cast %51 : vector<1x8x256xf32> to vector<8x256xf32>
    %53 = vector.shape_cast %50 : vector<8x256xf32> to vector<1x8x256xf32>
    tpu.vector_store %arg5[%c0_22, %c0_23, %c0_24], %53 {strides = array<i32>} : memref<1x8x256xf32, #tpu.memory_space<vmem>>, vector<1x8x256xf32>,
    return
  }
  func.func @transform_0(%arg0: i32, %arg1: i32) -> (i32, i32, i32) {
    %c0_i32 = arith.constant 0 : i32
    %c0_i32_0 = arith.constant 0 : i32
    return %arg0, %arg1, %c0_i32 : i32, i32, i32
  }
  func.func @transform_1(%arg0: i32, %arg1: i32) -> (i32, i32, i32) {
    %c0_i32 = arith.constant 0 : i32
    %c0_i32_0 = arith.constant 0 : i32
    %c0_i32_1 = arith.constant 0 : i32
    return %arg0, %c0_i32, %c0_i32_0 : i32, i32, i32
  }
  func.func @transform_2(%arg0: i32, %arg1: i32) -> (i32, i32, i32) {
    %c0_i32 = arith.constant 0 : i32
    %c0_i32_0 = arith.constant 0 : i32
    %c0_i32_1 = arith.constant 0 : i32
    return %arg0, %c0_i32, %c0_i32_0 : i32, i32, i32
  }
  func.func @transform_3(%arg0: i32, %arg1: i32) -> (i32, i32, i32) {
    %c0_i32 = arith.constant 0 : i32
    %c0_i32_0 = arith.constant 0 : i32
    return %arg0, %arg1, %c0_i32 : i32, i32, i32
  }
}

module attributes {stable_mosaic.version = 11 : i64} {
  func.func @_linear_kernel(%arg0: i32, %arg1: i32, %arg2: i32, %arg3: memref<16x512xf32, #tpu.memory_space<vmem>>, %arg4: memref<512x256xf32, #tpu.memory_space<vmem>>, %arg5: memref<1x256xf32, #tpu.memory_space<vmem>>, %arg6: memref<16x256xf32, #tpu.memory_space<vmem>>, %arg7: memref<16x256xf32, #tpu.memory_space<vmem>>) attributes {dimension_semantics = [#tpu.dimension_semantics<parallel>, #tpu.dimension_semantics<parallel>, #tpu.dimension_semantics<arbitrary>], iteration_bounds = array<i64: 1, 1, 1>, scalar_prefetch = 0 : i64, scratch_operands = 1 : i64, tpu.core_type = #tpu.core_type<tc>, window_params = [{transform_indices = @transform_0, window_bounds = array<i64: 16, 512>}, {transform_indices = @transform_1, window_bounds = array<i64: 512, 256>}, {transform_indices = @transform_2, window_bounds = array<i64: 1, 256>}, {transform_indices = @transform_3, window_bounds = array<i64: 16, 256>}]} {
    %c0_i32 = arith.constant 0 : i32
    %0 = arith.cmpi eq, %arg2, %c0_i32 : i32
    %1 = arith.extui %0 : i1 to i32
    %c0_i32_0 = arith.constant 0 : i32
    %2 = arith.cmpi ne, %1, %c0_i32_0 : i32
    scf.if %2 {
      %cst_10 = arith.constant 0.000000e+00 : f32
      %14 = vector.broadcast %cst_10 : f32 to vector<16x256xf32>
      %c0_11 = arith.constant 0 : index
      %c0_12 = arith.constant 0 : index
      %15 = vector.load %arg7[%c0_11, %c0_12] : memref<16x256xf32, #tpu.memory_space<vmem>>, vector<16x256xf32>
      tpu.vector_store %arg7[%c0_11, %c0_12], %14 {strides = array<i32>} : memref<16x256xf32, #tpu.memory_space<vmem>>, vector<16x256xf32>,
    } else {
    }
    %c0 = arith.constant 0 : index
    %c0_1 = arith.constant 0 : index
    %3 = vector.load %arg7[%c0, %c0_1] : memref<16x256xf32, #tpu.memory_space<vmem>>, vector<16x256xf32>
    %c0_2 = arith.constant 0 : index
    %c0_3 = arith.constant 0 : index
    %4 = vector.load %arg3[%c0_2, %c0_3] : memref<16x512xf32, #tpu.memory_space<vmem>>, vector<16x512xf32>
    %5 = arith.truncf %4 : vector<16x512xf32> to vector<16x512xbf16>
    %c0_4 = arith.constant 0 : index
    %c0_5 = arith.constant 0 : index
    %6 = vector.load %arg4[%c0_4, %c0_5] : memref<512x256xf32, #tpu.memory_space<vmem>>, vector<512x256xf32>
    %7 = arith.truncf %6 : vector<512x256xf32> to vector<512x256xbf16>
    %cst = arith.constant dense<0.000000e+00> : vector<16x256xf32>
    %8 = tpu.matmul %5, %7, %cst {dimension_numbers = #tpu.dot_dimension_numbers<[1], [0], [0], [1], [0, 0, 1, 1], [], []>} : vector<16x512xbf16>, vector<512x256xbf16>, vector<16x256xf32> -> vector<16x256xf32>
    %9 = arith.addf %3, %8 : vector<16x256xf32>
    %c0_6 = arith.constant 0 : index
    %c0_7 = arith.constant 0 : index
    %10 = vector.load %arg7[%c0_6, %c0_7] : memref<16x256xf32, #tpu.memory_space<vmem>>, vector<16x256xf32>
    tpu.vector_store %arg7[%c0_6, %c0_7], %9 {strides = array<i32>} : memref<16x256xf32, #tpu.memory_space<vmem>>, vector<16x256xf32>,
    %c0_i32_8 = arith.constant 0 : i32
    %11 = arith.cmpi eq, %arg2, %c0_i32_8 : i32
    %12 = arith.extui %11 : i1 to i32
    %c0_i32_9 = arith.constant 0 : i32
    %13 = arith.cmpi ne, %12, %c0_i32_9 : i32
    scf.if %13 {
      %c0_10 = arith.constant 0 : index
      %c0_11 = arith.constant 0 : index
      %14 = vector.load %arg7[%c0_10, %c0_11] : memref<16x256xf32, #tpu.memory_space<vmem>>, vector<16x256xf32>
      %c0_12 = arith.constant 0 : index
      %c0_13 = arith.constant 0 : index
      %15 = vector.load %arg5[%c0_12, %c0_13] : memref<1x256xf32, #tpu.memory_space<vmem>>, vector<1x256xf32>
      %16 = vector.broadcast %15 : vector<1x256xf32> to vector<16x256xf32>
      %17 = arith.addf %14, %16 : vector<16x256xf32>
      %c0_14 = arith.constant 0 : index
      %c0_15 = arith.constant 0 : index
      %18 = vector.load %arg6[%c0_14, %c0_15] : memref<16x256xf32, #tpu.memory_space<vmem>>, vector<16x256xf32>
      tpu.vector_store %arg6[%c0_14, %c0_15], %17 {strides = array<i32>} : memref<16x256xf32, #tpu.memory_space<vmem>>, vector<16x256xf32>,
    } else {
    }
    return
  }
  func.func @transform_0(%arg0: i32, %arg1: i32, %arg2: i32) -> (i32, i32) {
    %c0_i32 = arith.constant 0 : i32
    return %arg0, %arg2 : i32, i32
  }
  func.func @transform_1(%arg0: i32, %arg1: i32, %arg2: i32) -> (i32, i32) {
    %c0_i32 = arith.constant 0 : i32
    return %arg2, %arg1 : i32, i32
  }
  func.func @transform_2(%arg0: i32, %arg1: i32, %arg2: i32) -> (i32, i32) {
    %c0_i32 = arith.constant 0 : i32
    %c0_i32_0 = arith.constant 0 : i32
    return %c0_i32, %arg1 : i32, i32
  }
  func.func @transform_3(%arg0: i32, %arg1: i32, %arg2: i32) -> (i32, i32) {
    %c0_i32 = arith.constant 0 : i32
    return %arg0, %arg1 : i32, i32
  }
}

module attributes {stable_mosaic.version = 11 : i64} {
  func.func @_linear_kernel(%arg0: i32, %arg1: i32, %arg2: i32, %arg3: memref<16x256xf32, #tpu.memory_space<vmem>>, %arg4: memref<256x512xf32, #tpu.memory_space<vmem>>, %arg5: memref<1x512xf32, #tpu.memory_space<vmem>>, %arg6: memref<16x512xf32, #tpu.memory_space<vmem>>, %arg7: memref<16x512xf32, #tpu.memory_space<vmem>>) attributes {dimension_semantics = [#tpu.dimension_semantics<parallel>, #tpu.dimension_semantics<parallel>, #tpu.dimension_semantics<arbitrary>], iteration_bounds = array<i64: 1, 1, 1>, scalar_prefetch = 0 : i64, scratch_operands = 1 : i64, tpu.core_type = #tpu.core_type<tc>, window_params = [{transform_indices = @transform_0, window_bounds = array<i64: 16, 256>}, {transform_indices = @transform_1, window_bounds = array<i64: 256, 512>}, {transform_indices = @transform_2, window_bounds = array<i64: 1, 512>}, {transform_indices = @transform_3, window_bounds = array<i64: 16, 512>}]} {
    %c0_i32 = arith.constant 0 : i32
    %0 = arith.cmpi eq, %arg2, %c0_i32 : i32
    %1 = arith.extui %0 : i1 to i32
    %c0_i32_0 = arith.constant 0 : i32
    %2 = arith.cmpi ne, %1, %c0_i32_0 : i32
    scf.if %2 {
      %cst_10 = arith.constant 0.000000e+00 : f32
      %14 = vector.broadcast %cst_10 : f32 to vector<16x512xf32>
      %c0_11 = arith.constant 0 : index
      %c0_12 = arith.constant 0 : index
      %15 = vector.load %arg7[%c0_11, %c0_12] : memref<16x512xf32, #tpu.memory_space<vmem>>, vector<16x512xf32>
      tpu.vector_store %arg7[%c0_11, %c0_12], %14 {strides = array<i32>} : memref<16x512xf32, #tpu.memory_space<vmem>>, vector<16x512xf32>,
    } else {
    }
    %c0 = arith.constant 0 : index
    %c0_1 = arith.constant 0 : index
    %3 = vector.load %arg7[%c0, %c0_1] : memref<16x512xf32, #tpu.memory_space<vmem>>, vector<16x512xf32>
    %c0_2 = arith.constant 0 : index
    %c0_3 = arith.constant 0 : index
    %4 = vector.load %arg3[%c0_2, %c0_3] : memref<16x256xf32, #tpu.memory_space<vmem>>, vector<16x256xf32>
    %5 = arith.truncf %4 : vector<16x256xf32> to vector<16x256xbf16>
    %c0_4 = arith.constant 0 : index
    %c0_5 = arith.constant 0 : index
    %6 = vector.load %arg4[%c0_4, %c0_5] : memref<256x512xf32, #tpu.memory_space<vmem>>, vector<256x512xf32>
    %7 = arith.truncf %6 : vector<256x512xf32> to vector<256x512xbf16>
    %cst = arith.constant dense<0.000000e+00> : vector<16x512xf32>
    %8 = tpu.matmul %5, %7, %cst {dimension_numbers = #tpu.dot_dimension_numbers<[1], [0], [0], [1], [0, 0, 1, 1], [], []>} : vector<16x256xbf16>, vector<256x512xbf16>, vector<16x512xf32> -> vector<16x512xf32>
    %9 = arith.addf %3, %8 : vector<16x512xf32>
    %c0_6 = arith.constant 0 : index
    %c0_7 = arith.constant 0 : index
    %10 = vector.load %arg7[%c0_6, %c0_7] : memref<16x512xf32, #tpu.memory_space<vmem>>, vector<16x512xf32>
    tpu.vector_store %arg7[%c0_6, %c0_7], %9 {strides = array<i32>} : memref<16x512xf32, #tpu.memory_space<vmem>>, vector<16x512xf32>,
    %c0_i32_8 = arith.constant 0 : i32
    %11 = arith.cmpi eq, %arg2, %c0_i32_8 : i32
    %12 = arith.extui %11 : i1 to i32
    %c0_i32_9 = arith.constant 0 : i32
    %13 = arith.cmpi ne, %12, %c0_i32_9 : i32
    scf.if %13 {
      %c0_10 = arith.constant 0 : index
      %c0_11 = arith.constant 0 : index
      %14 = vector.load %arg7[%c0_10, %c0_11] : memref<16x512xf32, #tpu.memory_space<vmem>>, vector<16x512xf32>
      %c0_12 = arith.constant 0 : index
      %c0_13 = arith.constant 0 : index
      %15 = vector.load %arg5[%c0_12, %c0_13] : memref<1x512xf32, #tpu.memory_space<vmem>>, vector<1x512xf32>
      %16 = vector.broadcast %15 : vector<1x512xf32> to vector<16x512xf32>
      %17 = arith.addf %14, %16 : vector<16x512xf32>
      %cst_14 = arith.constant 0.000000e+00 : f32
      %18 = vector.broadcast %cst_14 : f32 to vector<16x512xf32>
      %19 = arith.maximumf %17, %18 : vector<16x512xf32>
      %c0_15 = arith.constant 0 : index
      %c0_16 = arith.constant 0 : index
      %20 = vector.load %arg6[%c0_15, %c0_16] : memref<16x512xf32, #tpu.memory_space<vmem>>, vector<16x512xf32>
      tpu.vector_store %arg6[%c0_15, %c0_16], %19 {strides = array<i32>} : memref<16x512xf32, #tpu.memory_space<vmem>>, vector<16x512xf32>,
    } else {
    }
    return
  }
  func.func @transform_0(%arg0: i32, %arg1: i32, %arg2: i32) -> (i32, i32) {
    %c0_i32 = arith.constant 0 : i32
    return %arg0, %arg2 : i32, i32
  }
  func.func @transform_1(%arg0: i32, %arg1: i32, %arg2: i32) -> (i32, i32) {
    %c0_i32 = arith.constant 0 : i32
    return %arg2, %arg1 : i32, i32
  }
  func.func @transform_2(%arg0: i32, %arg1: i32, %arg2: i32) -> (i32, i32) {
    %c0_i32 = arith.constant 0 : i32
    %c0_i32_0 = arith.constant 0 : i32
    return %c0_i32, %arg1 : i32, i32
  }
  func.func @transform_3(%arg0: i32, %arg1: i32, %arg2: i32) -> (i32, i32) {
    %c0_i32 = arith.constant 0 : i32
    return %arg0, %arg1 : i32, i32
  }
}

module attributes {stable_mosaic.version = 11 : i64} {
  func.func @_mha_kernel(%arg0: i32, %arg1: i32, %arg2: memref<1x6x256xf32, #tpu.memory_space<vmem>>, %arg3: memref<1x6x256xf32, #tpu.memory_space<vmem>>, %arg4: memref<1x6x256xf32, #tpu.memory_space<vmem>>, %arg5: memref<1x6x256xf32, #tpu.memory_space<vmem>>, %arg6: memref<6x256xf32, #tpu.memory_space<vmem>>) attributes {dimension_semantics = [#tpu.dimension_semantics<parallel>, #tpu.dimension_semantics<parallel>], iteration_bounds = array<i64: 2, 1>, scalar_prefetch = 0 : i64, scratch_operands = 1 : i64, tpu.core_type = #tpu.core_type<tc>, window_params = [{transform_indices = @transform_0, window_bounds = array<i64: 1, 6, 256>}, {transform_indices = @transform_1, window_bounds = array<i64: 1, 6, 256>}, {transform_indices = @transform_2, window_bounds = array<i64: 1, 6, 256>}, {transform_indices = @transform_3, window_bounds = array<i64: 1, 6, 256>}]} {
    %c0 = arith.constant 0 : index
    %c0_0 = arith.constant 0 : index
    %c0_1 = arith.constant 0 : index
    %0 = vector.load %arg2[%c0, %c0_0, %c0_1] : memref<1x6x256xf32, #tpu.memory_space<vmem>>, vector<1x6x256xf32>
    %1 = vector.shape_cast %0 : vector<1x6x256xf32> to vector<6x256xf32>
    %c0_2 = arith.constant 0 : index
    %c0_3 = arith.constant 0 : index
    %c0_4 = arith.constant 0 : index
    %2 = vector.load %arg3[%c0_2, %c0_3, %c0_4] : memref<1x6x256xf32, #tpu.memory_space<vmem>>, vector<1x6x256xf32>
    %3 = vector.shape_cast %2 : vector<1x6x256xf32> to vector<6x256xf32>
    %c0_5 = arith.constant 0 : index
    %c0_6 = arith.constant 0 : index
    %c0_7 = arith.constant 0 : index
    %4 = vector.load %arg4[%c0_5, %c0_6, %c0_7] : memref<1x6x256xf32, #tpu.memory_space<vmem>>, vector<1x6x256xf32>
    %5 = vector.shape_cast %4 : vector<1x6x256xf32> to vector<6x256xf32>
    %c6_i32 = arith.constant 6 : i32
    %6 = arith.muli %arg1, %c6_i32 : i32
    %7 = tpu.iota {dimensions = array<i32: 0>} : vector<6x6xi32>
    %8 = vector.broadcast %6 : i32 to vector<6x6xi32>
    %9 = arith.addi %8, %7 : vector<6x6xi32>
    %10 = tpu.iota {dimensions = array<i32: 1>} : vector<6x6xi32>
    %11 = arith.cmpi sge, %9, %10 : vector<6x6xi32>
    %cst = arith.constant 0.000000e+00 : f32
    %cst_8 = arith.constant -1.000000e+09 : f32
    %12 = vector.broadcast %cst : f32 to vector<6x6xf32>
    %13 = vector.broadcast %cst_8 : f32 to vector<6x6xf32>
    %14 = arith.select %11, %12, %13 : vector<6x6xi1>, vector<6x6xf32>
    %15 = vector.extract_strided_slice %1 {offsets = [0, 0], sizes = [6, 128], strides = [1, 1]} : vector<6x256xf32> to vector<6x128xf32>
    %16 = arith.truncf %15 : vector<6x128xf32> to vector<6x128xbf16>
    %17 = vector.extract_strided_slice %3 {offsets = [0, 0], sizes = [6, 128], strides = [1, 1]} : vector<6x256xf32> to vector<6x128xf32>
    %18 = arith.truncf %17 : vector<6x128xf32> to vector<6x128xbf16>
    %19 = vector.extract_strided_slice %5 {offsets = [0, 0], sizes = [6, 128], strides = [1, 1]} : vector<6x256xf32> to vector<6x128xf32>
    %20 = arith.truncf %19 : vector<6x128xf32> to vector<6x128xbf16>
    %cst_9 = arith.constant dense<0.000000e+00> : vector<6x6xf32>
    %21 = tpu.matmul %16, %18, %cst_9 {dimension_numbers = #tpu.dot_dimension_numbers<[1], [1], [0], [0], [0, 0, 1, 0], [], []>} : vector<6x128xbf16>, vector<6x128xbf16>, vector<6x6xf32> -> vector<6x6xf32>
    %cst_10 = arith.constant 0.0883883461 : f32
    %22 = vector.broadcast %cst_10 : f32 to vector<6x6xf32>
    %23 = arith.mulf %21, %22 : vector<6x6xf32>
    %24 = arith.addf %23, %14 : vector<6x6xf32>
    %cst_11 = arith.constant dense<0xFF800000> : vector<6xf32>
    %25 = vector.multi_reduction <maximumf>, %24, %cst_11 [1] : vector<6x6xf32> to vector<6xf32>
    %26 = vector.shape_cast %25 : vector<6xf32> to vector<6x1xf32>
    %27 = vector.broadcast %26 : vector<6x1xf32> to vector<6x6xf32>
    %28 = arith.subf %24, %27 : vector<6x6xf32>
    %29 = math.exp %28 : vector<6x6xf32>
    %cst_12 = arith.constant dense<0.000000e+00> : vector<6xf32>
    %30 = vector.multi_reduction <add>, %29, %cst_12 [1] : vector<6x6xf32> to vector<6xf32>
    %31 = vector.shape_cast %30 : vector<6xf32> to vector<6x1xf32>
    %32 = tpu.reciprocal %31 {approx = true} : vector<6x1xf32> -> vector<6x1xf32>
    %33 = vector.broadcast %32 : vector<6x1xf32> to vector<6x6xf32>
    %34 = arith.mulf %29, %33 : vector<6x6xf32>
    %35 = arith.truncf %34 : vector<6x6xf32> to vector<6x6xbf16>
    %cst_13 = arith.constant dense<0.000000e+00> : vector<6x128xf32>
    %36 = tpu.matmul %35, %20, %cst_13 {dimension_numbers = #tpu.dot_dimension_numbers<[1], [0], [0], [1], [0, 0, 1, 1], [], []>} : vector<6x6xbf16>, vector<6x128xbf16>, vector<6x128xf32> -> vector<6x128xf32>
    %c0_14 = arith.constant 0 : index
    %c0_15 = arith.constant 0 : index
    %37 = vector.load %arg6[%c0_14, %c0_15] : memref<6x256xf32, #tpu.memory_space<vmem>>, vector<6x128xf32>
    tpu.vector_store %arg6[%c0_14, %c0_15], %36 {strides = array<i32>} : memref<6x256xf32, #tpu.memory_space<vmem>>, vector<6x128xf32>,
    %38 = vector.extract_strided_slice %1 {offsets = [0, 128], sizes = [6, 128], strides = [1, 1]} : vector<6x256xf32> to vector<6x128xf32>
    %39 = arith.truncf %38 : vector<6x128xf32> to vector<6x128xbf16>
    %40 = vector.extract_strided_slice %3 {offsets = [0, 128], sizes = [6, 128], strides = [1, 1]} : vector<6x256xf32> to vector<6x128xf32>
    %41 = arith.truncf %40 : vector<6x128xf32> to vector<6x128xbf16>
    %42 = vector.extract_strided_slice %5 {offsets = [0, 128], sizes = [6, 128], strides = [1, 1]} : vector<6x256xf32> to vector<6x128xf32>
    %43 = arith.truncf %42 : vector<6x128xf32> to vector<6x128xbf16>
    %cst_16 = arith.constant dense<0.000000e+00> : vector<6x6xf32>
    %44 = tpu.matmul %39, %41, %cst_16 {dimension_numbers = #tpu.dot_dimension_numbers<[1], [1], [0], [0], [0, 0, 1, 0], [], []>} : vector<6x128xbf16>, vector<6x128xbf16>, vector<6x6xf32> -> vector<6x6xf32>
    %cst_17 = arith.constant 0.0883883461 : f32
    %45 = vector.broadcast %cst_17 : f32 to vector<6x6xf32>
    %46 = arith.mulf %44, %45 : vector<6x6xf32>
    %47 = arith.addf %46, %14 : vector<6x6xf32>
    %cst_18 = arith.constant dense<0xFF800000> : vector<6xf32>
    %48 = vector.multi_reduction <maximumf>, %47, %cst_18 [1] : vector<6x6xf32> to vector<6xf32>
    %49 = vector.shape_cast %48 : vector<6xf32> to vector<6x1xf32>
    %50 = vector.broadcast %49 : vector<6x1xf32> to vector<6x6xf32>
    %51 = arith.subf %47, %50 : vector<6x6xf32>
    %52 = math.exp %51 : vector<6x6xf32>
    %cst_19 = arith.constant dense<0.000000e+00> : vector<6xf32>
    %53 = vector.multi_reduction <add>, %52, %cst_19 [1] : vector<6x6xf32> to vector<6xf32>
    %54 = vector.shape_cast %53 : vector<6xf32> to vector<6x1xf32>
    %55 = tpu.reciprocal %54 {approx = true} : vector<6x1xf32> -> vector<6x1xf32>
    %56 = vector.broadcast %55 : vector<6x1xf32> to vector<6x6xf32>
    %57 = arith.mulf %52, %56 : vector<6x6xf32>
    %58 = arith.truncf %57 : vector<6x6xf32> to vector<6x6xbf16>
    %cst_20 = arith.constant dense<0.000000e+00> : vector<6x128xf32>
    %59 = tpu.matmul %58, %43, %cst_20 {dimension_numbers = #tpu.dot_dimension_numbers<[1], [0], [0], [1], [0, 0, 1, 1], [], []>} : vector<6x6xbf16>, vector<6x128xbf16>, vector<6x128xf32> -> vector<6x128xf32>
    %c0_21 = arith.constant 0 : index
    %c128 = arith.constant 128 : index
    %60 = vector.load %arg6[%c0_21, %c128] : memref<6x256xf32, #tpu.memory_space<vmem>>, vector<6x128xf32>
    tpu.vector_store %arg6[%c0_21, %c128], %59 {strides = array<i32>} : memref<6x256xf32, #tpu.memory_space<vmem>>, vector<6x128xf32>,
    %c0_22 = arith.constant 0 : index
    %c0_23 = arith.constant 0 : index
    %61 = vector.load %arg6[%c0_22, %c0_23] : memref<6x256xf32, #tpu.memory_space<vmem>>, vector<6x256xf32>
    %c0_24 = arith.constant 0 : index
    %c0_25 = arith.constant 0 : index
    %c0_26 = arith.constant 0 : index
    %62 = vector.load %arg5[%c0_24, %c0_25, %c0_26] : memref<1x6x256xf32, #tpu.memory_space<vmem>>, vector<1x6x256xf32>
    %63 = vector.shape_cast %62 : vector<1x6x256xf32> to vector<6x256xf32>
    %64 = vector.shape_cast %61 : vector<6x256xf32> to vector<1x6x256xf32>
    tpu.vector_store %arg5[%c0_24, %c0_25, %c0_26], %64 {strides = array<i32>} : memref<1x6x256xf32, #tpu.memory_space<vmem>>, vector<1x6x256xf32>,
    return
  }
  func.func @transform_0(%arg0: i32, %arg1: i32) -> (i32, i32, i32) {
    %c0_i32 = arith.constant 0 : i32
    %c0_i32_0 = arith.constant 0 : i32
    return %arg0, %arg1, %c0_i32 : i32, i32, i32
  }
  func.func @transform_1(%arg0: i32, %arg1: i32) -> (i32, i32, i32) {
    %c0_i32 = arith.constant 0 : i32
    %c0_i32_0 = arith.constant 0 : i32
    %c0_i32_1 = arith.constant 0 : i32
    return %arg0, %c0_i32, %c0_i32_0 : i32, i32, i32
  }
  func.func @transform_2(%arg0: i32, %arg1: i32) -> (i32, i32, i32) {
    %c0_i32 = arith.constant 0 : i32
    %c0_i32_0 = arith.constant 0 : i32
    %c0_i32_1 = arith.constant 0 : i32
    return %arg0, %c0_i32, %c0_i32_0 : i32, i32, i32
  }
  func.func @transform_3(%arg0: i32, %arg1: i32) -> (i32, i32, i32) {
    %c0_i32 = arith.constant 0 : i32
    %c0_i32_0 = arith.constant 0 : i32
    return %arg0, %arg1, %c0_i32 : i32, i32, i32
  }
}

module attributes {stable_mosaic.version = 11 : i64} {
  func.func @_mha_kernel(%arg0: i32, %arg1: i32, %arg2: memref<1x6x256xf32, #tpu.memory_space<vmem>>, %arg3: memref<1x8x256xf32, #tpu.memory_space<vmem>>, %arg4: memref<1x8x256xf32, #tpu.memory_space<vmem>>, %arg5: memref<1x6x256xf32, #tpu.memory_space<vmem>>, %arg6: memref<6x256xf32, #tpu.memory_space<vmem>>) attributes {dimension_semantics = [#tpu.dimension_semantics<parallel>, #tpu.dimension_semantics<parallel>], iteration_bounds = array<i64: 2, 1>, scalar_prefetch = 0 : i64, scratch_operands = 1 : i64, tpu.core_type = #tpu.core_type<tc>, window_params = [{transform_indices = @transform_0, window_bounds = array<i64: 1, 6, 256>}, {transform_indices = @transform_1, window_bounds = array<i64: 1, 8, 256>}, {transform_indices = @transform_2, window_bounds = array<i64: 1, 8, 256>}, {transform_indices = @transform_3, window_bounds = array<i64: 1, 6, 256>}]} {
    %c0 = arith.constant 0 : index
    %c0_0 = arith.constant 0 : index
    %c0_1 = arith.constant 0 : index
    %0 = vector.load %arg2[%c0, %c0_0, %c0_1] : memref<1x6x256xf32, #tpu.memory_space<vmem>>, vector<1x6x256xf32>
    %1 = vector.shape_cast %0 : vector<1x6x256xf32> to vector<6x256xf32>
    %c0_2 = arith.constant 0 : index
    %c0_3 = arith.constant 0 : index
    %c0_4 = arith.constant 0 : index
    %2 = vector.load %arg3[%c0_2, %c0_3, %c0_4] : memref<1x8x256xf32, #tpu.memory_space<vmem>>, vector<1x8x256xf32>
    %3 = vector.shape_cast %2 : vector<1x8x256xf32> to vector<8x256xf32>
    %c0_5 = arith.constant 0 : index
    %c0_6 = arith.constant 0 : index
    %c0_7 = arith.constant 0 : index
    %4 = vector.load %arg4[%c0_5, %c0_6, %c0_7] : memref<1x8x256xf32, #tpu.memory_space<vmem>>, vector<1x8x256xf32>
    %5 = vector.shape_cast %4 : vector<1x8x256xf32> to vector<8x256xf32>
    %6 = vector.extract_strided_slice %1 {offsets = [0, 0], sizes = [6, 128], strides = [1, 1]} : vector<6x256xf32> to vector<6x128xf32>
    %7 = arith.truncf %6 : vector<6x128xf32> to vector<6x128xbf16>
    %8 = vector.extract_strided_slice %3 {offsets = [0, 0], sizes = [8, 128], strides = [1, 1]} : vector<8x256xf32> to vector<8x128xf32>
    %9 = arith.truncf %8 : vector<8x128xf32> to vector<8x128xbf16>
    %10 = vector.extract_strided_slice %5 {offsets = [0, 0], sizes = [8, 128], strides = [1, 1]} : vector<8x256xf32> to vector<8x128xf32>
    %11 = arith.truncf %10 : vector<8x128xf32> to vector<8x128xbf16>
    %cst = arith.constant dense<0.000000e+00> : vector<6x8xf32>
    %12 = tpu.matmul %7, %9, %cst {dimension_numbers = #tpu.dot_dimension_numbers<[1], [1], [0], [0], [0, 0, 1, 0], [], []>} : vector<6x128xbf16>, vector<8x128xbf16>, vector<6x8xf32> -> vector<6x8xf32>
    %cst_8 = arith.constant 0.0883883461 : f32
    %13 = vector.broadcast %cst_8 : f32 to vector<6x8xf32>
    %14 = arith.mulf %12, %13 : vector<6x8xf32>
    %cst_9 = arith.constant dense<0xFF800000> : vector<6xf32>
    %15 = vector.multi_reduction <maximumf>, %14, %cst_9 [1] : vector<6x8xf32> to vector<6xf32>
    %16 = vector.shape_cast %15 : vector<6xf32> to vector<6x1xf32>
    %17 = vector.broadcast %16 : vector<6x1xf32> to vector<6x8xf32>
    %18 = arith.subf %14, %17 : vector<6x8xf32>
    %19 = math.exp %18 : vector<6x8xf32>
    %cst_10 = arith.constant dense<0.000000e+00> : vector<6xf32>
    %20 = vector.multi_reduction <add>, %19, %cst_10 [1] : vector<6x8xf32> to vector<6xf32>
    %21 = vector.shape_cast %20 : vector<6xf32> to vector<6x1xf32>
    %22 = tpu.reciprocal %21 {approx = true} : vector<6x1xf32> -> vector<6x1xf32>
    %23 = vector.broadcast %22 : vector<6x1xf32> to vector<6x8xf32>
    %24 = arith.mulf %19, %23 : vector<6x8xf32>
    %25 = arith.truncf %24 : vector<6x8xf32> to vector<6x8xbf16>
    %cst_11 = arith.constant dense<0.000000e+00> : vector<6x128xf32>
    %26 = tpu.matmul %25, %11, %cst_11 {dimension_numbers = #tpu.dot_dimension_numbers<[1], [0], [0], [1], [0, 0, 1, 1], [], []>} : vector<6x8xbf16>, vector<8x128xbf16>, vector<6x128xf32> -> vector<6x128xf32>
    %c0_12 = arith.constant 0 : index
    %c0_13 = arith.constant 0 : index
    %27 = vector.load %arg6[%c0_12, %c0_13] : memref<6x256xf32, #tpu.memory_space<vmem>>, vector<6x128xf32>
    tpu.vector_store %arg6[%c0_12, %c0_13], %26 {strides = array<i32>} : memref<6x256xf32, #tpu.memory_space<vmem>>, vector<6x128xf32>,
    %28 = vector.extract_strided_slice %1 {offsets = [0, 128], sizes = [6, 128], strides = [1, 1]} : vector<6x256xf32> to vector<6x128xf32>
    %29 = arith.truncf %28 : vector<6x128xf32> to vector<6x128xbf16>
    %30 = vector.extract_strided_slice %3 {offsets = [0, 128], sizes = [8, 128], strides = [1, 1]} : vector<8x256xf32> to vector<8x128xf32>
    %31 = arith.truncf %30 : vector<8x128xf32> to vector<8x128xbf16>
    %32 = vector.extract_strided_slice %5 {offsets = [0, 128], sizes = [8, 128], strides = [1, 1]} : vector<8x256xf32> to vector<8x128xf32>
    %33 = arith.truncf %32 : vector<8x128xf32> to vector<8x128xbf16>
    %cst_14 = arith.constant dense<0.000000e+00> : vector<6x8xf32>
    %34 = tpu.matmul %29, %31, %cst_14 {dimension_numbers = #tpu.dot_dimension_numbers<[1], [1], [0], [0], [0, 0, 1, 0], [], []>} : vector<6x128xbf16>, vector<8x128xbf16>, vector<6x8xf32> -> vector<6x8xf32>
    %cst_15 = arith.constant 0.0883883461 : f32
    %35 = vector.broadcast %cst_15 : f32 to vector<6x8xf32>
    %36 = arith.mulf %34, %35 : vector<6x8xf32>
    %cst_16 = arith.constant dense<0xFF800000> : vector<6xf32>
    %37 = vector.multi_reduction <maximumf>, %36, %cst_16 [1] : vector<6x8xf32> to vector<6xf32>
    %38 = vector.shape_cast %37 : vector<6xf32> to vector<6x1xf32>
    %39 = vector.broadcast %38 : vector<6x1xf32> to vector<6x8xf32>
    %40 = arith.subf %36, %39 : vector<6x8xf32>
    %41 = math.exp %40 : vector<6x8xf32>
    %cst_17 = arith.constant dense<0.000000e+00> : vector<6xf32>
    %42 = vector.multi_reduction <add>, %41, %cst_17 [1] : vector<6x8xf32> to vector<6xf32>
    %43 = vector.shape_cast %42 : vector<6xf32> to vector<6x1xf32>
    %44 = tpu.reciprocal %43 {approx = true} : vector<6x1xf32> -> vector<6x1xf32>
    %45 = vector.broadcast %44 : vector<6x1xf32> to vector<6x8xf32>
    %46 = arith.mulf %41, %45 : vector<6x8xf32>
    %47 = arith.truncf %46 : vector<6x8xf32> to vector<6x8xbf16>
    %cst_18 = arith.constant dense<0.000000e+00> : vector<6x128xf32>
    %48 = tpu.matmul %47, %33, %cst_18 {dimension_numbers = #tpu.dot_dimension_numbers<[1], [0], [0], [1], [0, 0, 1, 1], [], []>} : vector<6x8xbf16>, vector<8x128xbf16>, vector<6x128xf32> -> vector<6x128xf32>
    %c0_19 = arith.constant 0 : index
    %c128 = arith.constant 128 : index
    %49 = vector.load %arg6[%c0_19, %c128] : memref<6x256xf32, #tpu.memory_space<vmem>>, vector<6x128xf32>
    tpu.vector_store %arg6[%c0_19, %c128], %48 {strides = array<i32>} : memref<6x256xf32, #tpu.memory_space<vmem>>, vector<6x128xf32>,
    %c0_20 = arith.constant 0 : index
    %c0_21 = arith.constant 0 : index
    %50 = vector.load %arg6[%c0_20, %c0_21] : memref<6x256xf32, #tpu.memory_space<vmem>>, vector<6x256xf32>
    %c0_22 = arith.constant 0 : index
    %c0_23 = arith.constant 0 : index
    %c0_24 = arith.constant 0 : index
    %51 = vector.load %arg5[%c0_22, %c0_23, %c0_24] : memref<1x6x256xf32, #tpu.memory_space<vmem>>, vector<1x6x256xf32>
    %52 = vector.shape_cast %51 : vector<1x6x256xf32> to vector<6x256xf32>
    %53 = vector.shape_cast %50 : vector<6x256xf32> to vector<1x6x256xf32>
    tpu.vector_store %arg5[%c0_22, %c0_23, %c0_24], %53 {strides = array<i32>} : memref<1x6x256xf32, #tpu.memory_space<vmem>>, vector<1x6x256xf32>,
    return
  }
  func.func @transform_0(%arg0: i32, %arg1: i32) -> (i32, i32, i32) {
    %c0_i32 = arith.constant 0 : i32
    %c0_i32_0 = arith.constant 0 : i32
    return %arg0, %arg1, %c0_i32 : i32, i32, i32
  }
  func.func @transform_1(%arg0: i32, %arg1: i32) -> (i32, i32, i32) {
    %c0_i32 = arith.constant 0 : i32
    %c0_i32_0 = arith.constant 0 : i32
    %c0_i32_1 = arith.constant 0 : i32
    return %arg0, %c0_i32, %c0_i32_0 : i32, i32, i32
  }
  func.func @transform_2(%arg0: i32, %arg1: i32) -> (i32, i32, i32) {
    %c0_i32 = arith.constant 0 : i32
    %c0_i32_0 = arith.constant 0 : i32
    %c0_i32_1 = arith.constant 0 : i32
    return %arg0, %c0_i32, %c0_i32_0 : i32, i32, i32
  }
  func.func @transform_3(%arg0: i32, %arg1: i32) -> (i32, i32, i32) {
    %c0_i32 = arith.constant 0 : i32
    %c0_i32_0 = arith.constant 0 : i32
    return %arg0, %arg1, %c0_i32 : i32, i32, i32
  }
}

module attributes {stable_mosaic.version = 11 : i64} {
  func.func @_logits_ce_kernel(%arg0: i32, %arg1: i32, %arg2: memref<16x256xf32, #tpu.memory_space<vmem>>, %arg3: memref<128x256xf32, #tpu.memory_space<vmem>>, %arg4: memref<16x1xi32, #tpu.memory_space<vmem>>, %arg5: memref<16x1xf32, #tpu.memory_space<vmem>>, %arg6: memref<16x1xf32, #tpu.memory_space<vmem>>, %arg7: memref<16x1xf32, #tpu.memory_space<vmem>>, %arg8: memref<16x1xf32, #tpu.memory_space<vmem>>) attributes {dimension_semantics = [#tpu.dimension_semantics<parallel>, #tpu.dimension_semantics<arbitrary>], iteration_bounds = array<i64: 1, 1>, scalar_prefetch = 0 : i64, scratch_operands = 3 : i64, tpu.core_type = #tpu.core_type<tc>, window_params = [{transform_indices = @transform_0, window_bounds = array<i64: 16, 256>}, {transform_indices = @transform_1, window_bounds = array<i64: 128, 256>}, {transform_indices = @transform_2, window_bounds = array<i64: 16, 1>}, {transform_indices = @transform_3, window_bounds = array<i64: 16, 1>}]} {
    %c0_i32 = arith.constant 0 : i32
    %0 = arith.cmpi eq, %arg1, %c0_i32 : i32
    %1 = arith.extui %0 : i1 to i32
    %c0_i32_0 = arith.constant 0 : i32
    %2 = arith.cmpi ne, %1, %c0_i32_0 : i32
    scf.if %2 {
      %cst_27 = arith.constant -1.000000e+30 : f32
      %46 = vector.broadcast %cst_27 : f32 to vector<16x1xf32>
      %c0_28 = arith.constant 0 : index
      %c0_29 = arith.constant 0 : index
      %47 = vector.load %arg6[%c0_28, %c0_29] : memref<16x1xf32, #tpu.memory_space<vmem>>, vector<16x1xf32>
      tpu.vector_store %arg6[%c0_28, %c0_29], %46 {strides = array<i32>} : memref<16x1xf32, #tpu.memory_space<vmem>>, vector<16x1xf32>,
      %cst_30 = arith.constant 0.000000e+00 : f32
      %48 = vector.broadcast %cst_30 : f32 to vector<16x1xf32>
      %c0_31 = arith.constant 0 : index
      %c0_32 = arith.constant 0 : index
      %49 = vector.load %arg7[%c0_31, %c0_32] : memref<16x1xf32, #tpu.memory_space<vmem>>, vector<16x1xf32>
      tpu.vector_store %arg7[%c0_31, %c0_32], %48 {strides = array<i32>} : memref<16x1xf32, #tpu.memory_space<vmem>>, vector<16x1xf32>,
      %cst_33 = arith.constant 0.000000e+00 : f32
      %50 = vector.broadcast %cst_33 : f32 to vector<16x1xf32>
      %c0_34 = arith.constant 0 : index
      %c0_35 = arith.constant 0 : index
      %51 = vector.load %arg8[%c0_34, %c0_35] : memref<16x1xf32, #tpu.memory_space<vmem>>, vector<16x1xf32>
      tpu.vector_store %arg8[%c0_34, %c0_35], %50 {strides = array<i32>} : memref<16x1xf32, #tpu.memory_space<vmem>>, vector<16x1xf32>,
    } else {
    }
    %c0 = arith.constant 0 : index
    %c0_1 = arith.constant 0 : index
    %3 = vector.load %arg2[%c0, %c0_1] : memref<16x256xf32, #tpu.memory_space<vmem>>, vector<16x256xf32>
    %4 = arith.truncf %3 : vector<16x256xf32> to vector<16x256xbf16>
    %c0_2 = arith.constant 0 : index
    %c0_3 = arith.constant 0 : index
    %5 = vector.load %arg3[%c0_2, %c0_3] : memref<128x256xf32, #tpu.memory_space<vmem>>, vector<128x256xf32>
    %6 = arith.truncf %5 : vector<128x256xf32> to vector<128x256xbf16>
    %cst = arith.constant dense<0.000000e+00> : vector<16x128xf32>
    %7 = tpu.matmul %4, %6, %cst {dimension_numbers = #tpu.dot_dimension_numbers<[1], [1], [0], [0], [0, 0, 1, 0], [], []>} : vector<16x256xbf16>, vector<128x256xbf16>, vector<16x128xf32> -> vector<16x128xf32>
    %c128_i32 = arith.constant 128 : i32
    %8 = arith.muli %arg1, %c128_i32 : i32
    %9 = tpu.iota {dimensions = array<i32: 1>} : vector<16x128xi32>
    %10 = vector.broadcast %8 : i32 to vector<16x128xi32>
    %11 = arith.addi %10, %9 : vector<16x128xi32>
    %c32_i32 = arith.constant 32 : i32
    %12 = vector.broadcast %c32_i32 : i32 to vector<16x128xi32>
    %13 = arith.cmpi slt, %11, %12 : vector<16x128xi32>
    %cst_4 = arith.constant -1.000000e+30 : f32
    %14 = vector.broadcast %cst_4 : f32 to vector<16x128xf32>
    %15 = arith.select %13, %7, %14 : vector<16x128xi1>, vector<16x128xf32>
    %c0_5 = arith.constant 0 : index
    %c0_6 = arith.constant 0 : index
    %16 = vector.load %arg4[%c0_5, %c0_6] : memref<16x1xi32, #tpu.memory_space<vmem>>, vector<16x1xi32>
    %c0_7 = arith.constant 0 : index
    %c0_8 = arith.constant 0 : index
    %17 = vector.load %arg8[%c0_7, %c0_8] : memref<16x1xf32, #tpu.memory_space<vmem>>, vector<16x1xf32>
    %18 = vector.broadcast %16 : vector<16x1xi32> to vector<16x128xi32>
    %19 = arith.cmpi eq, %11, %18 : vector<16x128xi32>
    %cst_9 = arith.constant 0.000000e+00 : f32
    %20 = vector.broadcast %cst_9 : f32 to vector<16x128xf32>
    %21 = arith.select %19, %15, %20 : vector<16x128xi1>, vector<16x128xf32>
    %cst_10 = arith.constant dense<0.000000e+00> : vector<16xf32>
    %22 = vector.multi_reduction <add>, %21, %cst_10 [1] : vector<16x128xf32> to vector<16xf32>
    %23 = vector.shape_cast %22 : vector<16xf32> to vector<16x1xf32>
    %24 = arith.addf %17, %23 : vector<16x1xf32>
    %c0_11 = arith.constant 0 : index
    %c0_12 = arith.constant 0 : index
    %25 = vector.load %arg8[%c0_11, %c0_12] : memref<16x1xf32, #tpu.memory_space<vmem>>, vector<16x1xf32>
    tpu.vector_store %arg8[%c0_11, %c0_12], %24 {strides = array<i32>} : memref<16x1xf32, #tpu.memory_space<vmem>>, vector<16x1xf32>,
    %c0_13 = arith.constant 0 : index
    %c0_14 = arith.constant 0 : index
    %26 = vector.load %arg6[%c0_13, %c0_14] : memref<16x1xf32, #tpu.memory_space<vmem>>, vector<16x1xf32>
    %cst_15 = arith.constant dense<0xFF800000> : vector<16xf32>
    %27 = vector.multi_reduction <maximumf>, %15, %cst_15 [1] : vector<16x128xf32> to vector<16xf32>
    %28 = vector.shape_cast %27 : vector<16xf32> to vector<16x1xf32>
    %29 = arith.maximumf %26, %28 : vector<16x1xf32>
    %c0_16 = arith.constant 0 : index
    %c0_17 = arith.constant 0 : index
    %30 = vector.load %arg6[%c0_16, %c0_17] : memref<16x1xf32, #tpu.memory_space<vmem>>, vector<16x1xf32>
    %31 = arith.subf %30, %29 : vector<16x1xf32>
    %32 = math.exp %31 : vector<16x1xf32>
    %c0_18 = arith.constant 0 : index
    %c0_19 = arith.constant 0 : index
    %33 = vector.load %arg7[%c0_18, %c0_19] : memref<16x1xf32, #tpu.memory_space<vmem>>, vector<16x1xf32>
    %34 = arith.mulf %32, %33 : vector<16x1xf32>
    %35 = vector.broadcast %29 : vector<16x1xf32> to vector<16x128xf32>
    %36 = arith.subf %15, %35 : vector<16x128xf32>
    %37 = math.exp %36 : vector<16x128xf32>
    %cst_20 = arith.constant dense<0.000000e+00> : vector<16xf32>
    %38 = vector.multi_reduction <add>, %37, %cst_20 [1] : vector<16x128xf32> to vector<16xf32>
    %39 = vector.shape_cast %38 : vector<16xf32> to vector<16x1xf32>
    %40 = arith.addf %34, %39 : vector<16x1xf32>
    %c0_21 = arith.constant 0 : index
    %c0_22 = arith.constant 0 : index
    %41 = vector.load %arg7[%c0_21, %c0_22] : memref<16x1xf32, #tpu.memory_space<vmem>>, vector<16x1xf32>
    tpu.vector_store %arg7[%c0_21, %c0_22], %40 {strides = array<i32>} : memref<16x1xf32, #tpu.memory_space<vmem>>, vector<16x1xf32>,
    %c0_23 = arith.constant 0 : index
    %c0_24 = arith.constant 0 : index
    %42 = vector.load %arg6[%c0_23, %c0_24] : memref<16x1xf32, #tpu.memory_space<vmem>>, vector<16x1xf32>
    tpu.vector_store %arg6[%c0_23, %c0_24], %29 {strides = array<i32>} : memref<16x1xf32, #tpu.memory_space<vmem>>, vector<16x1xf32>,
    %c0_i32_25 = arith.constant 0 : i32
    %43 = arith.cmpi eq, %arg1, %c0_i32_25 : i32
    %44 = arith.extui %43 : i1 to i32
    %c0_i32_26 = arith.constant 0 : i32
    %45 = arith.cmpi ne, %44, %c0_i32_26 : i32
    scf.if %45 {
      %c0_27 = arith.constant 0 : index
      %c0_28 = arith.constant 0 : index
      %46 = vector.load %arg6[%c0_27, %c0_28] : memref<16x1xf32, #tpu.memory_space<vmem>>, vector<16x1xf32>
      %c0_29 = arith.constant 0 : index
      %c0_30 = arith.constant 0 : index
      %47 = vector.load %arg7[%c0_29, %c0_30] : memref<16x1xf32, #tpu.memory_space<vmem>>, vector<16x1xf32>
      %48 = math.log %47 : vector<16x1xf32>
      %49 = arith.addf %46, %48 : vector<16x1xf32>
      %c0_31 = arith.constant 0 : index
      %c0_32 = arith.constant 0 : index
      %50 = vector.load %arg8[%c0_31, %c0_32] : memref<16x1xf32, #tpu.memory_space<vmem>>, vector<16x1xf32>
      %51 = arith.subf %49, %50 : vector<16x1xf32>
      %c0_33 = arith.constant 0 : index
      %c0_34 = arith.constant 0 : index
      %52 = vector.load %arg5[%c0_33, %c0_34] : memref<16x1xf32, #tpu.memory_space<vmem>>, vector<16x1xf32>
      tpu.vector_store %arg5[%c0_33, %c0_34], %51 {strides = array<i32>} : memref<16x1xf32, #tpu.memory_space<vmem>>, vector<16x1xf32>,
    } else {
    }
    return
  }
  func.func @transform_0(%arg0: i32, %arg1: i32) -> (i32, i32) {
    %c0_i32 = arith.constant 0 : i32
    %c0_i32_0 = arith.constant 0 : i32
    return %arg0, %c0_i32 : i32, i32
  }
  func.func @transform_1(%arg0: i32, %arg1: i32) -> (i32, i32) {
    %c0_i32 = arith.constant 0 : i32
    %c0_i32_0 = arith.constant 0 : i32
    return %arg1, %c0_i32 : i32, i32
  }
  func.func @transform_2(%arg0: i32, %arg1: i32) -> (i32, i32) {
    %c0_i32 = arith.constant 0 : i32
    %c0_i32_0 = arith.constant 0 : i32
    return %arg0, %c0_i32 : i32, i32
  }
  func.func @transform_3(%arg0: i32, %arg1: i32) -> (i32, i32) {
    %c0_i32 = arith.constant 0 : i32
    %c0_i32_0 = arith.constant 0 : i32
    return %arg0, %c0_i32 : i32, i32
  }
}

</mosaic_0001>

<bundles_post_ra>
// kernel: transformer_loss.56
= control target key start
LH: loop header
LB: loop body
LE: loop exit
PB: predicated region body
PF: predicated region fallthrough
CT: control target
= control target key end

     0   :  { %v64_v32 = vlaneseq  ;;  %s173_s0 = inlined_call_operand.vmem [shape: f32[16,256], index: 0, kind: input, shape index: {}]   ;;  %s174_s1 = inlined_call_operand.vmem [shape: f32[16,256], index: 1, kind: input, shape index: {}]   ;;  %s175_s2 = inlined_call_operand.vmem [shape: f32[1,256], index: 2, kind: input, shape index: {}]   ;;  %s176_s3 = inlined_call_operand.vmem [shape: f32[1,256], index: 3, kind: input, shape index: {}]   ;;  %s177_s4 = inlined_call_operand.vmem [shape: f32[16,256], index: 4, kind: output, shape index: {}]  }
   0x1   :  { %v17_v0 = vld [vmem:[%s173_s0] sm:$0xff]  ;;  %v18_v1 = vld [vmem:[%s173_s0 + $0x8] sm:$0xff]  ;;  %v19_v5 = vld [vmem:[%s173_s0 + $0x10] sm:$0xff] }
   0x2   :  { %v21_v2 = vld [vmem:[%s174_s1] sm:$0xff]  ;;  %v22_v3 = vld [vmem:[%s174_s1 + $0x8] sm:$0xff]  ;;  %v20_v6 = vld [vmem:[%s173_s0 + $0x18] sm:$0xff]  ;;  %v65_v35 = vshrl.u32 %v64_v32, 7 }
   0x3   :  { %v25_v4 = vadd.f32 %v21_v2, %v17_v0  ;;  %v26_v7 = vadd.f32 %v22_v3, %v18_v1  ;;  %v23_v8 = vld [vmem:[%s174_s1 + $0x10] sm:$0xff]  ;;  %v24_v9 = vld [vmem:[%s174_s1 + $0x18] sm:$0xff]  ;;  %v62_v38 = vld [vmem:[%s175_s2] sm:$0x3] }
   0x4   :  { %v27_v10 = vadd.f32 %v23_v8, %v19_v5  ;;  %v28_v11 = vadd.f32 %v24_v9, %v20_v6  ;;  %v66_v36 = vsub.s32 0, %v65_v35  ;;  %v70_v37 = vsub.s32 1, %v65_v35  ;;  %v78_v39 = vld [vmem:[%s176_s3] sm:$0x3] }
   0x5   :  { %v29_v12 = vadd.f32 %v26_v7, %v25_v4 }
   0x6   :  { %v32_v13 = vadd.f32 %v28_v11, %v27_v10  ;;  %v67_v40 = vrot.slane %v62_v38, %v66_v36  ;;  %v71_v41 = vrot.slane %v62_v38, %v70_v37  ;;  %v83_v43 = vrot.slane %v78_v39, %v66_v36 }
   0x7   :  { %30 = vadd.xlane.f32.xlu0 %v29_v12  ;;  %v87_v44 = vrot.slane %v78_v39, %v70_v37 }
   0xb   :  { %33 = vadd.xlane.f32.xlu0 %v32_v13 }
  0x90   :  { %v31_v14 = vpop.xlane.xlu0 %30 }
  0x91   :  { %v36_v15 = vmul.f32 0.00390625, %v31_v14 }
  0x93   :  { %v38_v16 = vsub.f32 %v25_v4, %v36_v15  ;;  %v39_v17 = vsub.f32 %v26_v7, %v36_v15 }
  0x94   :  { %v34_v18 = vpop.xlane.xlu0 %33 }
  0x95   :  { %v37_v19 = vmul.f32 0.00390625, %v34_v18  ;;  %v42_v20 = vmul.f32 %v38_v16, %v38_v16  ;;  %v43_v21 = vmul.f32 %v39_v17, %v39_v17 }
  0x97   :  { %v40_v22 = vsub.f32 %v27_v10, %v37_v19  ;;  %v41_v23 = vsub.f32 %v28_v11, %v37_v19  ;;  %v46_v24 = vadd.f32 %v43_v21, %v42_v20 }
  0x99   :  { %47 = vadd.xlane.f32.xlu1 %v46_v24  ;;  %v44_v25 = vmul.f32 %v40_v22, %v40_v22  ;;  %v45_v26 = vmul.f32 %v41_v23, %v41_v23 }
  0x9b   :  { %v49_v27 = vadd.f32 %v45_v26, %v44_v25 }
  0x9d   :  { %50 = vadd.xlane.f32.xlu1 %v49_v27 }
 0x122   :  { %v48_v28 = vpop.xlane.xlu1 %47 }
 0x123   :  { %v52_v29 = vmul.f32 0.00390625, %v48_v28 }
 0x125   :  { %v54_v30 = vadd.f32 1e-05, %v52_v29 }
 0x126   :  { %v51_v31 = vpop.xlane.xlu1 %50 }
 0x127   :  { %102 = vrsqrt.f32 %v54_v30  ;;  %v53_v33 = vmul.f32 0.00390625, %v51_v31 }
 0x129   :  { %v55_v34 = vadd.f32 1e-05, %v53_v33 }
 0x12b   :  { %104 = vrsqrt.f32 %v55_v34 }
 0x134   :  { %v103_v42 = vpop.eup %102 }
 0x135   :  { %v58_v45 = vmul.f32 %v103_v42, %v38_v16  ;;  %v59_v46 = vmul.f32 %v103_v42, %v39_v17 }
 0x137   :  { %v74_v47 = vmul.f32 %v67_v40, %v58_v45  ;;  %v75_v48 = vmul.f32 %v71_v41, %v59_v46 }
 0x138   :  { %v105_v49 = vpop.eup %104 }
 0x139   :  { %v90_v50 = vadd.f32 %v83_v43, %v74_v47  ;;  %v91_v51 = vadd.f32 %v87_v44, %v75_v48  ;;  %v60_v52 = vmul.f32 %v105_v49, %v40_v22  ;;  %v61_v53 = vmul.f32 %v105_v49, %v41_v23 }
 0x13b   :  { %94 = vst [vmem:[%s177_s4] sm:$0xff] %v90_v50  ;;  %95 = vst [vmem:[%s177_s4 + $0x8] sm:$0xff] %v91_v51  ;;  %v76_v54 = vmul.f32 %v67_v40, %v60_v52  ;;  %v77_v55 = vmul.f32 %v71_v41, %v61_v53 }
 0x13d   :  { %v92_v56 = vadd.f32 %v83_v43, %v76_v54  ;;  %v93_v57 = vadd.f32 %v87_v44, %v77_v55 }
 0x13f   :  { %96 = vst [vmem:[%s177_s4 + $0x10] sm:$0xff] %v92_v56  ;;  %97 = vst [vmem:[%s177_s4 + $0x18] sm:$0xff] %v93_v57 }

// kernel: transformer_loss.50
= control target key start
LH: loop header
LB: loop body
LE: loop exit
PB: predicated region body
PF: predicated region fallthrough
CT: control target
= control target key end

     0   :  { %v161_v3 = vmov 0   ;;  %v138_v52 = vlaneseq  ;;  %s299_s1 = inlined_call_operand.vmem [shape: f32[128,256], index: 1, kind: input, shape index: {}]   ;;  %s300_s0 = inlined_call_operand.vmem [shape: f32[16,128], index: 0, kind: input, shape index: {}]   ;;  %s301_s2 = inlined_call_operand.vmem [shape: f32[1,256], index: 2, kind: input, shape index: {}]   ;;  %s302_s3 = inlined_call_operand.vmem [shape: f32[16,256], index: 3, kind: output, shape index: {}]  }
   0x1   :  { %v59_v0 = vld [vmem:[%s299_s1 + $0xe8] sm:$0xff]  ;;  %v61_v1 = vld [vmem:[%s299_s1 + $0xf8] sm:$0xff]  ;;  %v58_v2 = vld [vmem:[%s299_s1 + $0xe0] sm:$0xff]  ;;  %110 = vmatprep.mubr.bf16.mxu0 %v161_v3 }
   0x2   :  { %v77_v4 = vpack.c.bf16 %v61_v1, %v59_v0  ;;  %v60_v5 = vld [vmem:[%s299_s1 + $0xf0] sm:$0xff]  ;;  %v55_v6 = vld [vmem:[%s299_s1 + $0xc8] sm:$0xff]  ;;  %v57_v7 = vld [vmem:[%s299_s1 + $0xd8] sm:$0xff]  ;;  %v139_v53 = vshrl.u32 %v138_v52, 7 }
   0x3   :  { %v76_v8 = vpack.c.bf16 %v60_v5, %v58_v2  ;;  %v75_v9 = vpack.c.bf16 %v57_v7, %v55_v6  ;;  %v54_v10 = vld [vmem:[%s299_s1 + $0xc0] sm:$0xff]  ;;  %v56_v11 = vld [vmem:[%s299_s1 + $0xd0] sm:$0xff]  ;;  %v51_v12 = vld [vmem:[%s299_s1 + $0xa8] sm:$0xff] }
   0x4   :  { %78 = vmatprep.subr.bf16.mxu0 %v77_v4  ;;  %v53_v13 = vld [vmem:[%s299_s1 + $0xb8] sm:$0xff]  ;;  %v74_v14 = vpack.c.bf16 %v56_v11, %v54_v10  ;;  %v50_v16 = vld [vmem:[%s299_s1 + $0xa0] sm:$0xff]  ;;  %v52_v17 = vld [vmem:[%s299_s1 + $0xb0] sm:$0xff]  ;;  %v140_v54 = vsub.s32 0, %v139_v53  ;;  %v144_v56 = vsub.s32 1, %v139_v53 }
   0x5   :  { %79 = vmatpush1.bf16.msra.mxu0 %v76_v8  ;;  %v73_v15 = vpack.c.bf16 %v53_v13, %v51_v12  ;;  %v47_v18 = vld [vmem:[%s299_s1 + $0x88] sm:$0xff]  ;;  %v49_v19 = vld [vmem:[%s299_s1 + $0x98] sm:$0xff]  ;;  %v72_v20 = vpack.c.bf16 %v52_v17, %v50_v16  ;;  %v46_v22 = vld [vmem:[%s299_s1 + $0x80] sm:$0xff] }
   0x6   :  { %80 = vmatprep.subr.bf16.mxu0 %v75_v9  ;;  %v71_v21 = vpack.c.bf16 %v49_v19, %v47_v18  ;;  %v48_v23 = vld [vmem:[%s299_s1 + $0x90] sm:$0xff]  ;;  %v43_v24 = vld [vmem:[%s299_s1 + $0x68] sm:$0xff]  ;;  %v45_v25 = vld [vmem:[%s299_s1 + $0x78] sm:$0xff] }
   0x7   :  { %v70_v26 = vpack.c.bf16 %v48_v23, %v46_v22  ;;  %v69_v27 = vpack.c.bf16 %v45_v25, %v43_v24  ;;  %v42_v28 = vld [vmem:[%s299_s1 + $0x60] sm:$0xff]  ;;  %v44_v29 = vld [vmem:[%s299_s1 + $0x70] sm:$0xff]  ;;  %v39_v30 = vld [vmem:[%s299_s1 + $0x48] sm:$0xff] }
   0x8   :  { %v41_v31 = vld [vmem:[%s299_s1 + $0x58] sm:$0xff]  ;;  %v68_v32 = vpack.c.bf16 %v44_v29, %v42_v28  ;;  %v38_v34 = vld [vmem:[%s299_s1 + $0x40] sm:$0xff]  ;;  %v40_v35 = vld [vmem:[%s299_s1 + $0x50] sm:$0xff] }
   0x9   :  { %81 = vmatpush1.bf16.msra.mxu0 %v74_v14  ;;  %v67_v33 = vpack.c.bf16 %v41_v31, %v39_v30  ;;  %v35_v36 = vld [vmem:[%s299_s1 + $0x28] sm:$0xff]  ;;  %v37_v37 = vld [vmem:[%s299_s1 + $0x38] sm:$0xff]  ;;  %v66_v38 = vpack.c.bf16 %v40_v35, %v38_v34  ;;  %v34_v40 = vld [vmem:[%s299_s1 + $0x20] sm:$0xff] }
   0xa   :  { %82 = vmatprep.subr.bf16.mxu0 %v73_v15  ;;  %v65_v39 = vpack.c.bf16 %v37_v37, %v35_v36  ;;  %v36_v41 = vld [vmem:[%s299_s1 + $0x30] sm:$0xff]  ;;  %v31_v42 = vld [vmem:[%s299_s1 + $0x8] sm:$0xff]  ;;  %v33_v43 = vld [vmem:[%s299_s1 + $0x18] sm:$0xff] }
   0xb   :  { %v64_v44 = vpack.c.bf16 %v36_v41, %v34_v40  ;;  %v63_v45 = vpack.c.bf16 %v33_v43, %v31_v42  ;;  %v30_v46 = vld [vmem:[%s299_s1] sm:$0xff]  ;;  %v32_v47 = vld [vmem:[%s299_s1 + $0x10] sm:$0xff]  ;;  %v28_v50 = vld [vmem:[%s300_s0 + $0x8] sm:$0xff] }
   0xc   :  { %v62_v48 = vpack.c.bf16 %v32_v47, %v30_v46  ;;  %v27_v49 = vld [vmem:[%s300_s0] sm:$0xff] }
   0xd   :  { %83 = vmatpush1.bf16.msra.mxu0 %v72_v20  ;;  %v29_v51 = vpack.c.bf16 %v28_v50, %v27_v49  ;;  %v136_v55 = vld [vmem:[%s301_s2] sm:$0x3] }
   0xe   :  { %84 = vmatprep.subr.bf16.mxu0 %v71_v21  ;;  %v141_v57 = vrot.slane %v136_v55, %v140_v54  ;;  %v145_v58 = vrot.slane %v136_v55, %v144_v56 }
  0x11   :  { %85 = vmatpush1.bf16.msra.mxu0 %v70_v26 }
  0x12   :  { %86 = vmatprep.subr.bf16.mxu0 %v69_v27 }
  0x15   :  { %87 = vmatpush1.bf16.msra.mxu0 %v68_v32 }
  0x16   :  { %88 = vmatprep.subr.bf16.mxu0 %v67_v33 }
  0x19   :  { %89 = vmatpush1.bf16.msra.mxu0 %v66_v38 }
  0x1a   :  { %90 = vmatprep.subr.bf16.mxu0 %v65_v39 }
  0x1d   :  { %91 = vmatpush1.bf16.msra.mxu0 %v64_v44 }
  0x1e   :  { %92 = vmatprep.subr.bf16.mxu0 %v63_v45 }
  0x21   :  { %93 = vmatpush1.bf16.msra.mxu0 %v62_v48 }
  0x24   :  { %111 = vmatmul.mubr.bf16.vlgmr.msra.gmra.mxu0 %v29_v51 }
  0xe4   :  { %v112_v59 = vpop.f32.mrf.mxu0 }
  0xe5   :  { %v148_v60 = vadd.f32 %v141_v57, %v112_v59 }
  0xe6   :  { %v114_v61 = vpop.f32.mrf.mxu0 }
  0xe7   :  { %152 = vst [vmem:[%s302_s3] sm:$0xff] %v148_v60  ;;  %v149_v62 = vadd.f32 %v145_v58, %v114_v61 }
  0xe8   :  { %v116_v63 = vpop.f32.mrf.mxu0 }
  0xe9   :  { %153 = vst [vmem:[%s302_s3 + $0x8] sm:$0xff] %v149_v62  ;;  %v150_v0 = vadd.f32 %v141_v57, %v116_v63 }
  0xea   :  { %v118_v1 = vpop.f32.mrf.mxu0 }
  0xeb   :  { %154 = vst [vmem:[%s302_s3 + $0x10] sm:$0xff] %v150_v0  ;;  %v151_v2 = vadd.f32 %v145_v58, %v118_v1 }
  0xed   :  { %155 = vst [vmem:[%s302_s3 + $0x18] sm:$0xff] %v151_v2 }

// kernel: transformer_loss.54
= control target key start
LH: loop header
LB: loop body
LE: loop exit
PB: predicated region body
PF: predicated region fallthrough
CT: control target
= control target key end

     0   :  { %s715_s12 = smov 0   ;;  %s717_s13 = smov 0   ;;  %s778_s0 = inlined_call_operand.vmem [shape: f32[2,8,256], index: 0, kind: input, shape index: {}]   ;;  %s779_s1 = inlined_call_operand.vmem [shape: f32[2,8,256], index: 1, kind: input, shape index: {}]   ;;  %s780_s2 = inlined_call_operand.vmem [shape: f32[2,8,256], index: 2, kind: input, shape index: {}]   ;;  %s781_s3 = inlined_call_operand.vmem [shape: f32[2,8,256], index: 3, kind: output, shape index: {}]  }
   0x1   :  { %s719_s14 = smov 0  }
   0x2 LB: > { %s25_s15 = sadd.s32 1, %s687_s13  ;;  %p586_p0 = scmp.ge.s32.totalorder %s691_s14, 1  ;;  %s691_s14 = sphi %s719_s14, %s13_s14   ;;  %s687_s13 = sphi %s717_s13, %s783_s13   ;;  %s683_s12 = sphi %s715_s12, %s782_s12  }
   0x3   : > { %p27_p1 = scmp.ge.s32.totalorder %s25_s15, 2  ;;  %p177_p2 = scmp.lt.s32.totalorder %s691_s14, 3 }
   0x5   : > { %s785_s15 = smov (%p27_p1, %s25_s15), 0  ;;  %p178_p3 = pnand %p586_p0, %p177_p2 }
   0x6   : > { %p219_p4 = scmp.lt.s32.totalorder (!%p178_p3), %s683_s12, 1 }
   0x7   : > { %181 = sbr.rel (%p178_p3) target bundleno = 1250 (0x4e2), region = 32 }
   0xc   : > { %v693_v0 = vmov 0.0   ;;  %vm694_vm0 = vmmov 0   ;;  %s787_s12 = smov (!%p219_p4, %s683_s12), 1  ;;  %vm298_vm1 = vcmask 64512   ;;  %vm314_vm2 = vcmask 1043456  }
   0xd   : > { %611 = vmatprep.subr.bf16.mxu0 %v693_v0  ;;  %613 = vmatprep.mubr.msk.bf16.mxu0 %vm694_vm0, %v693_v0  ;;  %s735_s16 = sshll.u32 %s787_s12, 4 }
   0xe   : > { %617 = vmatprep.subr.bf16.mxu1 %v693_v0  ;;  %619 = vmatprep.mubr.msk.bf16.mxu1 %vm694_vm0, %v693_v0  ;;  %s741_s19 = scalar_lea.vmem %s779_s1, %s735_s16  ;;  %s748_s22 = scalar_lea.vmem %s778_s0, %s735_s16 }
   0xf   : > { %v250_v1 = vld [vmem:[%s741_s19] sm:$0xff]  ;;  %s237_s25 = scalar_lea.vmem %s780_s2, %s735_s16  ;;  %v251_v23 = vld [vmem:[%s741_s19 + $0x8] sm:$0xff]  ;;  %s246_s28 = scalar_lea.vmem %s781_s3, %s735_s16 }
  0x10   : > { %v255_v2 = vpack.c.bf16 %v250_v1, %v250_v1  ;;  %v248_v3 = vld [vmem:[%s748_s22] sm:$0xff]  ;;  %v253_v17 = vld [vmem:[%s237_s25 + $0x8] sm:$0xff]  ;;  %v360_v26 = vpack.c.bf16 %v251_v23, %v251_v23 }
  0x11   : > { %v254_v4 = vpack.c.bf16 %v248_v3, %v248_v3  ;;  %v252_v16 = vld [vmem:[%s237_s25] sm:$0xff]  ;;  %v361_v19 = vpack.c.bf16 %v253_v17, %v253_v17  ;;  %v249_v28 = vld [vmem:[%s748_s22 + $0x8] sm:$0xff] }
  0x12   : > { %612 = vmatpush3.bf16.xpose.msra.mxu0 %v255_v2  ;;  %v256_v18 = vpack.c.bf16 %v252_v16, %v252_v16  ;;  %v359_v29 = vpack.c.bf16 %v249_v28, %v249_v28 }
  0x13   : > { %629 = vmatprep.subr.bf16.mxu0 %v693_v0  ;;  %v419_v21 = vsel %vm314_vm2, %v361_v19, 0 }
  0x14   : > { %v316_v20 = vsel %vm314_vm2, %v256_v18, 0 }
  0x15   : > { %618 = vmatpush3.bf16.msra.mxu1 %v316_v20 }
  0x16   : > { %623 = vmatprep.subr.bf16.mxu1 %v693_v0 }
  0x19   : > { %614 = vmatmul.mubr.bf16.vlgmr.msra.gmra.mxu0 %v254_v4 }
  0x1a   : > { %631 = vmatprep.mubr.msk.bf16.mxu0 %vm694_vm0, %v693_v0  ;;  %630 = vmatpush3.bf16.msra.mxu0 %v419_v21 }
  0xd9   : > { %v291_v5 = vpop.f32.mrf.mxu0 }
  0xda   : > { %v297_v6 = vmul.f32 0.088388346, %v291_v5 }
  0xdb   : > { %v615_v7 = vpop.f32.mrf.mxu0 }
  0xdc   : > { %v299_v8 = vsel %vm298_vm1, %v297_v6, -inf }
  0xdd   : > { %300 = vmax.xlane.f32.xlu0 %v299_v8  ;;  %v294_v9 = vpop.f32.mrf.mxu0 }
  0xdf   : > { %v616_v10 = vpop.f32.mrf.mxu0 }
 0x166   : > { %v301_v11 = vpop.xlane.xlu0 %300 }
 0x167   : > { %v302_v12 = vsub.f32 %v297_v6, %v301_v11 }
 0x169   : > { %v303_v13 = vmul.f32 1.442695, %v302_v12 }
 0x16b   : > { %661 = vpow2.f32 %v303_v13 }
 0x178   : > { %v662_v14 = vpop.eup %661 }
 0x179   : > { %v305_v15 = vsel %vm298_vm1, %v662_v14, 0.0 }
 0x17a   : > { %306 = vadd.xlane.f32.xlu0 %v305_v15 }
 0x203   : > { %v307_v22 = vpop.xlane.xlu0 %306 }
 0x204   : > { %663 = vrcp.f32 %v307_v22 }
 0x211   : > { %v664_v24 = vpop.eup %663 }
 0x212   : > { %v309_v25 = vmul.f32 %v664_v24, %v662_v14 }
 0x214   : > { %v310_v27 = vpack.c.bf16 %v309_v25, %v309_v25 }
 0x216   : > { %620 = vmatmul.mubr.msk.bf16.vlgmr.msra.gmra.mxu1 %vm298_vm1, %v310_v27 }
 0x217   : > { %624 = vmatpush3.bf16.xpose.msra.mxu1 %v360_v26  ;;  %625 = vmatprep.mubr.msk.bf16.mxu1 %vm694_vm0, %v693_v0 }
 0x21e   : > { %626 = vmatmul.mubr.bf16.vlgmr.msra.gmra.mxu1 %v359_v29 }
 0x2d6   : > { %v352_v30 = vpop.f32.mrf.mxu1 }
 0x2d7   : > { %464 = vst [vmem:[%s246_s28] sm:$0xff] %v352_v30 }
 0x2d8   : > { %v621_v31 = vpop.f32.mrf.mxu1 }
 0x2da   : > { %v355_v32 = vpop.f32.mrf.mxu1 }
 0x2dc   : > { %v622_v33 = vpop.f32.mrf.mxu1 }
 0x2de   : > { %v396_v34 = vpop.f32.mrf.mxu1 }
 0x2df   : > { %v402_v35 = vmul.f32 0.088388346, %v396_v34 }
 0x2e0   : > { %v627_v36 = vpop.f32.mrf.mxu1 }
 0x2e1   : > { %v403_v37 = vsel %vm298_vm1, %v402_v35, -inf }
 0x2e2   : > { %404 = vmax.xlane.f32.xlu1 %v403_v37  ;;  %v399_v38 = vpop.f32.mrf.mxu1 }
 0x2e4   : > { %v628_v39 = vpop.f32.mrf.mxu1 }
 0x36b   : > { %v405_v40 = vpop.xlane.xlu1 %404 }
 0x36c   : > { %v406_v41 = vsub.f32 %v402_v35, %v405_v40 }
 0x36e   : > { %v407_v42 = vmul.f32 1.442695, %v406_v41 }
 0x370   : > { %665 = vpow2.f32 %v407_v42 }
 0x37d   : > { %v666_v43 = vpop.eup %665 }
 0x37e   : > { %v409_v44 = vsel %vm298_vm1, %v666_v43, 0.0 }
 0x37f   : > { %410 = vadd.xlane.f32.xlu1 %v409_v44 }
 0x408   : > { %v411_v45 = vpop.xlane.xlu1 %410 }
 0x409   : > { %667 = vrcp.f32 %v411_v45 }
 0x416   : > { %v668_v46 = vpop.eup %667 }
 0x417   : > { %v413_v47 = vmul.f32 %v668_v46, %v666_v43 }
 0x419   : > { %v414_v48 = vpack.c.bf16 %v413_v47, %v413_v47 }
 0x41b   : > { %632 = vmatmul.mubr.msk.bf16.vlgmr.msra.gmra.mxu0 %vm298_vm1, %v414_v48 }
 0x4db   : > { %v455_v49 = vpop.f32.mrf.mxu0 }
 0x4dc   : > { %465 = vst [vmem:[%s246_s28 + $0x8] sm:$0xff] %v455_v49 }
 0x4dd   : > { %v633_v50 = vpop.f32.mrf.mxu0 }
 0x4df   : > { %v458_v51 = vpop.f32.mrf.mxu0 }
 0x4e1   : > { %v634_v52 = vpop.f32.mrf.mxu0 }
 0x4e2 PF: > { %s13_s14 = sadd.s32 1, %s691_s14   ;;  %s782_s12 = smov %s687_s13 }
 0x4e3   : > { %p10_p5 = scmp.ge.s32.totalorder %s13_s14, 4   ;;  %s783_s13 = smov %s785_s15 }
 0x4e5   :  { %12 = sbr.rel (!%p10_p5) target bundleno = 2 (0x2), region = 68 }

// kernel: transformer_loss.51
= control target key start
LH: loop header
LB: loop body
LE: loop exit
PB: predicated region body
PF: predicated region fallthrough
CT: control target
= control target key end

     0   :  { %s449_s1 = inlined_call_operand.vmem [shape: f32[256,256], index: 1, kind: input, shape index: {}]   ;;  %s450_s0 = inlined_call_operand.vmem [shape: f32[16,256], index: 0, kind: input, shape index: {}]   ;;  %s451_s2 = inlined_call_operand.vmem [shape: f32[1,256], index: 2, kind: input, shape index: {}]   ;;  %s452_s3 = inlined_call_operand.vmem [shape: f32[16,256], index: 3, kind: output, shape index: {}]  }
   0x1   :  { %v61_v0 = vld [vmem:[%s449_s1 + $0xe8] sm:$0xff]  ;;  %v63_v1 = vld [vmem:[%s449_s1 + $0xf8] sm:$0xff]  ;;  %v60_v2 = vld [vmem:[%s449_s1 + $0xe0] sm:$0xff] }
   0x2   :  { %v111_v3 = vpack.c.bf16 %v63_v1, %v61_v0  ;;  %v62_v4 = vld [vmem:[%s449_s1 + $0xf0] sm:$0xff]  ;;  %v57_v5 = vld [vmem:[%s449_s1 + $0xc8] sm:$0xff]  ;;  %v59_v6 = vld [vmem:[%s449_s1 + $0xd8] sm:$0xff] }
   0x3   :  { %v110_v7 = vpack.c.bf16 %v62_v4, %v60_v2  ;;  %v109_v8 = vpack.c.bf16 %v59_v6, %v57_v5  ;;  %v56_v9 = vld [vmem:[%s449_s1 + $0xc0] sm:$0xff]  ;;  %v58_v10 = vld [vmem:[%s449_s1 + $0xd0] sm:$0xff]  ;;  %v53_v11 = vld [vmem:[%s449_s1 + $0xa8] sm:$0xff] }
   0x4   :  { %128 = vmatprep.subr.bf16.mxu0 %v111_v3  ;;  %v55_v12 = vld [vmem:[%s449_s1 + $0xb8] sm:$0xff]  ;;  %v108_v13 = vpack.c.bf16 %v58_v10, %v56_v9  ;;  %v52_v15 = vld [vmem:[%s449_s1 + $0xa0] sm:$0xff]  ;;  %v54_v16 = vld [vmem:[%s449_s1 + $0xb0] sm:$0xff] }
   0x5   :  { %129 = vmatpush1.bf16.msra.mxu0 %v110_v7  ;;  %v107_v14 = vpack.c.bf16 %v55_v12, %v53_v11  ;;  %v49_v17 = vld [vmem:[%s449_s1 + $0x88] sm:$0xff]  ;;  %v51_v18 = vld [vmem:[%s449_s1 + $0x98] sm:$0xff]  ;;  %v106_v19 = vpack.c.bf16 %v54_v16, %v52_v15  ;;  %v48_v21 = vld [vmem:[%s449_s1 + $0x80] sm:$0xff] }
   0x6   :  { %130 = vmatprep.subr.bf16.mxu0 %v109_v8  ;;  %v105_v20 = vpack.c.bf16 %v51_v18, %v49_v17  ;;  %v50_v22 = vld [vmem:[%s449_s1 + $0x90] sm:$0xff]  ;;  %v45_v23 = vld [vmem:[%s449_s1 + $0x68] sm:$0xff]  ;;  %v47_v24 = vld [vmem:[%s449_s1 + $0x78] sm:$0xff] }
   0x7   :  { %v104_v25 = vpack.c.bf16 %v50_v22, %v48_v21  ;;  %v103_v26 = vpack.c.bf16 %v47_v24, %v45_v23  ;;  %v44_v27 = vld [vmem:[%s449_s1 + $0x60] sm:$0xff]  ;;  %v46_v28 = vld [vmem:[%s449_s1 + $0x70] sm:$0xff]  ;;  %v41_v29 = vld [vmem:[%s449_s1 + $0x48] sm:$0xff] }
   0x8   :  { %v43_v30 = vld [vmem:[%s449_s1 + $0x58] sm:$0xff]  ;;  %v102_v31 = vpack.c.bf16 %v46_v28, %v44_v27  ;;  %v40_v33 = vld [vmem:[%s449_s1 + $0x40] sm:$0xff]  ;;  %v42_v34 = vld [vmem:[%s449_s1 + $0x50] sm:$0xff] }
   0x9   :  { %131 = vmatpush1.bf16.msra.mxu0 %v108_v13  ;;  %v101_v32 = vpack.c.bf16 %v43_v30, %v41_v29  ;;  %v37_v35 = vld [vmem:[%s449_s1 + $0x28] sm:$0xff]  ;;  %v39_v36 = vld [vmem:[%s449_s1 + $0x38] sm:$0xff]  ;;  %v100_v37 = vpack.c.bf16 %v42_v34, %v40_v33  ;;  %v36_v38 = vld [vmem:[%s449_s1 + $0x20] sm:$0xff] }
   0xa   :  { %132 = vmatprep.subr.bf16.mxu0 %v107_v14  ;;  %v99_v39 = vpack.c.bf16 %v39_v36, %v37_v35  ;;  %v38_v40 = vld [vmem:[%s449_s1 + $0x30] sm:$0xff]  ;;  %v27_v41 = vld [vmem:[%s450_s0 + $0x8] sm:$0xff]  ;;  %v29_v42 = vld [vmem:[%s450_s0 + $0x18] sm:$0xff] }
   0xb   :  { %v33_v43 = vld [vmem:[%s449_s1 + $0x8] sm:$0xff]  ;;  %v35_v44 = vld [vmem:[%s449_s1 + $0x18] sm:$0xff]  ;;  %v31_v45 = vpack.c.bf16 %v29_v42, %v27_v41  ;;  %v98_v46 = vpack.c.bf16 %v38_v40, %v36_v38  ;;  %v32_v48 = vld [vmem:[%s449_s1] sm:$0xff]  ;;  %v188_v38 = vlaneseq }
   0xc   :  { %v97_v47 = vpack.c.bf16 %v35_v44, %v33_v43  ;;  %v34_v49 = vld [vmem:[%s449_s1 + $0x10] sm:$0xff]  ;;  %v93_v50 = vld [vmem:[%s449_s1 + $0x1e8] sm:$0xff]  ;;  %v95_v51 = vld [vmem:[%s449_s1 + $0x1f8] sm:$0xff] }
   0xd   :  { %133 = vmatpush1.bf16.msra.mxu0 %v106_v19  ;;  %160 = vmatprep.mubr.bf16.mxu0 %v31_v45  ;;  %v96_v52 = vpack.c.bf16 %v34_v49, %v32_v48  ;;  %v127_v53 = vpack.c.bf16 %v95_v51, %v93_v50  ;;  %v92_v54 = vld [vmem:[%s449_s1 + $0x1e0] sm:$0xff]  ;;  %v94_v55 = vld [vmem:[%s449_s1 + $0x1f0] sm:$0xff]  ;;  %v89_v56 = vld [vmem:[%s449_s1 + $0x1c8] sm:$0xff] }
   0xe   :  { %134 = vmatprep.subr.bf16.mxu0 %v105_v20  ;;  %v91_v57 = vld [vmem:[%s449_s1 + $0x1d8] sm:$0xff]  ;;  %v126_v58 = vpack.c.bf16 %v94_v55, %v92_v54  ;;  %v88_v60 = vld [vmem:[%s449_s1 + $0x1c0] sm:$0xff]  ;;  %v90_v61 = vld [vmem:[%s449_s1 + $0x1d0] sm:$0xff] }
   0xf   :  { %v125_v59 = vpack.c.bf16 %v91_v57, %v89_v56  ;;  %v85_v62 = vld [vmem:[%s449_s1 + $0x1a8] sm:$0xff]  ;;  %v87_v63 = vld [vmem:[%s449_s1 + $0x1b8] sm:$0xff]  ;;  %v124_v0 = vpack.c.bf16 %v90_v61, %v88_v60  ;;  %v84_v2 = vld [vmem:[%s449_s1 + $0x1a0] sm:$0xff] }
  0x10   :  { %v123_v1 = vpack.c.bf16 %v87_v63, %v85_v62  ;;  %v86_v3 = vld [vmem:[%s449_s1 + $0x1b0] sm:$0xff]  ;;  %v81_v4 = vld [vmem:[%s449_s1 + $0x188] sm:$0xff]  ;;  %v83_v5 = vld [vmem:[%s449_s1 + $0x198] sm:$0xff] }
  0x11   :  { %135 = vmatpush1.bf16.msra.mxu0 %v104_v25  ;;  %v122_v6 = vpack.c.bf16 %v86_v3, %v84_v2  ;;  %v121_v7 = vpack.c.bf16 %v83_v5, %v81_v4  ;;  %v80_v8 = vld [vmem:[%s449_s1 + $0x180] sm:$0xff]  ;;  %v82_v9 = vld [vmem:[%s449_s1 + $0x190] sm:$0xff]  ;;  %v77_v10 = vld [vmem:[%s449_s1 + $0x168] sm:$0xff] }
  0x12   :  { %136 = vmatprep.subr.bf16.mxu0 %v103_v26  ;;  %v79_v11 = vld [vmem:[%s449_s1 + $0x178] sm:$0xff]  ;;  %v120_v12 = vpack.c.bf16 %v82_v9, %v80_v8  ;;  %v76_v14 = vld [vmem:[%s449_s1 + $0x160] sm:$0xff]  ;;  %v78_v15 = vld [vmem:[%s449_s1 + $0x170] sm:$0xff] }
  0x13   :  { %v119_v13 = vpack.c.bf16 %v79_v11, %v77_v10  ;;  %v73_v16 = vld [vmem:[%s449_s1 + $0x148] sm:$0xff]  ;;  %v75_v17 = vld [vmem:[%s449_s1 + $0x158] sm:$0xff]  ;;  %v118_v18 = vpack.c.bf16 %v78_v15, %v76_v14  ;;  %v72_v20 = vld [vmem:[%s449_s1 + $0x140] sm:$0xff] }
  0x14   :  { %v117_v19 = vpack.c.bf16 %v75_v17, %v73_v16  ;;  %v74_v21 = vld [vmem:[%s449_s1 + $0x150] sm:$0xff]  ;;  %v69_v22 = vld [vmem:[%s449_s1 + $0x128] sm:$0xff]  ;;  %v71_v23 = vld [vmem:[%s449_s1 + $0x138] sm:$0xff] }
  0x15   :  { %137 = vmatpush1.bf16.msra.mxu0 %v102_v31  ;;  %v116_v24 = vpack.c.bf16 %v74_v21, %v72_v20  ;;  %v115_v25 = vpack.c.bf16 %v71_v23, %v69_v22  ;;  %v68_v26 = vld [vmem:[%s449_s1 + $0x120] sm:$0xff]  ;;  %v70_v27 = vld [vmem:[%s449_s1 + $0x130] sm:$0xff]  ;;  %v65_v28 = vld [vmem:[%s449_s1 + $0x108] sm:$0xff] }
  0x16   :  { %138 = vmatprep.subr.bf16.mxu0 %v101_v32  ;;  %v67_v29 = vld [vmem:[%s449_s1 + $0x118] sm:$0xff]  ;;  %v114_v30 = vpack.c.bf16 %v70_v27, %v68_v26  ;;  %v64_v32 = vld [vmem:[%s449_s1 + $0x100] sm:$0xff]  ;;  %v66_v33 = vld [vmem:[%s449_s1 + $0x110] sm:$0xff] }
  0x17   :  { %v113_v31 = vpack.c.bf16 %v67_v29, %v65_v28  ;;  %v112_v34 = vpack.c.bf16 %v66_v33, %v64_v32  ;;  %v26_v35 = vld [vmem:[%s450_s0] sm:$0xff]  ;;  %v28_v36 = vld [vmem:[%s450_s0 + $0x10] sm:$0xff] }
  0x18   :  { %v186_v41 = vld [vmem:[%s451_s2] sm:$0x3] }
  0x19   :  { %139 = vmatpush1.bf16.msra.mxu0 %v100_v37  ;;  %v30_v37 = vpack.c.bf16 %v28_v36, %v26_v35 }
  0x1a   :  { %140 = vmatprep.subr.bf16.mxu0 %v99_v39  ;;  %v189_v39 = vshrl.u32 %v188_v38, 7 }
  0x1c   :  { %v190_v40 = vsub.s32 0, %v189_v39  ;;  %v194_v42 = vsub.s32 1, %v189_v39 }
  0x1d   :  { %141 = vmatpush1.bf16.msra.mxu0 %v98_v46 }
  0x1e   :  { %142 = vmatprep.subr.bf16.mxu0 %v97_v47  ;;  %v191_v43 = vrot.slane %v186_v41, %v190_v40  ;;  %v195_v44 = vrot.slane %v186_v41, %v194_v42 }
  0x21   :  { %143 = vmatpush1.bf16.msra.mxu0 %v96_v52 }
  0x22   :  { %144 = vmatprep.subr.bf16.mxu0 %v127_v53 }
  0x25   :  { %145 = vmatpush2.bf16.msra.mxu0 %v126_v58 }
  0x26   :  { %146 = vmatprep.subr.bf16.mxu0 %v125_v59 }
  0x29   :  { %147 = vmatpush2.bf16.msra.mxu0 %v124_v0 }
  0x2a   :  { %148 = vmatprep.subr.bf16.mxu0 %v123_v1 }
  0x2d   :  { %149 = vmatpush2.bf16.msra.mxu0 %v122_v6 }
  0x2e   :  { %150 = vmatprep.subr.bf16.mxu0 %v121_v7 }
  0x31   :  { %151 = vmatpush2.bf16.msra.mxu0 %v120_v12 }
  0x32   :  { %152 = vmatprep.subr.bf16.mxu0 %v119_v13 }
  0x35   :  { %153 = vmatpush2.bf16.msra.mxu0 %v118_v18 }
  0x36   :  { %154 = vmatprep.subr.bf16.mxu0 %v117_v19 }
  0x39   :  { %155 = vmatpush2.bf16.msra.mxu0 %v116_v24 }
  0x3a   :  { %156 = vmatprep.subr.bf16.mxu0 %v115_v25 }
  0x3d   :  { %157 = vmatpush2.bf16.msra.mxu0 %v114_v30 }
  0x3e   :  { %158 = vmatprep.subr.bf16.mxu0 %v113_v31 }
  0x41   :  { %159 = vmatpush2.bf16.msra.mxu0 %v112_v34 }
  0x44   :  { %161 = vmatmul.mubr.bf16.vlgmr.msra.gmra.mxu0 %v30_v37 }
 0x104   :  { %v162_v45 = vpop.f32.mrf.mxu0 }
 0x105   :  { %v198_v46 = vadd.f32 %v191_v43, %v162_v45 }
 0x106   :  { %v164_v47 = vpop.f32.mrf.mxu0 }
 0x107   :  { %202 = vst [vmem:[%s452_s3] sm:$0xff] %v198_v46  ;;  %v199_v48 = vadd.f32 %v195_v44, %v164_v47 }
 0x108   :  { %v166_v49 = vpop.f32.mrf.mxu0 }
 0x109   :  { %203 = vst [vmem:[%s452_s3 + $0x8] sm:$0xff] %v199_v48  ;;  %v200_v50 = vadd.f32 %v191_v43, %v166_v49 }
 0x10a   :  { %v168_v51 = vpop.f32.mrf.mxu0 }
 0x10b   :  { %204 = vst [vmem:[%s452_s3 + $0x10] sm:$0xff] %v200_v50  ;;  %v201_v52 = vadd.f32 %v195_v44, %v168_v51 }
 0x10d   :  { %205 = vst [vmem:[%s452_s3 + $0x18] sm:$0xff] %v201_v52 }

// kernel: transformer_loss.58
= control target key start
LH: loop header
LB: loop body
LE: loop exit
PB: predicated region body
PF: predicated region fallthrough
CT: control target
= control target key end

     0   :  { %s798_s1 = inlined_call_operand.vmem [shape: f32[512,256], index: 1, kind: input, shape index: {}]   ;;  %s799_s0 = inlined_call_operand.vmem [shape: f32[16,512], index: 0, kind: input, shape index: {}]   ;;  %s800_s2 = inlined_call_operand.vmem [shape: f32[1,256], index: 2, kind: input, shape index: {}]   ;;  %s801_s3 = inlined_call_operand.vmem [shape: f32[16,256], index: 3, kind: output, shape index: {}]  }
   0x1   :  { %v67_v0 = vld [vmem:[%s798_s1 + $0xe8] sm:$0xff]  ;;  %v69_v1 = vld [vmem:[%s798_s1 + $0xf8] sm:$0xff]  ;;  %v66_v5 = vld [vmem:[%s798_s1 + $0xe0] sm:$0xff] }
   0x2   :  { %v131_v2 = vld [vmem:[%s798_s1 + $0x2e8] sm:$0xff]  ;;  %v181_v3 = vpack.c.bf16 %v69_v1, %v67_v0  ;;  %v133_v4 = vld [vmem:[%s798_s1 + $0x2f8] sm:$0xff]  ;;  %v68_v6 = vld [vmem:[%s798_s1 + $0xf0] sm:$0xff] }
   0x3   :  { %v213_v7 = vpack.c.bf16 %v133_v4, %v131_v2  ;;  %v180_v8 = vpack.c.bf16 %v68_v6, %v66_v5  ;;  %v130_v9 = vld [vmem:[%s798_s1 + $0x2e0] sm:$0xff]  ;;  %v132_v10 = vld [vmem:[%s798_s1 + $0x2f0] sm:$0xff]  ;;  %v63_v11 = vld [vmem:[%s798_s1 + $0xc8] sm:$0xff] }
   0x4   :  { %230 = vmatprep.subr.bf16.mxu0 %v181_v3  ;;  %v212_v12 = vpack.c.bf16 %v132_v10, %v130_v9  ;;  %v65_v13 = vld [vmem:[%s798_s1 + $0xd8] sm:$0xff]  ;;  %v127_v14 = vld [vmem:[%s798_s1 + $0x2c8] sm:$0xff]  ;;  %v62_v18 = vld [vmem:[%s798_s1 + $0xc0] sm:$0xff] }
   0x5   :  { %v129_v15 = vld [vmem:[%s798_s1 + $0x2d8] sm:$0xff]  ;;  %273 = vmatprep.subr.bf16.mxu1 %v213_v7  ;;  %231 = vmatpush1.bf16.msra.mxu0 %v180_v8  ;;  %v179_v16 = vpack.c.bf16 %v65_v13, %v63_v11  ;;  %v64_v19 = vld [vmem:[%s798_s1 + $0xd0] sm:$0xff]  ;;  %v126_v20 = vld [vmem:[%s798_s1 + $0x2c0] sm:$0xff] }
   0x6   :  { %v211_v17 = vpack.c.bf16 %v129_v15, %v127_v14  ;;  %274 = vmatpush1.bf16.msra.mxu1 %v212_v12  ;;  %v178_v21 = vpack.c.bf16 %v64_v19, %v62_v18  ;;  %v128_v22 = vld [vmem:[%s798_s1 + $0x2d0] sm:$0xff]  ;;  %v59_v23 = vld [vmem:[%s798_s1 + $0xa8] sm:$0xff]  ;;  %v61_v24 = vld [vmem:[%s798_s1 + $0xb8] sm:$0xff] }
   0x7   :  { %232 = vmatprep.subr.bf16.mxu0 %v179_v16  ;;  %v210_v25 = vpack.c.bf16 %v128_v22, %v126_v20  ;;  %v177_v26 = vpack.c.bf16 %v61_v24, %v59_v23  ;;  %v123_v27 = vld [vmem:[%s798_s1 + $0x2a8] sm:$0xff]  ;;  %v125_v28 = vld [vmem:[%s798_s1 + $0x2b8] sm:$0xff]  ;;  %v58_v29 = vld [vmem:[%s798_s1 + $0xa0] sm:$0xff] }
   0x8   :  { %275 = vmatprep.subr.bf16.mxu1 %v211_v17  ;;  %v209_v30 = vpack.c.bf16 %v125_v28, %v123_v27  ;;  %v60_v31 = vld [vmem:[%s798_s1 + $0xb0] sm:$0xff]  ;;  %v122_v32 = vld [vmem:[%s798_s1 + $0x2a0] sm:$0xff]  ;;  %v55_v35 = vld [vmem:[%s798_s1 + $0x88] sm:$0xff] }
   0x9   :  { %v124_v33 = vld [vmem:[%s798_s1 + $0x2b0] sm:$0xff]  ;;  %233 = vmatpush1.bf16.msra.mxu0 %v178_v21  ;;  %v176_v34 = vpack.c.bf16 %v60_v31, %v58_v29  ;;  %v57_v36 = vld [vmem:[%s798_s1 + $0x98] sm:$0xff]  ;;  %v119_v37 = vld [vmem:[%s798_s1 + $0x288] sm:$0xff] }
   0xa   :  { %276 = vmatpush1.bf16.msra.mxu1 %v210_v25  ;;  %234 = vmatprep.subr.bf16.mxu0 %v177_v26  ;;  %v208_v38 = vpack.c.bf16 %v124_v33, %v122_v32  ;;  %v175_v39 = vpack.c.bf16 %v57_v36, %v55_v35  ;;  %v121_v40 = vld [vmem:[%s798_s1 + $0x298] sm:$0xff]  ;;  %v54_v41 = vld [vmem:[%s798_s1 + $0x80] sm:$0xff]  ;;  %v56_v42 = vld [vmem:[%s798_s1 + $0x90] sm:$0xff] }
   0xb   :  { %277 = vmatprep.subr.bf16.mxu1 %v209_v30  ;;  %v207_v43 = vpack.c.bf16 %v121_v40, %v119_v37  ;;  %v118_v44 = vld [vmem:[%s798_s1 + $0x280] sm:$0xff]  ;;  %v120_v45 = vld [vmem:[%s798_s1 + $0x290] sm:$0xff]  ;;  %v51_v46 = vld [vmem:[%s798_s1 + $0x68] sm:$0xff]  ;;  %v174_v50 = vpack.c.bf16 %v56_v42, %v54_v41 }
   0xc   :  { %v53_v47 = vld [vmem:[%s798_s1 + $0x78] sm:$0xff]  ;;  %v115_v48 = vld [vmem:[%s798_s1 + $0x268] sm:$0xff]  ;;  %v206_v51 = vpack.c.bf16 %v120_v45, %v118_v44  ;;  %v50_v53 = vld [vmem:[%s798_s1 + $0x60] sm:$0xff] }
   0xd   :  { %v117_v49 = vld [vmem:[%s798_s1 + $0x278] sm:$0xff]  ;;  %235 = vmatpush1.bf16.msra.mxu0 %v176_v34  ;;  %v173_v52 = vpack.c.bf16 %v53_v47, %v51_v46  ;;  %v52_v54 = vld [vmem:[%s798_s1 + $0x70] sm:$0xff]  ;;  %v114_v55 = vld [vmem:[%s798_s1 + $0x260] sm:$0xff] }
   0xe   :  { %278 = vmatpush1.bf16.msra.mxu1 %v208_v38  ;;  %236 = vmatprep.subr.bf16.mxu0 %v175_v39  ;;  %v205_v56 = vpack.c.bf16 %v117_v49, %v115_v48  ;;  %v116_v57 = vld [vmem:[%s798_s1 + $0x270] sm:$0xff]  ;;  %v47_v58 = vld [vmem:[%s798_s1 + $0x48] sm:$0xff]  ;;  %v49_v59 = vld [vmem:[%s798_s1 + $0x58] sm:$0xff]  ;;  %v172_v62 = vpack.c.bf16 %v52_v54, %v50_v53 }
   0xf   :  { %279 = vmatprep.subr.bf16.mxu1 %v207_v43  ;;  %v111_v60 = vld [vmem:[%s798_s1 + $0x248] sm:$0xff]  ;;  %v113_v61 = vld [vmem:[%s798_s1 + $0x258] sm:$0xff]  ;;  %v204_v63 = vpack.c.bf16 %v116_v57, %v114_v55  ;;  %v171_v0 = vpack.c.bf16 %v49_v59, %v47_v58  ;;  %v46_v1 = vld [vmem:[%s798_s1 + $0x40] sm:$0xff] }
  0x10   :  { %v48_v2 = vld [vmem:[%s798_s1 + $0x50] sm:$0xff]  ;;  %v110_v3 = vld [vmem:[%s798_s1 + $0x240] sm:$0xff]  ;;  %v203_v4 = vpack.c.bf16 %v113_v61, %v111_v60  ;;  %v43_v6 = vld [vmem:[%s798_s1 + $0x28] sm:$0xff] }
  0x11   :  { %237 = vmatpush1.bf16.msra.mxu0 %v174_v50  ;;  %v112_v5 = vld [vmem:[%s798_s1 + $0x250] sm:$0xff]  ;;  %v45_v7 = vld [vmem:[%s798_s1 + $0x38] sm:$0xff]  ;;  %v107_v8 = vld [vmem:[%s798_s1 + $0x228] sm:$0xff]  ;;  %v170_v10 = vpack.c.bf16 %v48_v2, %v46_v1 }
  0x12   :  { %280 = vmatpush1.bf16.msra.mxu1 %v206_v51  ;;  %238 = vmatprep.subr.bf16.mxu0 %v173_v52  ;;  %v109_v9 = vld [vmem:[%s798_s1 + $0x238] sm:$0xff]  ;;  %v202_v11 = vpack.c.bf16 %v112_v5, %v110_v3  ;;  %v169_v12 = vpack.c.bf16 %v45_v7, %v43_v6  ;;  %v42_v13 = vld [vmem:[%s798_s1 + $0x20] sm:$0xff]  ;;  %v44_v14 = vld [vmem:[%s798_s1 + $0x30] sm:$0xff] }
  0x13   :  { %281 = vmatprep.subr.bf16.mxu1 %v205_v56  ;;  %v106_v15 = vld [vmem:[%s798_s1 + $0x220] sm:$0xff]  ;;  %v201_v16 = vpack.c.bf16 %v109_v9, %v107_v8  ;;  %v108_v17 = vld [vmem:[%s798_s1 + $0x230] sm:$0xff]  ;;  %v39_v18 = vld [vmem:[%s798_s1 + $0x8] sm:$0xff]  ;;  %v168_v22 = vpack.c.bf16 %v44_v14, %v42_v13 }
  0x14   :  { %v41_v19 = vld [vmem:[%s798_s1 + $0x18] sm:$0xff]  ;;  %v103_v20 = vld [vmem:[%s798_s1 + $0x208] sm:$0xff]  ;;  %v200_v23 = vpack.c.bf16 %v108_v17, %v106_v15  ;;  %v38_v25 = vld [vmem:[%s798_s1] sm:$0xff] }
  0x15   :  { %239 = vmatpush1.bf16.msra.mxu0 %v172_v62  ;;  %v105_v21 = vld [vmem:[%s798_s1 + $0x218] sm:$0xff]  ;;  %v167_v24 = vpack.c.bf16 %v41_v19, %v39_v18  ;;  %v40_v26 = vld [vmem:[%s798_s1 + $0x10] sm:$0xff]  ;;  %v102_v27 = vld [vmem:[%s798_s1 + $0x200] sm:$0xff] }
  0x16   :  { %282 = vmatpush1.bf16.msra.mxu1 %v204_v63  ;;  %240 = vmatprep.subr.bf16.mxu0 %v171_v0  ;;  %v199_v28 = vpack.c.bf16 %v105_v21, %v103_v20  ;;  %v104_v29 = vld [vmem:[%s798_s1 + $0x210] sm:$0xff]  ;;  %v99_v30 = vld [vmem:[%s798_s1 + $0x1e8] sm:$0xff]  ;;  %v101_v31 = vld [vmem:[%s798_s1 + $0x1f8] sm:$0xff]  ;;  %v166_v34 = vpack.c.bf16 %v40_v26, %v38_v25 }
  0x17   :  { %283 = vmatprep.subr.bf16.mxu1 %v203_v4  ;;  %v163_v32 = vld [vmem:[%s798_s1 + $0x3e8] sm:$0xff]  ;;  %v165_v33 = vld [vmem:[%s798_s1 + $0x3f8] sm:$0xff]  ;;  %v198_v35 = vpack.c.bf16 %v104_v29, %v102_v27  ;;  %v197_v36 = vpack.c.bf16 %v101_v31, %v99_v30  ;;  %v98_v37 = vld [vmem:[%s798_s1 + $0x1e0] sm:$0xff] }
  0x18   :  { %v100_v38 = vld [vmem:[%s798_s1 + $0x1f0] sm:$0xff]  ;;  %v162_v39 = vld [vmem:[%s798_s1 + $0x3e0] sm:$0xff]  ;;  %v229_v40 = vpack.c.bf16 %v165_v33, %v163_v32  ;;  %v95_v42 = vld [vmem:[%s798_s1 + $0x1c8] sm:$0xff] }
  0x19   :  { %241 = vmatpush1.bf16.msra.mxu0 %v170_v10  ;;  %v164_v41 = vld [vmem:[%s798_s1 + $0x3f0] sm:$0xff]  ;;  %v97_v43 = vld [vmem:[%s798_s1 + $0x1d8] sm:$0xff]  ;;  %v159_v44 = vld [vmem:[%s798_s1 + $0x3c8] sm:$0xff]  ;;  %v196_v46 = vpack.c.bf16 %v100_v38, %v98_v37 }
  0x1a   :  { %284 = vmatpush1.bf16.msra.mxu1 %v202_v11  ;;  %242 = vmatprep.subr.bf16.mxu0 %v169_v12  ;;  %v161_v45 = vld [vmem:[%s798_s1 + $0x3d8] sm:$0xff]  ;;  %v228_v47 = vpack.c.bf16 %v164_v41, %v162_v39  ;;  %v195_v48 = vpack.c.bf16 %v97_v43, %v95_v42  ;;  %v94_v49 = vld [vmem:[%s798_s1 + $0x1c0] sm:$0xff]  ;;  %v96_v50 = vld [vmem:[%s798_s1 + $0x1d0] sm:$0xff] }
  0x1b   :  { %285 = vmatprep.subr.bf16.mxu1 %v201_v16  ;;  %v158_v51 = vld [vmem:[%s798_s1 + $0x3c0] sm:$0xff]  ;;  %v227_v52 = vpack.c.bf16 %v161_v45, %v159_v44  ;;  %v160_v53 = vld [vmem:[%s798_s1 + $0x3d0] sm:$0xff]  ;;  %v91_v54 = vld [vmem:[%s798_s1 + $0x1a8] sm:$0xff]  ;;  %v194_v58 = vpack.c.bf16 %v96_v50, %v94_v49 }
  0x1c   :  { %v93_v55 = vld [vmem:[%s798_s1 + $0x1b8] sm:$0xff]  ;;  %v155_v56 = vld [vmem:[%s798_s1 + $0x3a8] sm:$0xff]  ;;  %v226_v59 = vpack.c.bf16 %v160_v53, %v158_v51  ;;  %v90_v61 = vld [vmem:[%s798_s1 + $0x1a0] sm:$0xff] }
  0x1d   :  { %243 = vmatpush1.bf16.msra.mxu0 %v168_v22  ;;  %v157_v57 = vld [vmem:[%s798_s1 + $0x3b8] sm:$0xff]  ;;  %v193_v60 = vpack.c.bf16 %v93_v55, %v91_v54  ;;  %v92_v62 = vld [vmem:[%s798_s1 + $0x1b0] sm:$0xff]  ;;  %v154_v63 = vld [vmem:[%s798_s1 + $0x3a0] sm:$0xff] }
  0x1e   :  { %286 = vmatpush1.bf16.msra.mxu1 %v200_v23  ;;  %244 = vmatprep.subr.bf16.mxu0 %v167_v24  ;;  %v225_v0 = vpack.c.bf16 %v157_v57, %v155_v56  ;;  %v156_v1 = vld [vmem:[%s798_s1 + $0x3b0] sm:$0xff]  ;;  %v87_v2 = vld [vmem:[%s798_s1 + $0x188] sm:$0xff]  ;;  %v89_v3 = vld [vmem:[%s798_s1 + $0x198] sm:$0xff]  ;;  %v192_v6 = vpack.c.bf16 %v92_v62, %v90_v61 }
  0x1f   :  { %287 = vmatprep.subr.bf16.mxu1 %v199_v28  ;;  %v151_v4 = vld [vmem:[%s798_s1 + $0x388] sm:$0xff]  ;;  %v153_v5 = vld [vmem:[%s798_s1 + $0x398] sm:$0xff]  ;;  %v86_v7 = vld [vmem:[%s798_s1 + $0x180] sm:$0xff]  ;;  %v224_v10 = vpack.c.bf16 %v156_v1, %v154_v63  ;;  %v191_v11 = vpack.c.bf16 %v89_v3, %v87_v2 }
  0x20   :  { %v88_v8 = vld [vmem:[%s798_s1 + $0x190] sm:$0xff]  ;;  %v150_v9 = vld [vmem:[%s798_s1 + $0x380] sm:$0xff]  ;;  %v83_v13 = vld [vmem:[%s798_s1 + $0x168] sm:$0xff]  ;;  %v223_v15 = vpack.c.bf16 %v153_v5, %v151_v4 }
  0x21   :  { %245 = vmatpush1.bf16.msra.mxu0 %v166_v34  ;;  %v152_v12 = vld [vmem:[%s798_s1 + $0x390] sm:$0xff]  ;;  %v85_v14 = vld [vmem:[%s798_s1 + $0x178] sm:$0xff]  ;;  %v147_v16 = vld [vmem:[%s798_s1 + $0x368] sm:$0xff]  ;;  %v190_v22 = vpack.c.bf16 %v88_v8, %v86_v7 }
  0x22   :  { %288 = vmatpush1.bf16.msra.mxu1 %v198_v35  ;;  %246 = vmatprep.subr.bf16.mxu0 %v197_v36  ;;  %v149_v17 = vld [vmem:[%s798_s1 + $0x378] sm:$0xff]  ;;  %v27_v18 = vld [vmem:[%s799_s0 + $0x8] sm:$0xff]  ;;  %v222_v25 = vpack.c.bf16 %v152_v12, %v150_v9  ;;  %v189_v26 = vpack.c.bf16 %v85_v14, %v83_v13  ;;  %v82_v27 = vld [vmem:[%s798_s1 + $0x160] sm:$0xff]  ;;  %v333_v12 = vlaneseq }
  0x23   :  { %289 = vmatprep.subr.bf16.mxu1 %v229_v40  ;;  %v31_v19 = vld [vmem:[%s799_s0 + $0x28] sm:$0xff]  ;;  %v29_v20 = vld [vmem:[%s799_s0 + $0x18] sm:$0xff]  ;;  %v84_v28 = vld [vmem:[%s798_s1 + $0x170] sm:$0xff]  ;;  %v221_v30 = vpack.c.bf16 %v149_v17, %v147_v16 }
  0x24   :  { %v33_v21 = vld [vmem:[%s799_s0 + $0x38] sm:$0xff]  ;;  %v35_v23 = vpack.c.bf16 %v31_v19, %v27_v18  ;;  %v146_v29 = vld [vmem:[%s798_s1 + $0x360] sm:$0xff]  ;;  %v148_v31 = vld [vmem:[%s798_s1 + $0x370] sm:$0xff]  ;;  %v188_v36 = vpack.c.bf16 %v84_v28, %v82_v27  ;;  %v334_v13 = vshrl.u32 %v333_v12, 7 }
  0x25   :  { %247 = vmatpush2.bf16.msra.mxu0 %v196_v46  ;;  %v37_v24 = vpack.c.bf16 %v33_v21, %v29_v20  ;;  %v79_v32 = vld [vmem:[%s798_s1 + $0x148] sm:$0xff]  ;;  %v81_v33 = vld [vmem:[%s798_s1 + $0x158] sm:$0xff]  ;;  %v220_v37 = vpack.c.bf16 %v148_v31, %v146_v29  ;;  %v78_v39 = vld [vmem:[%s798_s1 + $0x140] sm:$0xff] }
  0x26   :  { %290 = vmatpush2.bf16.msra.mxu1 %v228_v47  ;;  %248 = vmatprep.subr.bf16.mxu0 %v195_v48  ;;  %v143_v34 = vld [vmem:[%s798_s1 + $0x348] sm:$0xff]  ;;  %v145_v35 = vld [vmem:[%s798_s1 + $0x358] sm:$0xff]  ;;  %v187_v38 = vpack.c.bf16 %v81_v33, %v79_v32  ;;  %v80_v40 = vld [vmem:[%s798_s1 + $0x150] sm:$0xff]  ;;  %v335_v14 = vsub.s32 0, %v334_v13  ;;  %v339_v16 = vsub.s32 1, %v334_v13 }
  0x27   :  { %291 = vmatprep.subr.bf16.mxu1 %v227_v52  ;;  %262 = vmatprep.mubr.bf16.mxu0 %v35_v23  ;;  %v142_v41 = vld [vmem:[%s798_s1 + $0x340] sm:$0xff]  ;;  %v219_v42 = vpack.c.bf16 %v145_v35, %v143_v34  ;;  %v144_v43 = vld [vmem:[%s798_s1 + $0x350] sm:$0xff]  ;;  %v75_v44 = vld [vmem:[%s798_s1 + $0x128] sm:$0xff]  ;;  %v186_v48 = vpack.c.bf16 %v80_v40, %v78_v39 }
  0x28   :  { %305 = vmatprep.mubr.bf16.mxu1 %v37_v24  ;;  %v77_v45 = vld [vmem:[%s798_s1 + $0x138] sm:$0xff]  ;;  %v139_v46 = vld [vmem:[%s798_s1 + $0x328] sm:$0xff]  ;;  %v218_v49 = vpack.c.bf16 %v144_v43, %v142_v41  ;;  %v74_v51 = vld [vmem:[%s798_s1 + $0x120] sm:$0xff] }
  0x29   :  { %249 = vmatpush2.bf16.msra.mxu0 %v194_v58  ;;  %v141_v47 = vld [vmem:[%s798_s1 + $0x338] sm:$0xff]  ;;  %v185_v50 = vpack.c.bf16 %v77_v45, %v75_v44  ;;  %v76_v52 = vld [vmem:[%s798_s1 + $0x130] sm:$0xff]  ;;  %v138_v53 = vld [vmem:[%s798_s1 + $0x320] sm:$0xff] }
  0x2a   :  { %292 = vmatpush2.bf16.msra.mxu1 %v226_v59  ;;  %250 = vmatprep.subr.bf16.mxu0 %v193_v60  ;;  %v217_v54 = vpack.c.bf16 %v141_v47, %v139_v46  ;;  %v140_v55 = vld [vmem:[%s798_s1 + $0x330] sm:$0xff]  ;;  %v71_v56 = vld [vmem:[%s798_s1 + $0x108] sm:$0xff]  ;;  %v73_v57 = vld [vmem:[%s798_s1 + $0x118] sm:$0xff]  ;;  %v184_v60 = vpack.c.bf16 %v76_v52, %v74_v51 }
  0x2b   :  { %293 = vmatprep.subr.bf16.mxu1 %v225_v0  ;;  %v135_v58 = vld [vmem:[%s798_s1 + $0x308] sm:$0xff]  ;;  %v137_v59 = vld [vmem:[%s798_s1 + $0x318] sm:$0xff]  ;;  %v216_v61 = vpack.c.bf16 %v140_v55, %v138_v53  ;;  %v183_v62 = vpack.c.bf16 %v73_v57, %v71_v56  ;;  %v70_v63 = vld [vmem:[%s798_s1 + $0x100] sm:$0xff] }
  0x2c   :  { %v72_v0 = vld [vmem:[%s798_s1 + $0x110] sm:$0xff]  ;;  %v215_v1 = vpack.c.bf16 %v137_v59, %v135_v58  ;;  %v134_v2 = vld [vmem:[%s798_s1 + $0x300] sm:$0xff] }
  0x2d   :  { %251 = vmatpush2.bf16.msra.mxu0 %v192_v6  ;;  %v136_v3 = vld [vmem:[%s798_s1 + $0x310] sm:$0xff]  ;;  %v182_v4 = vpack.c.bf16 %v72_v0, %v70_v63  ;;  %v26_v5 = vld [vmem:[%s799_s0] sm:$0xff] }
  0x2e   :  { %294 = vmatpush2.bf16.msra.mxu1 %v224_v10  ;;  %252 = vmatprep.subr.bf16.mxu0 %v191_v11  ;;  %v30_v6 = vld [vmem:[%s799_s0 + $0x20] sm:$0xff]  ;;  %v214_v7 = vpack.c.bf16 %v136_v3, %v134_v2  ;;  %v28_v8 = vld [vmem:[%s799_s0 + $0x10] sm:$0xff] }
  0x2f   :  { %295 = vmatprep.subr.bf16.mxu1 %v223_v15  ;;  %v32_v9 = vld [vmem:[%s799_s0 + $0x30] sm:$0xff]  ;;  %v34_v10 = vpack.c.bf16 %v30_v6, %v26_v5  ;;  %v331_v15 = vld [vmem:[%s800_s2] sm:$0x3] }
  0x30   :  { %v36_v11 = vpack.c.bf16 %v32_v9, %v28_v8  ;;  %v336_v18 = vrot.slane %v331_v15, %v335_v14 }
  0x31   :  { %253 = vmatpush2.bf16.msra.mxu0 %v190_v22  ;;  %v340_v22 = vrot.slane %v331_v15, %v339_v16 }
  0x32   :  { %296 = vmatpush2.bf16.msra.mxu1 %v222_v25  ;;  %254 = vmatprep.subr.bf16.mxu0 %v189_v26 }
  0x33   :  { %297 = vmatprep.subr.bf16.mxu1 %v221_v30 }
  0x35   :  { %255 = vmatpush2.bf16.msra.mxu0 %v188_v36 }
  0x36   :  { %298 = vmatpush2.bf16.msra.mxu1 %v220_v37  ;;  %256 = vmatprep.subr.bf16.mxu0 %v187_v38 }
  0x37   :  { %299 = vmatprep.subr.bf16.mxu1 %v219_v42 }
  0x39   :  { %257 = vmatpush2.bf16.msra.mxu0 %v186_v48 }
  0x3a   :  { %300 = vmatpush2.bf16.msra.mxu1 %v218_v49  ;;  %258 = vmatprep.subr.bf16.mxu0 %v185_v50 }
  0x3b   :  { %301 = vmatprep.subr.bf16.mxu1 %v217_v54 }
  0x3d   :  { %259 = vmatpush2.bf16.msra.mxu0 %v184_v60 }
  0x3e   :  { %302 = vmatpush2.bf16.msra.mxu1 %v216_v61  ;;  %260 = vmatprep.subr.bf16.mxu0 %v183_v62 }
  0x3f   :  { %303 = vmatprep.subr.bf16.mxu1 %v215_v1 }
  0x41   :  { %261 = vmatpush2.bf16.msra.mxu0 %v182_v4 }
  0x42   :  { %304 = vmatpush2.bf16.msra.mxu1 %v214_v7 }
  0x44   :  { %263 = vmatmul.mubr.bf16.vlgmr.msra.gmra.mxu0 %v34_v10 }
  0x45   :  { %306 = vmatmul.mubr.bf16.vlgmr.msra.gmra.mxu1 %v36_v11 }
 0x104   :  { %v264_v17 = vpop.f32.mrf.mxu0 }
 0x105   :  { %v307_v19 = vpop.f32.mrf.mxu1 }
 0x106   :  { %v308_v20 = vadd.f32 %v307_v19, %v264_v17  ;;  %v266_v21 = vpop.f32.mrf.mxu0 }
 0x107   :  { %v309_v23 = vpop.f32.mrf.mxu1 }
 0x108   :  { %v343_v24 = vadd.f32 %v336_v18, %v308_v20  ;;  %v310_v25 = vadd.f32 %v309_v23, %v266_v21  ;;  %v268_v26 = vpop.f32.mrf.mxu0 }
 0x109   :  { %v311_v27 = vpop.f32.mrf.mxu1 }
 0x10a   :  { %347 = vst [vmem:[%s801_s3] sm:$0xff] %v343_v24  ;;  %v344_v28 = vadd.f32 %v340_v22, %v310_v25  ;;  %v312_v29 = vadd.f32 %v311_v27, %v268_v26  ;;  %v270_v30 = vpop.f32.mrf.mxu0 }
 0x10b   :  { %v313_v31 = vpop.f32.mrf.mxu1 }
 0x10c   :  { %348 = vst [vmem:[%s801_s3 + $0x8] sm:$0xff] %v344_v28  ;;  %v345_v32 = vadd.f32 %v336_v18, %v312_v29  ;;  %v314_v33 = vadd.f32 %v313_v31, %v270_v30 }
 0x10e   :  { %349 = vst [vmem:[%s801_s3 + $0x10] sm:$0xff] %v345_v32  ;;  %v346_v34 = vadd.f32 %v340_v22, %v314_v33 }
 0x110   :  { %350 = vst [vmem:[%s801_s3 + $0x18] sm:$0xff] %v346_v34 }

// kernel: transformer_loss.72
= control target key start
LH: loop header
LB: loop body
LE: loop exit
PB: predicated region body
PF: predicated region fallthrough
CT: control target
= control target key end

     0   :  { %s729_s12 = smov 0   ;;  %s731_s13 = smov 0   ;;  %s796_s0 = inlined_call_operand.vmem [shape: f32[2,6,256], index: 0, kind: input, shape index: {}]   ;;  %s797_s1 = inlined_call_operand.vmem [shape: f32[2,6,256], index: 1, kind: input, shape index: {}]   ;;  %s798_s2 = inlined_call_operand.vmem [shape: f32[2,6,256], index: 2, kind: input, shape index: {}]   ;;  %s799_s3 = inlined_call_operand.vmem [shape: f32[2,6,256], index: 3, kind: output, shape index: {}]  }
   0x1   :  { %s733_s14 = smov 0  }
   0x2 LB: > { %s25_s15 = sadd.s32 1, %s700_s13  ;;  %p598_p0 = scmp.ge.s32.totalorder %s704_s14, 1  ;;  %s704_s14 = sphi %s733_s14, %s13_s14   ;;  %s700_s13 = sphi %s731_s13, %s801_s13   ;;  %s696_s12 = sphi %s729_s12, %s800_s12  }
   0x3   : > { %p27_p1 = scmp.ge.s32.totalorder %s25_s15, 2  ;;  %p177_p2 = scmp.lt.s32.totalorder %s704_s14, 3 }
   0x5   : > { %s803_s15 = smov (%p27_p1, %s25_s15), 0  ;;  %p178_p3 = pnand %p598_p0, %p177_p2 }
   0x6   : > { %p219_p4 = scmp.lt.s32.totalorder (!%p178_p3), %s696_s12, 1 }
   0x7   : > { %181 = sbr.rel (%p178_p3) target bundleno = 1257 (0x4e9), region = 32 }
   0xc   : > { %v706_v0 = vmov 0.0   ;;  %vm707_vm0 = vmmov 0   ;;  %s805_s12 = smov (!%p219_p4, %s696_s12), 1  ;;  %v255_v5 = vlaneseq  ;;  %v708_v9 = vmov -1e+09  }
   0xd   : > { %623 = vmatprep.subr.bf16.mxu0 %v706_v0  ;;  %625 = vmatprep.mubr.msk.bf16.mxu0 %vm707_vm0, %v706_v0  ;;  %s749_s16 = sshll.u32 %s805_s12, 4  ;;  %vm308_vm2 = vcmask 46080   ;;  %vm325_vm3 = vcmask 1042432   ;;  %vm321_vm4 = vcmask 48128  }
   0xe   : > { %629 = vmatprep.subr.bf16.mxu1 %v706_v0  ;;  %631 = vmatprep.mubr.msk.bf16.mxu1 %vm707_vm0, %v706_v0  ;;  %s755_s19 = scalar_lea.vmem %s797_s1, %s749_s16  ;;  %s762_s22 = scalar_lea.vmem %s796_s0, %s749_s16  ;;  %v256_v6 = vshrl.u32 %v255_v5, 7  ;;  %v260_v7 = vand.u32 127, %v255_v5 }
   0xf   : > { %v250_v1 = vld [vmem:[%s755_s19] sm:$0x3f]  ;;  %s237_s25 = scalar_lea.vmem %s798_s2, %s749_s16  ;;  %v251_v29 = vld [vmem:[%s755_s19 + $0x8] sm:$0x3f]  ;;  %s780_s28 = scalar_lea.vmem %s799_s3, %s749_s16 }
  0x10   : > { %v264_v2 = vpack.c.bf16 %v250_v1, %v250_v1  ;;  %v248_v3 = vld [vmem:[%s762_s22] sm:$0x3f]  ;;  %vm261_vm1 = vcmp.ge.s32.totalorder %v256_v6, %v260_v7  ;;  %v253_v23 = vld [vmem:[%s237_s25 + $0x8] sm:$0x3f]  ;;  %v371_v32 = vpack.c.bf16 %v251_v29, %v251_v29 }
  0x11   : > { %v263_v4 = vpack.c.bf16 %v248_v3, %v248_v3  ;;  %v262_v10 = vsel %vm261_vm1, 0.0, %v708_v9  ;;  %v252_v22 = vld [vmem:[%s237_s25] sm:$0x3f]  ;;  %v372_v25 = vpack.c.bf16 %v253_v23, %v253_v23  ;;  %v249_v34 = vld [vmem:[%s762_s22 + $0x8] sm:$0x3f] }
  0x12   : > { %624 = vmatpush3.bf16.xpose.msra.mxu0 %v264_v2  ;;  %v265_v24 = vpack.c.bf16 %v252_v22, %v252_v22  ;;  %v370_v35 = vpack.c.bf16 %v249_v34, %v249_v34 }
  0x13   : > { %641 = vmatprep.subr.bf16.mxu0 %v706_v0  ;;  %v431_v27 = vsel %vm325_vm3, %v372_v25, 0 }
  0x14   : > { %v327_v26 = vsel %vm325_vm3, %v265_v24, 0 }
  0x15   : > { %630 = vmatpush3.bf16.msra.mxu1 %v327_v26 }
  0x16   : > { %635 = vmatprep.subr.bf16.mxu1 %v706_v0 }
  0x19   : > { %626 = vmatmul.mubr.bf16.vlgmr.msra.gmra.mxu0 %v263_v4 }
  0x1a   : > { %643 = vmatprep.mubr.msk.bf16.mxu0 %vm707_vm0, %v706_v0  ;;  %642 = vmatpush3.bf16.msra.mxu0 %v431_v27 }
  0xd9   : > { %v300_v8 = vpop.f32.mrf.mxu0 }
  0xda   : > { %v306_v11 = vmul.f32 0.088388346, %v300_v8 }
  0xdb   : > { %v627_v12 = vpop.f32.mrf.mxu0 }
  0xdc   : > { %v307_v13 = vadd.f32 %v306_v11, %v262_v10 }
  0xdd   : > { %v303_v14 = vpop.f32.mrf.mxu0 }
  0xde   : > { %v309_v15 = vsel %vm308_vm2, %v307_v13, -inf }
  0xdf   : > { %310 = vmax.xlane.f32.xlu0 %v309_v15  ;;  %v628_v16 = vpop.f32.mrf.mxu0 }
 0x168   : > { %v311_v17 = vpop.xlane.xlu0 %310 }
 0x169   : > { %v312_v18 = vsub.f32 %v307_v13, %v311_v17 }
 0x16b   : > { %v313_v19 = vmul.f32 1.442695, %v312_v18 }
 0x16d   : > { %674 = vpow2.f32 %v313_v19 }
 0x17a   : > { %v675_v20 = vpop.eup %674 }
 0x17b   : > { %v315_v21 = vsel %vm308_vm2, %v675_v20, 0.0 }
 0x17c   : > { %316 = vadd.xlane.f32.xlu0 %v315_v21 }
 0x205   : > { %v317_v28 = vpop.xlane.xlu0 %316 }
 0x206   : > { %676 = vrcp.f32 %v317_v28 }
 0x213   : > { %v677_v30 = vpop.eup %676 }
 0x214   : > { %v319_v31 = vmul.f32 %v677_v30, %v675_v20 }
 0x216   : > { %v320_v33 = vpack.c.bf16 %v319_v31, %v319_v31 }
 0x218   : > { %632 = vmatmul.mubr.msk.bf16.vlgmr.msra.gmra.mxu1 %vm321_vm4, %v320_v33 }
 0x219   : > { %636 = vmatpush3.bf16.xpose.msra.mxu1 %v371_v32  ;;  %637 = vmatprep.mubr.msk.bf16.mxu1 %vm707_vm0, %v706_v0 }
 0x220   : > { %638 = vmatmul.mubr.bf16.vlgmr.msra.gmra.mxu1 %v370_v35 }
 0x2d8   : > { %v363_v36 = vpop.f32.mrf.mxu1 }
 0x2d9   : > { %369 = vst [vmem:[#allocation2] sm:$0x3f] %v363_v36 }
 0x2da   : > { %v633_v37 = vpop.f32.mrf.mxu1 }
 0x2dc   : > { %v366_v38 = vpop.f32.mrf.mxu1 }
 0x2de   : > { %v634_v39 = vpop.f32.mrf.mxu1 }
 0x2e0   : > { %v474_v40 = vld [vmem:[#allocation2] sm:$0x3f]  ;;  %v407_v41 = vpop.f32.mrf.mxu1 }
 0x2e1   : > { %476 = vst [vmem:[%s780_s28] sm:$0x3f] %v474_v40  ;;  %v413_v42 = vmul.f32 0.088388346, %v407_v41 }
 0x2e2   : > { %v639_v43 = vpop.f32.mrf.mxu1 }
 0x2e3   : > { %v414_v44 = vadd.f32 %v413_v42, %v262_v10 }
 0x2e4   : > { %v410_v45 = vpop.f32.mrf.mxu1 }
 0x2e5   : > { %v415_v46 = vsel %vm308_vm2, %v414_v44, -inf }
 0x2e6   : > { %416 = vmax.xlane.f32.xlu1 %v415_v46  ;;  %v640_v47 = vpop.f32.mrf.mxu1 }
 0x36f   : > { %v417_v48 = vpop.xlane.xlu1 %416 }
 0x370   : > { %v418_v49 = vsub.f32 %v414_v44, %v417_v48 }
 0x372   : > { %v419_v50 = vmul.f32 1.442695, %v418_v49 }
 0x374   : > { %678 = vpow2.f32 %v419_v50 }
 0x381   : > { %v679_v51 = vpop.eup %678 }
 0x382   : > { %v421_v52 = vsel %vm308_vm2, %v679_v51, 0.0 }
 0x383   : > { %422 = vadd.xlane.f32.xlu1 %v421_v52 }
 0x40c   : > { %v423_v53 = vpop.xlane.xlu1 %422 }
 0x40d   : > { %680 = vrcp.f32 %v423_v53 }
 0x41a   : > { %v681_v54 = vpop.eup %680 }
 0x41b   : > { %v425_v55 = vmul.f32 %v681_v54, %v679_v51 }
 0x41d   : > { %v426_v56 = vpack.c.bf16 %v425_v55, %v425_v55 }
 0x41f   : > { %644 = vmatmul.mubr.msk.bf16.vlgmr.msra.gmra.mxu0 %vm321_vm4, %v426_v56 }
 0x4df   : > { %v467_v57 = vpop.f32.mrf.mxu0 }
 0x4e0   : > { %473 = vst [vmem:[#allocation2 + $0x8] sm:$0x3f] %v467_v57 }
 0x4e1   : > { %v645_v58 = vpop.f32.mrf.mxu0 }
 0x4e3   : > { %v470_v59 = vpop.f32.mrf.mxu0 }
 0x4e5   : > { %v646_v60 = vpop.f32.mrf.mxu0 }
 0x4e7   : > { %v475_v61 = vld [vmem:[#allocation2 + $0x8] sm:$0x3f] }
 0x4e8   : > { %477 = vst [vmem:[%s780_s28 + $0x8] sm:$0x3f] %v475_v61 }
 0x4e9 PF: > { %s13_s14 = sadd.s32 1, %s704_s14   ;;  %s800_s12 = smov %s700_s13 }
 0x4ea   : > { %p10_p5 = scmp.ge.s32.totalorder %s13_s14, 4   ;;  %s801_s13 = smov %s803_s15 }
 0x4ec   :  { %12 = sbr.rel (!%p10_p5) target bundleno = 2 (0x2), region = 68 }

// kernel: transformer_loss.57
= control target key start
LH: loop header
LB: loop body
LE: loop exit
PB: predicated region body
PF: predicated region fallthrough
CT: control target
= control target key end

     0   :  { %s838_s1 = inlined_call_operand.vmem [shape: f32[256,512], index: 1, kind: input, shape index: {}]   ;;  %s839_s0 = inlined_call_operand.vmem [shape: f32[16,256], index: 0, kind: input, shape index: {}]   ;;  %s840_s2 = inlined_call_operand.vmem [shape: f32[1,512], index: 2, kind: input, shape index: {}]   ;;  %s841_s3 = inlined_call_operand.vmem [shape: f32[16,512], index: 3, kind: output, shape index: {}]  }
   0x1   :  { %v97_v0 = vld [vmem:[%s838_s1 + $0x1c8] sm:$0xff]  ;;  %v99_v2 = vld [vmem:[%s838_s1 + $0x1d8] sm:$0xff]  ;;  %v96_v5 = vld [vmem:[%s838_s1 + $0x1c0] sm:$0xff] }
   0x2   :  { %v101_v1 = vld [vmem:[%s838_s1 + $0x1e8] sm:$0xff]  ;;  %v103_v4 = vld [vmem:[%s838_s1 + $0x1f8] sm:$0xff]  ;;  %v100_v6 = vld [vmem:[%s838_s1 + $0x1e0] sm:$0xff] }
   0x3   :  { %v197_v3 = vpack.c.bf16 %v101_v1, %v97_v0  ;;  %v199_v7 = vpack.c.bf16 %v103_v4, %v99_v2  ;;  %v196_v8 = vpack.c.bf16 %v100_v6, %v96_v5  ;;  %v98_v9 = vld [vmem:[%s838_s1 + $0x1d0] sm:$0xff]  ;;  %v89_v11 = vld [vmem:[%s838_s1 + $0x188] sm:$0xff]  ;;  %v91_v14 = vld [vmem:[%s838_s1 + $0x198] sm:$0xff] }
   0x4   :  { %v102_v10 = vld [vmem:[%s838_s1 + $0x1f0] sm:$0xff]  ;;  %v93_v13 = vld [vmem:[%s838_s1 + $0x1a8] sm:$0xff]  ;;  %v95_v15 = vld [vmem:[%s838_s1 + $0x1b8] sm:$0xff] }
   0x5   :  { %232 = vmatprep.subr.bf16.mxu0 %v197_v3  ;;  %v198_v12 = vpack.c.bf16 %v102_v10, %v98_v9  ;;  %275 = vmatprep.subr.bf16.mxu1 %v199_v7  ;;  %v193_v16 = vpack.c.bf16 %v93_v13, %v89_v11  ;;  %v195_v17 = vpack.c.bf16 %v95_v15, %v91_v14  ;;  %v88_v18 = vld [vmem:[%s838_s1 + $0x180] sm:$0xff]  ;;  %v90_v20 = vld [vmem:[%s838_s1 + $0x190] sm:$0xff]  ;;  %v81_v23 = vld [vmem:[%s838_s1 + $0x148] sm:$0xff] }
   0x6   :  { %233 = vmatpush1.bf16.msra.mxu0 %v196_v8  ;;  %v92_v19 = vld [vmem:[%s838_s1 + $0x1a0] sm:$0xff]  ;;  %v94_v22 = vld [vmem:[%s838_s1 + $0x1b0] sm:$0xff]  ;;  %v85_v24 = vld [vmem:[%s838_s1 + $0x168] sm:$0xff] }
   0x7   :  { %276 = vmatpush1.bf16.msra.mxu1 %v198_v12  ;;  %v192_v21 = vpack.c.bf16 %v92_v19, %v88_v18  ;;  %234 = vmatprep.subr.bf16.mxu0 %v193_v16  ;;  %v194_v25 = vpack.c.bf16 %v94_v22, %v90_v20  ;;  %v189_v26 = vpack.c.bf16 %v85_v24, %v81_v23  ;;  %v83_v27 = vld [vmem:[%s838_s1 + $0x158] sm:$0xff]  ;;  %v80_v29 = vld [vmem:[%s838_s1 + $0x140] sm:$0xff]  ;;  %v82_v32 = vld [vmem:[%s838_s1 + $0x150] sm:$0xff] }
   0x8   :  { %277 = vmatprep.subr.bf16.mxu1 %v195_v17  ;;  %v87_v28 = vld [vmem:[%s838_s1 + $0x178] sm:$0xff]  ;;  %v84_v31 = vld [vmem:[%s838_s1 + $0x160] sm:$0xff]  ;;  %v86_v33 = vld [vmem:[%s838_s1 + $0x170] sm:$0xff] }
   0x9   :  { %v191_v30 = vpack.c.bf16 %v87_v28, %v83_v27  ;;  %v188_v34 = vpack.c.bf16 %v84_v31, %v80_v29  ;;  %v73_v35 = vld [vmem:[%s838_s1 + $0x108] sm:$0xff]  ;;  %v75_v37 = vld [vmem:[%s838_s1 + $0x118] sm:$0xff]  ;;  %v190_v38 = vpack.c.bf16 %v86_v33, %v82_v32  ;;  %v72_v41 = vld [vmem:[%s838_s1 + $0x100] sm:$0xff] }
   0xa   :  { %235 = vmatpush1.bf16.msra.mxu0 %v192_v21  ;;  %v77_v36 = vld [vmem:[%s838_s1 + $0x128] sm:$0xff]  ;;  %v79_v40 = vld [vmem:[%s838_s1 + $0x138] sm:$0xff]  ;;  %v76_v42 = vld [vmem:[%s838_s1 + $0x120] sm:$0xff] }
   0xb   :  { %278 = vmatpush1.bf16.msra.mxu1 %v194_v25  ;;  %236 = vmatprep.subr.bf16.mxu0 %v189_v26  ;;  %v185_v39 = vpack.c.bf16 %v77_v36, %v73_v35  ;;  %v187_v43 = vpack.c.bf16 %v79_v40, %v75_v37  ;;  %v74_v44 = vld [vmem:[%s838_s1 + $0x110] sm:$0xff]  ;;  %v65_v46 = vld [vmem:[%s838_s1 + $0xc8] sm:$0xff]  ;;  %v67_v48 = vld [vmem:[%s838_s1 + $0xd8] sm:$0xff]  ;;  %v184_v50 = vpack.c.bf16 %v76_v42, %v72_v41 }
   0xc   :  { %279 = vmatprep.subr.bf16.mxu1 %v191_v30  ;;  %v78_v45 = vld [vmem:[%s838_s1 + $0x130] sm:$0xff]  ;;  %v69_v47 = vld [vmem:[%s838_s1 + $0xe8] sm:$0xff]  ;;  %v71_v49 = vld [vmem:[%s838_s1 + $0xf8] sm:$0xff] }
   0xd   :  { %v186_v51 = vpack.c.bf16 %v78_v45, %v74_v44  ;;  %v181_v52 = vpack.c.bf16 %v69_v47, %v65_v46  ;;  %v64_v53 = vld [vmem:[%s838_s1 + $0xc0] sm:$0xff]  ;;  %v66_v55 = vld [vmem:[%s838_s1 + $0xd0] sm:$0xff]  ;;  %v183_v56 = vpack.c.bf16 %v71_v49, %v67_v48  ;;  %v57_v58 = vld [vmem:[%s838_s1 + $0x88] sm:$0xff] }
   0xe   :  { %237 = vmatpush1.bf16.msra.mxu0 %v188_v34  ;;  %v68_v54 = vld [vmem:[%s838_s1 + $0xe0] sm:$0xff]  ;;  %v70_v57 = vld [vmem:[%s838_s1 + $0xf0] sm:$0xff]  ;;  %v61_v59 = vld [vmem:[%s838_s1 + $0xa8] sm:$0xff] }
   0xf   :  { %280 = vmatpush1.bf16.msra.mxu1 %v190_v38  ;;  %238 = vmatprep.subr.bf16.mxu0 %v185_v39  ;;  %v59_v60 = vld [vmem:[%s838_s1 + $0x98] sm:$0xff]  ;;  %v180_v62 = vpack.c.bf16 %v68_v54, %v64_v53  ;;  %v182_v63 = vpack.c.bf16 %v70_v57, %v66_v55  ;;  %v177_v0 = vpack.c.bf16 %v61_v59, %v57_v58  ;;  %v56_v1 = vld [vmem:[%s838_s1 + $0x80] sm:$0xff]  ;;  %v58_v3 = vld [vmem:[%s838_s1 + $0x90] sm:$0xff] }
  0x10   :  { %281 = vmatprep.subr.bf16.mxu1 %v187_v43  ;;  %v63_v61 = vld [vmem:[%s838_s1 + $0xb8] sm:$0xff]  ;;  %v60_v2 = vld [vmem:[%s838_s1 + $0xa0] sm:$0xff]  ;;  %v62_v5 = vld [vmem:[%s838_s1 + $0xb0] sm:$0xff] }
  0x11   :  { %v179_v4 = vpack.c.bf16 %v63_v61, %v59_v60  ;;  %v49_v6 = vld [vmem:[%s838_s1 + $0x48] sm:$0xff]  ;;  %v51_v8 = vld [vmem:[%s838_s1 + $0x58] sm:$0xff]  ;;  %v176_v10 = vpack.c.bf16 %v60_v2, %v56_v1  ;;  %v178_v11 = vpack.c.bf16 %v62_v5, %v58_v3  ;;  %v48_v13 = vld [vmem:[%s838_s1 + $0x40] sm:$0xff] }
  0x12   :  { %239 = vmatpush1.bf16.msra.mxu0 %v184_v50  ;;  %v53_v7 = vld [vmem:[%s838_s1 + $0x68] sm:$0xff]  ;;  %v55_v9 = vld [vmem:[%s838_s1 + $0x78] sm:$0xff]  ;;  %v52_v14 = vld [vmem:[%s838_s1 + $0x60] sm:$0xff] }
  0x13   :  { %282 = vmatpush1.bf16.msra.mxu1 %v186_v51  ;;  %240 = vmatprep.subr.bf16.mxu0 %v181_v52  ;;  %v173_v12 = vpack.c.bf16 %v53_v7, %v49_v6  ;;  %v50_v15 = vld [vmem:[%s838_s1 + $0x50] sm:$0xff]  ;;  %v175_v16 = vpack.c.bf16 %v55_v9, %v51_v8  ;;  %v41_v18 = vld [vmem:[%s838_s1 + $0x8] sm:$0xff]  ;;  %v43_v20 = vld [vmem:[%s838_s1 + $0x18] sm:$0xff]  ;;  %v172_v22 = vpack.c.bf16 %v52_v14, %v48_v13 }
  0x14   :  { %283 = vmatprep.subr.bf16.mxu1 %v183_v56  ;;  %v54_v17 = vld [vmem:[%s838_s1 + $0x70] sm:$0xff]  ;;  %v45_v19 = vld [vmem:[%s838_s1 + $0x28] sm:$0xff]  ;;  %v47_v21 = vld [vmem:[%s838_s1 + $0x38] sm:$0xff] }
  0x15   :  { %v174_v23 = vpack.c.bf16 %v54_v17, %v50_v15  ;;  %v169_v24 = vpack.c.bf16 %v45_v19, %v41_v18  ;;  %v40_v25 = vld [vmem:[%s838_s1] sm:$0xff]  ;;  %v42_v27 = vld [vmem:[%s838_s1 + $0x10] sm:$0xff]  ;;  %v171_v28 = vpack.c.bf16 %v47_v21, %v43_v20  ;;  %v161_v30 = vld [vmem:[%s838_s1 + $0x3c8] sm:$0xff] }
  0x16   :  { %241 = vmatpush1.bf16.msra.mxu0 %v180_v62  ;;  %v44_v26 = vld [vmem:[%s838_s1 + $0x20] sm:$0xff]  ;;  %v46_v29 = vld [vmem:[%s838_s1 + $0x30] sm:$0xff]  ;;  %v165_v31 = vld [vmem:[%s838_s1 + $0x3e8] sm:$0xff] }
  0x17   :  { %284 = vmatpush1.bf16.msra.mxu1 %v182_v63  ;;  %242 = vmatprep.subr.bf16.mxu0 %v177_v0  ;;  %v163_v32 = vld [vmem:[%s838_s1 + $0x3d8] sm:$0xff]  ;;  %v168_v34 = vpack.c.bf16 %v44_v26, %v40_v25  ;;  %v170_v35 = vpack.c.bf16 %v46_v29, %v42_v27  ;;  %v229_v36 = vpack.c.bf16 %v165_v31, %v161_v30  ;;  %v160_v37 = vld [vmem:[%s838_s1 + $0x3c0] sm:$0xff]  ;;  %v162_v39 = vld [vmem:[%s838_s1 + $0x3d0] sm:$0xff] }
  0x18   :  { %285 = vmatprep.subr.bf16.mxu1 %v179_v4  ;;  %v167_v33 = vld [vmem:[%s838_s1 + $0x3f8] sm:$0xff]  ;;  %v164_v38 = vld [vmem:[%s838_s1 + $0x3e0] sm:$0xff]  ;;  %v166_v41 = vld [vmem:[%s838_s1 + $0x3f0] sm:$0xff] }
  0x19   :  { %v231_v40 = vpack.c.bf16 %v167_v33, %v163_v32  ;;  %v153_v42 = vld [vmem:[%s838_s1 + $0x388] sm:$0xff]  ;;  %v155_v44 = vld [vmem:[%s838_s1 + $0x398] sm:$0xff]  ;;  %v228_v46 = vpack.c.bf16 %v164_v38, %v160_v37  ;;  %v230_v47 = vpack.c.bf16 %v166_v41, %v162_v39  ;;  %v152_v49 = vld [vmem:[%s838_s1 + $0x380] sm:$0xff] }
  0x1a   :  { %243 = vmatpush1.bf16.msra.mxu0 %v176_v10  ;;  %v157_v43 = vld [vmem:[%s838_s1 + $0x3a8] sm:$0xff]  ;;  %v159_v45 = vld [vmem:[%s838_s1 + $0x3b8] sm:$0xff]  ;;  %v156_v50 = vld [vmem:[%s838_s1 + $0x3a0] sm:$0xff] }
  0x1b   :  { %286 = vmatpush1.bf16.msra.mxu1 %v178_v11  ;;  %244 = vmatprep.subr.bf16.mxu0 %v173_v12  ;;  %v225_v48 = vpack.c.bf16 %v157_v43, %v153_v42  ;;  %v154_v51 = vld [vmem:[%s838_s1 + $0x390] sm:$0xff]  ;;  %v227_v52 = vpack.c.bf16 %v159_v45, %v155_v44  ;;  %v145_v54 = vld [vmem:[%s838_s1 + $0x348] sm:$0xff]  ;;  %v147_v56 = vld [vmem:[%s838_s1 + $0x358] sm:$0xff]  ;;  %v224_v58 = vpack.c.bf16 %v156_v50, %v152_v49 }
  0x1c   :  { %287 = vmatprep.subr.bf16.mxu1 %v175_v16  ;;  %v158_v53 = vld [vmem:[%s838_s1 + $0x3b0] sm:$0xff]  ;;  %v149_v55 = vld [vmem:[%s838_s1 + $0x368] sm:$0xff]  ;;  %v151_v57 = vld [vmem:[%s838_s1 + $0x378] sm:$0xff] }
  0x1d   :  { %v226_v59 = vpack.c.bf16 %v158_v53, %v154_v51  ;;  %v221_v60 = vpack.c.bf16 %v149_v55, %v145_v54  ;;  %v144_v61 = vld [vmem:[%s838_s1 + $0x340] sm:$0xff]  ;;  %v146_v63 = vld [vmem:[%s838_s1 + $0x350] sm:$0xff]  ;;  %v223_v0 = vpack.c.bf16 %v151_v57, %v147_v56  ;;  %v137_v2 = vld [vmem:[%s838_s1 + $0x308] sm:$0xff] }
  0x1e   :  { %245 = vmatpush1.bf16.msra.mxu0 %v172_v22  ;;  %v148_v62 = vld [vmem:[%s838_s1 + $0x360] sm:$0xff]  ;;  %v150_v1 = vld [vmem:[%s838_s1 + $0x370] sm:$0xff]  ;;  %v141_v3 = vld [vmem:[%s838_s1 + $0x328] sm:$0xff] }
  0x1f   :  { %288 = vmatpush1.bf16.msra.mxu1 %v174_v23  ;;  %246 = vmatprep.subr.bf16.mxu0 %v169_v24  ;;  %v139_v4 = vld [vmem:[%s838_s1 + $0x318] sm:$0xff]  ;;  %v220_v6 = vpack.c.bf16 %v148_v62, %v144_v61  ;;  %v136_v7 = vld [vmem:[%s838_s1 + $0x300] sm:$0xff]  ;;  %v222_v8 = vpack.c.bf16 %v150_v1, %v146_v63  ;;  %v217_v9 = vpack.c.bf16 %v141_v3, %v137_v2  ;;  %v138_v11 = vld [vmem:[%s838_s1 + $0x310] sm:$0xff] }
  0x20   :  { %289 = vmatprep.subr.bf16.mxu1 %v171_v28  ;;  %v143_v5 = vld [vmem:[%s838_s1 + $0x338] sm:$0xff]  ;;  %v140_v10 = vld [vmem:[%s838_s1 + $0x320] sm:$0xff]  ;;  %v142_v12 = vld [vmem:[%s838_s1 + $0x330] sm:$0xff] }
  0x21   :  { %v219_v13 = vpack.c.bf16 %v143_v5, %v139_v4  ;;  %v129_v14 = vld [vmem:[%s838_s1 + $0x2c8] sm:$0xff]  ;;  %v131_v17 = vld [vmem:[%s838_s1 + $0x2d8] sm:$0xff]  ;;  %v216_v20 = vpack.c.bf16 %v140_v10, %v136_v7  ;;  %v218_v22 = vpack.c.bf16 %v142_v12, %v138_v11  ;;  %v128_v24 = vld [vmem:[%s838_s1 + $0x2c0] sm:$0xff] }
  0x22   :  { %247 = vmatpush1.bf16.msra.mxu0 %v168_v34  ;;  %v133_v15 = vld [vmem:[%s838_s1 + $0x2e8] sm:$0xff]  ;;  %v135_v18 = vld [vmem:[%s838_s1 + $0x2f8] sm:$0xff]  ;;  %v132_v25 = vld [vmem:[%s838_s1 + $0x2e0] sm:$0xff] }
  0x23   :  { %290 = vmatpush1.bf16.msra.mxu1 %v170_v35  ;;  %248 = vmatprep.subr.bf16.mxu0 %v229_v36  ;;  %v35_v16 = vld [vmem:[%s839_s0 + $0x8] sm:$0xff]  ;;  %v37_v19 = vld [vmem:[%s839_s0 + $0x18] sm:$0xff]  ;;  %v213_v23 = vpack.c.bf16 %v133_v15, %v129_v14  ;;  %v130_v26 = vld [vmem:[%s838_s1 + $0x2d0] sm:$0xff]  ;;  %v215_v27 = vpack.c.bf16 %v135_v18, %v131_v17  ;;  %v212_v33 = vpack.c.bf16 %v132_v25, %v128_v24 }
  0x24   :  { %291 = vmatprep.subr.bf16.mxu1 %v231_v40  ;;  %v39_v21 = vpack.c.bf16 %v37_v19, %v35_v16  ;;  %v134_v28 = vld [vmem:[%s838_s1 + $0x2f0] sm:$0xff]  ;;  %v121_v29 = vld [vmem:[%s838_s1 + $0x288] sm:$0xff]  ;;  %v123_v31 = vld [vmem:[%s838_s1 + $0x298] sm:$0xff] }
  0x25   :  { %v125_v30 = vld [vmem:[%s838_s1 + $0x2a8] sm:$0xff]  ;;  %v127_v32 = vld [vmem:[%s838_s1 + $0x2b8] sm:$0xff]  ;;  %v214_v34 = vpack.c.bf16 %v134_v28, %v130_v26  ;;  %v120_v36 = vld [vmem:[%s838_s1 + $0x280] sm:$0xff] }
  0x26   :  { %249 = vmatpush2.bf16.msra.mxu0 %v228_v46  ;;  %264 = vmatprep.mubr.bf16.mxu0 %v39_v21  ;;  %v209_v35 = vpack.c.bf16 %v125_v30, %v121_v29  ;;  %v124_v37 = vld [vmem:[%s838_s1 + $0x2a0] sm:$0xff]  ;;  %v122_v38 = vld [vmem:[%s838_s1 + $0x290] sm:$0xff]  ;;  %v211_v39 = vpack.c.bf16 %v127_v32, %v123_v31  ;;  %v113_v41 = vld [vmem:[%s838_s1 + $0x248] sm:$0xff] }
  0x27   :  { %292 = vmatpush2.bf16.msra.mxu1 %v230_v47  ;;  %250 = vmatprep.subr.bf16.mxu0 %v225_v48  ;;  %v126_v40 = vld [vmem:[%s838_s1 + $0x2b0] sm:$0xff]  ;;  %v117_v42 = vld [vmem:[%s838_s1 + $0x268] sm:$0xff]  ;;  %v115_v43 = vld [vmem:[%s838_s1 + $0x258] sm:$0xff]  ;;  %v208_v45 = vpack.c.bf16 %v124_v37, %v120_v36 }
  0x28   :  { %293 = vmatprep.subr.bf16.mxu1 %v227_v52  ;;  %307 = vmatprep.mubr.bf16.mxu1 %v39_v21  ;;  %v119_v44 = vld [vmem:[%s838_s1 + $0x278] sm:$0xff]  ;;  %v210_v46 = vpack.c.bf16 %v126_v40, %v122_v38  ;;  %v205_v47 = vpack.c.bf16 %v117_v42, %v113_v41  ;;  %v112_v48 = vld [vmem:[%s838_s1 + $0x240] sm:$0xff]  ;;  %v114_v50 = vld [vmem:[%s838_s1 + $0x250] sm:$0xff] }
  0x29   :  { %v116_v49 = vld [vmem:[%s838_s1 + $0x260] sm:$0xff]  ;;  %v207_v51 = vpack.c.bf16 %v119_v44, %v115_v43  ;;  %v118_v52 = vld [vmem:[%s838_s1 + $0x270] sm:$0xff]  ;;  %v105_v53 = vld [vmem:[%s838_s1 + $0x208] sm:$0xff] }
  0x2a   :  { %251 = vmatpush2.bf16.msra.mxu0 %v224_v58  ;;  %v109_v54 = vld [vmem:[%s838_s1 + $0x228] sm:$0xff]  ;;  %v107_v55 = vld [vmem:[%s838_s1 + $0x218] sm:$0xff]  ;;  %v204_v57 = vpack.c.bf16 %v116_v49, %v112_v48  ;;  %v206_v58 = vpack.c.bf16 %v118_v52, %v114_v50  ;;  %v108_v61 = vld [vmem:[%s838_s1 + $0x220] sm:$0xff] }
  0x2b   :  { %294 = vmatpush2.bf16.msra.mxu1 %v226_v59  ;;  %252 = vmatprep.subr.bf16.mxu0 %v221_v60  ;;  %v111_v56 = vld [vmem:[%s838_s1 + $0x238] sm:$0xff]  ;;  %v201_v59 = vpack.c.bf16 %v109_v54, %v105_v53  ;;  %v104_v60 = vld [vmem:[%s838_s1 + $0x200] sm:$0xff]  ;;  %v106_v63 = vld [vmem:[%s838_s1 + $0x210] sm:$0xff] }
  0x2c   :  { %295 = vmatprep.subr.bf16.mxu1 %v223_v0  ;;  %v203_v62 = vpack.c.bf16 %v111_v56, %v107_v55  ;;  %v110_v0 = vld [vmem:[%s838_s1 + $0x230] sm:$0xff]  ;;  %v200_v1 = vpack.c.bf16 %v108_v61, %v104_v60  ;;  %v34_v2 = vld [vmem:[%s839_s0] sm:$0xff] }
  0x2d   :  { %v36_v3 = vld [vmem:[%s839_s0 + $0x10] sm:$0xff]  ;;  %v202_v4 = vpack.c.bf16 %v110_v0, %v106_v63 }
  0x2e   :  { %253 = vmatpush2.bf16.msra.mxu0 %v220_v6  ;;  %v38_v5 = vpack.c.bf16 %v36_v3, %v34_v2  ;;  %v347_v6 = vlaneseq }
  0x2f   :  { %296 = vmatpush2.bf16.msra.mxu1 %v222_v8  ;;  %254 = vmatprep.subr.bf16.mxu0 %v217_v9  ;;  %v345_v9 = vld [vmem:[%s840_s2] sm:$0xf] }
  0x30   :  { %297 = vmatprep.subr.bf16.mxu1 %v219_v13  ;;  %v348_v7 = vshrl.u32 %v347_v6, 7 }
  0x32   :  { %255 = vmatpush2.bf16.msra.mxu0 %v216_v20  ;;  %v349_v8 = vsub.s32 0, %v348_v7  ;;  %v357_v10 = vsub.s32 2, %v348_v7  ;;  %v353_v11 = vsub.s32 1, %v348_v7  ;;  %v361_v12 = vsub.s32 3, %v348_v7 }
  0x33   :  { %298 = vmatpush2.bf16.msra.mxu1 %v218_v22  ;;  %256 = vmatprep.subr.bf16.mxu0 %v213_v23 }
  0x34   :  { %299 = vmatprep.subr.bf16.mxu1 %v215_v27  ;;  %v350_v13 = vrot.slane %v345_v9, %v349_v8  ;;  %v358_v14 = vrot.slane %v345_v9, %v357_v10  ;;  %v354_v15 = vrot.slane %v345_v9, %v353_v11  ;;  %v362_v17 = vrot.slane %v345_v9, %v361_v12 }
  0x36   :  { %257 = vmatpush2.bf16.msra.mxu0 %v212_v33 }
  0x37   :  { %300 = vmatpush2.bf16.msra.mxu1 %v214_v34  ;;  %258 = vmatprep.subr.bf16.mxu0 %v209_v35 }
  0x38   :  { %301 = vmatprep.subr.bf16.mxu1 %v211_v39 }
  0x3a   :  { %259 = vmatpush2.bf16.msra.mxu0 %v208_v45 }
  0x3b   :  { %302 = vmatpush2.bf16.msra.mxu1 %v210_v46  ;;  %260 = vmatprep.subr.bf16.mxu0 %v205_v47 }
  0x3c   :  { %303 = vmatprep.subr.bf16.mxu1 %v207_v51 }
  0x3e   :  { %261 = vmatpush2.bf16.msra.mxu0 %v204_v57 }
  0x3f   :  { %304 = vmatpush2.bf16.msra.mxu1 %v206_v58  ;;  %262 = vmatprep.subr.bf16.mxu0 %v201_v59 }
  0x40   :  { %305 = vmatprep.subr.bf16.mxu1 %v203_v62 }
  0x42   :  { %263 = vmatpush2.bf16.msra.mxu0 %v200_v1 }
  0x43   :  { %306 = vmatpush2.bf16.msra.mxu1 %v202_v4 }
  0x45   :  { %265 = vmatmul.mubr.bf16.vlgmr.msra.gmra.mxu0 %v38_v5 }
  0x46   :  { %308 = vmatmul.mubr.bf16.vlgmr.msra.gmra.mxu1 %v38_v5 }
 0x105   :  { %v266_v16 = vpop.f32.mrf.mxu0 }
 0x106   :  { %v367_v18 = vadd.f32 %v350_v13, %v266_v16  ;;  %v309_v19 = vpop.f32.mrf.mxu1 }
 0x107   :  { %v369_v20 = vadd.f32 %v358_v14, %v309_v19  ;;  %v268_v21 = vpop.f32.mrf.mxu0 }
 0x108   :  { %v375_v22 = vmax.f32 %v367_v18, 0.0  ;;  %v368_v23 = vadd.f32 %v354_v15, %v268_v21  ;;  %v311_v24 = vpop.f32.mrf.mxu1 }
 0x109   :  { %v377_v25 = vmax.f32 %v369_v20, 0.0  ;;  %v370_v26 = vadd.f32 %v362_v17, %v311_v24  ;;  %v270_v27 = vpop.f32.mrf.mxu0 }
 0x10a   :  { %383 = vst [vmem:[%s841_s3] sm:$0xff] %v375_v22  ;;  %v376_v28 = vmax.f32 %v368_v23, 0.0  ;;  %v371_v29 = vadd.f32 %v350_v13, %v270_v27  ;;  %v313_v30 = vpop.f32.mrf.mxu1 }
 0x10b   :  { %385 = vst [vmem:[%s841_s3 + $0x10] sm:$0xff] %v377_v25  ;;  %v378_v31 = vmax.f32 %v370_v26, 0.0  ;;  %v373_v32 = vadd.f32 %v358_v14, %v313_v30  ;;  %v272_v33 = vpop.f32.mrf.mxu0 }
 0x10c   :  { %384 = vst [vmem:[%s841_s3 + $0x8] sm:$0xff] %v376_v28  ;;  %v379_v34 = vmax.f32 %v371_v29, 0.0  ;;  %v372_v35 = vadd.f32 %v354_v15, %v272_v33  ;;  %v315_v36 = vpop.f32.mrf.mxu1 }
 0x10d   :  { %386 = vst [vmem:[%s841_s3 + $0x18] sm:$0xff] %v378_v31  ;;  %v381_v37 = vmax.f32 %v373_v32, 0.0  ;;  %v374_v38 = vadd.f32 %v362_v17, %v315_v36 }
 0x10e   :  { %387 = vst [vmem:[%s841_s3 + $0x20] sm:$0xff] %v379_v34  ;;  %v380_v39 = vmax.f32 %v372_v35, 0.0 }
 0x10f   :  { %389 = vst [vmem:[%s841_s3 + $0x30] sm:$0xff] %v381_v37  ;;  %v382_v40 = vmax.f32 %v374_v38, 0.0 }
 0x110   :  { %388 = vst [vmem:[%s841_s3 + $0x28] sm:$0xff] %v380_v39 }
 0x111   :  { %390 = vst [vmem:[%s841_s3 + $0x38] sm:$0xff] %v382_v40 }

// kernel: transformer_loss.78
= control target key start
LH: loop header
LB: loop body
LE: loop exit
PB: predicated region body
PF: predicated region fallthrough
CT: control target
= control target key end

     0   :  { %s716_s12 = smov 0   ;;  %s718_s13 = smov 0   ;;  %s779_s0 = inlined_call_operand.vmem [shape: f32[2,6,256], index: 0, kind: input, shape index: {}]   ;;  %s780_s1 = inlined_call_operand.vmem [shape: f32[2,8,256], index: 1, kind: input, shape index: {}]   ;;  %s781_s2 = inlined_call_operand.vmem [shape: f32[2,8,256], index: 2, kind: input, shape index: {}]   ;;  %s782_s3 = inlined_call_operand.vmem [shape: f32[2,6,256], index: 3, kind: output, shape index: {}]  }
   0x1   :  { %s720_s14 = smov 0  }
   0x2 LB: > { %s25_s15 = sadd.s32 1, %s688_s13  ;;  %p587_p0 = scmp.ge.s32.totalorder %s692_s14, 1  ;;  %s692_s14 = sphi %s720_s14, %s13_s14   ;;  %s688_s13 = sphi %s718_s13, %s784_s13   ;;  %s684_s12 = sphi %s716_s12, %s783_s12  }
   0x3   : > { %p27_p1 = scmp.ge.s32.totalorder %s25_s15, 2  ;;  %p177_p2 = scmp.lt.s32.totalorder %s692_s14, 3 }
   0x5   : > { %s786_s15 = smov (%p27_p1, %s25_s15), 0  ;;  %p178_p3 = pnand %p587_p0, %p177_p2 }
   0x6   : > { %p219_p4 = scmp.lt.s32.totalorder (!%p178_p3), %s684_s12, 1 }
   0x7   : > { %181 = sbr.rel (%p178_p3) target bundleno = 1253 (0x4e5), region = 32 }
   0xc   : > { %v694_v0 = vmov 0.0   ;;  %vm695_vm0 = vmmov 0   ;;  %s788_s12 = smov (!%p219_p4, %s684_s12), 1  ;;  %vm298_vm1 = vcmask 62464   ;;  %vm315_vm2 = vcmask 1043456  }
   0xd   : > { %612 = vmatprep.subr.bf16.mxu0 %v694_v0  ;;  %614 = vmatprep.mubr.msk.bf16.mxu0 %vm695_vm0, %v694_v0  ;;  %s736_s16 = sshll.u32 %s788_s12, 4  ;;  %vm311_vm3 = vcmask 64512  }
   0xe   : > { %618 = vmatprep.subr.bf16.mxu1 %v694_v0  ;;  %620 = vmatprep.mubr.msk.bf16.mxu1 %vm695_vm0, %v694_v0  ;;  %s742_s19 = scalar_lea.vmem %s780_s1, %s736_s16  ;;  %s749_s22 = scalar_lea.vmem %s779_s0, %s736_s16 }
   0xf   : > { %v250_v1 = vld [vmem:[%s742_s19] sm:$0xff]  ;;  %s237_s25 = scalar_lea.vmem %s781_s2, %s736_s16  ;;  %v251_v23 = vld [vmem:[%s742_s19 + $0x8] sm:$0xff]  ;;  %s246_s28 = scalar_lea.vmem %s782_s3, %s736_s16 }
  0x10   : > { %v255_v2 = vpack.c.bf16 %v250_v1, %v250_v1  ;;  %v248_v3 = vld [vmem:[%s749_s22] sm:$0x3f]  ;;  %v253_v17 = vld [vmem:[%s237_s25 + $0x8] sm:$0xff]  ;;  %v361_v26 = vpack.c.bf16 %v251_v23, %v251_v23 }
  0x11   : > { %v254_v4 = vpack.c.bf16 %v248_v3, %v248_v3  ;;  %v252_v16 = vld [vmem:[%s237_s25] sm:$0xff]  ;;  %v362_v19 = vpack.c.bf16 %v253_v17, %v253_v17  ;;  %v249_v28 = vld [vmem:[%s749_s22 + $0x8] sm:$0x3f] }
  0x12   : > { %613 = vmatpush3.bf16.xpose.msra.mxu0 %v255_v2  ;;  %v256_v18 = vpack.c.bf16 %v252_v16, %v252_v16  ;;  %v360_v29 = vpack.c.bf16 %v249_v28, %v249_v28 }
  0x13   : > { %630 = vmatprep.subr.bf16.mxu0 %v694_v0  ;;  %v420_v21 = vsel %vm315_vm2, %v362_v19, 0 }
  0x14   : > { %v317_v20 = vsel %vm315_vm2, %v256_v18, 0 }
  0x15   : > { %619 = vmatpush3.bf16.msra.mxu1 %v317_v20 }
  0x16   : > { %624 = vmatprep.subr.bf16.mxu1 %v694_v0 }
  0x19   : > { %615 = vmatmul.mubr.bf16.vlgmr.msra.gmra.mxu0 %v254_v4 }
  0x1a   : > { %632 = vmatprep.mubr.msk.bf16.mxu0 %vm695_vm0, %v694_v0  ;;  %631 = vmatpush3.bf16.msra.mxu0 %v420_v21 }
  0xd9   : > { %v291_v5 = vpop.f32.mrf.mxu0 }
  0xda   : > { %v297_v6 = vmul.f32 0.088388346, %v291_v5 }
  0xdb   : > { %v616_v7 = vpop.f32.mrf.mxu0 }
  0xdc   : > { %v299_v8 = vsel %vm298_vm1, %v297_v6, -inf }
  0xdd   : > { %300 = vmax.xlane.f32.xlu0 %v299_v8  ;;  %v294_v9 = vpop.f32.mrf.mxu0 }
  0xdf   : > { %v617_v10 = vpop.f32.mrf.mxu0 }
 0x166   : > { %v301_v11 = vpop.xlane.xlu0 %300 }
 0x167   : > { %v302_v12 = vsub.f32 %v297_v6, %v301_v11 }
 0x169   : > { %v303_v13 = vmul.f32 1.442695, %v302_v12 }
 0x16b   : > { %662 = vpow2.f32 %v303_v13 }
 0x178   : > { %v663_v14 = vpop.eup %662 }
 0x179   : > { %v305_v15 = vsel %vm298_vm1, %v663_v14, 0.0 }
 0x17a   : > { %306 = vadd.xlane.f32.xlu0 %v305_v15 }
 0x203   : > { %v307_v22 = vpop.xlane.xlu0 %306 }
 0x204   : > { %664 = vrcp.f32 %v307_v22 }
 0x211   : > { %v665_v24 = vpop.eup %664 }
 0x212   : > { %v309_v25 = vmul.f32 %v665_v24, %v663_v14 }
 0x214   : > { %v310_v27 = vpack.c.bf16 %v309_v25, %v309_v25 }
 0x216   : > { %621 = vmatmul.mubr.msk.bf16.vlgmr.msra.gmra.mxu1 %vm311_vm3, %v310_v27 }
 0x217   : > { %625 = vmatpush3.bf16.xpose.msra.mxu1 %v361_v26  ;;  %626 = vmatprep.mubr.msk.bf16.mxu1 %vm695_vm0, %v694_v0 }
 0x21e   : > { %627 = vmatmul.mubr.bf16.vlgmr.msra.gmra.mxu1 %v360_v29 }
 0x2d6   : > { %v353_v30 = vpop.f32.mrf.mxu1 }
 0x2d7   : > { %359 = vst [vmem:[#allocation2] sm:$0x3f] %v353_v30 }
 0x2d8   : > { %v622_v31 = vpop.f32.mrf.mxu1 }
 0x2da   : > { %v356_v32 = vpop.f32.mrf.mxu1 }
 0x2dc   : > { %v623_v33 = vpop.f32.mrf.mxu1 }
 0x2de   : > { %v463_v34 = vld [vmem:[#allocation2] sm:$0x3f]  ;;  %v397_v35 = vpop.f32.mrf.mxu1 }
 0x2df   : > { %465 = vst [vmem:[%s246_s28] sm:$0x3f] %v463_v34  ;;  %v403_v36 = vmul.f32 0.088388346, %v397_v35 }
 0x2e0   : > { %v628_v37 = vpop.f32.mrf.mxu1 }
 0x2e1   : > { %v404_v38 = vsel %vm298_vm1, %v403_v36, -inf }
 0x2e2   : > { %405 = vmax.xlane.f32.xlu1 %v404_v38  ;;  %v400_v39 = vpop.f32.mrf.mxu1 }
 0x2e4   : > { %v629_v40 = vpop.f32.mrf.mxu1 }
 0x36b   : > { %v406_v41 = vpop.xlane.xlu1 %405 }
 0x36c   : > { %v407_v42 = vsub.f32 %v403_v36, %v406_v41 }
 0x36e   : > { %v408_v43 = vmul.f32 1.442695, %v407_v42 }
 0x370   : > { %666 = vpow2.f32 %v408_v43 }
 0x37d   : > { %v667_v44 = vpop.eup %666 }
 0x37e   : > { %v410_v45 = vsel %vm298_vm1, %v667_v44, 0.0 }
 0x37f   : > { %411 = vadd.xlane.f32.xlu1 %v410_v45 }
 0x408   : > { %v412_v46 = vpop.xlane.xlu1 %411 }
 0x409   : > { %668 = vrcp.f32 %v412_v46 }
 0x416   : > { %v669_v47 = vpop.eup %668 }
 0x417   : > { %v414_v48 = vmul.f32 %v669_v47, %v667_v44 }
 0x419   : > { %v415_v49 = vpack.c.bf16 %v414_v48, %v414_v48 }
 0x41b   : > { %633 = vmatmul.mubr.msk.bf16.vlgmr.msra.gmra.mxu0 %vm311_vm3, %v415_v49 }
 0x4db   : > { %v456_v50 = vpop.f32.mrf.mxu0 }
 0x4dc   : > { %462 = vst [vmem:[#allocation2 + $0x8] sm:$0x3f] %v456_v50 }
 0x4dd   : > { %v634_v51 = vpop.f32.mrf.mxu0 }
 0x4df   : > { %v459_v52 = vpop.f32.mrf.mxu0 }
 0x4e1   : > { %v635_v53 = vpop.f32.mrf.mxu0 }
 0x4e3   : > { %v464_v54 = vld [vmem:[#allocation2 + $0x8] sm:$0x3f] }
 0x4e4   : > { %466 = vst [vmem:[%s246_s28 + $0x8] sm:$0x3f] %v464_v54 }
 0x4e5 PF: > { %s13_s14 = sadd.s32 1, %s692_s14   ;;  %s783_s12 = smov %s688_s13 }
 0x4e6   : > { %p10_p5 = scmp.ge.s32.totalorder %s13_s14, 4   ;;  %s784_s13 = smov %s786_s15 }
 0x4e8   :  { %12 = sbr.rel (!%p10_p5) target bundleno = 2 (0x2), region = 68 }

// kernel: transformer_loss.99
= control target key start
LH: loop header
LB: loop body
LE: loop exit
PB: predicated region body
PF: predicated region fallthrough
CT: control target
= control target key end

     0   :  { %v236_v54 = vmov 0   ;;  %vm19_vm0 = vcmask 7168   ;;  %v237_v55 = vmov -1e+30   ;;  %v122_v56 = vlaneseq  ;;  %s393_s1 = inlined_call_operand.vmem [shape: f32[128,256], index: 1, kind: input, shape index: {}]   ;;  %s394_s0 = inlined_call_operand.vmem [shape: f32[16,256], index: 0, kind: input, shape index: {}]   ;;  %s395_s2 = inlined_call_operand.vmem [shape: s32[16,1], index: 2, kind: input, shape index: {}]   ;;  %s396_s3 = inlined_call_operand.vmem [shape: f32[16,1], index: 3, kind: output, shape index: {}]  }
   0x1   :  { %v61_v0 = vld [vmem:[%s393_s1 + $0xe8] sm:$0xff]  ;;  %v63_v1 = vld [vmem:[%s393_s1 + $0xf8] sm:$0xff]  ;;  %v60_v2 = vld [vmem:[%s393_s1 + $0xe0] sm:$0xff]  ;;  %223 = vset.pattern.permute.xlu0 %v236_v54  ;;  %222 = vset.pattern.permute.xlu1 %v236_v54  ;;  %20 = vst.msk [vmem:[#allocation2] sm:$0xff] %vm19_vm0, %v237_v55 }
   0x2   :  { %v79_v3 = vpack.c.bf16 %v63_v1, %v61_v0  ;;  %v62_v4 = vld [vmem:[%s393_s1 + $0xf0] sm:$0xff]  ;;  %v57_v5 = vld [vmem:[%s393_s1 + $0xc8] sm:$0xff]  ;;  %v59_v6 = vld [vmem:[%s393_s1 + $0xd8] sm:$0xff]  ;;  %21 = vst.msk [vmem:[#allocation2 + $0x8] sm:$0xff] %vm19_vm0, %v237_v55  ;;  %v123_v57 = vand.u32 127, %v122_v56  ;;  %v238_v0 = vmov 0.0  }
   0x3   :  { %v78_v7 = vpack.c.bf16 %v62_v4, %v60_v2  ;;  %v77_v8 = vpack.c.bf16 %v59_v6, %v57_v5  ;;  %v56_v9 = vld [vmem:[%s393_s1 + $0xc0] sm:$0xff]  ;;  %v58_v10 = vld [vmem:[%s393_s1 + $0xd0] sm:$0xff]  ;;  %v53_v11 = vld [vmem:[%s393_s1 + $0xa8] sm:$0xff]  ;;  %24 = vst.msk [vmem:[#allocation4] sm:$0xff] %vm19_vm0, %v238_v0 }
   0x4   :  { %80 = vmatprep.subr.bf16.mxu0 %v79_v3  ;;  %v55_v12 = vld [vmem:[%s393_s1 + $0xb8] sm:$0xff]  ;;  %v76_v13 = vpack.c.bf16 %v58_v10, %v56_v9  ;;  %v27_v15 = vld [vmem:[%s394_s0 + $0x8] sm:$0xff]  ;;  %v52_v18 = vld [vmem:[%s393_s1 + $0xa0] sm:$0xff]  ;;  %vm126_vm1 = vcmp.lt.s32.totalorder %v123_v57, 32  ;;  %22 = vst.msk [vmem:[#allocation3] sm:$0xff] %vm19_vm0, %v238_v0 }
   0x5   :  { %81 = vmatpush1.bf16.xpose.msra.mxu0 %v78_v7  ;;  %v75_v14 = vpack.c.bf16 %v55_v12, %v53_v11  ;;  %v29_v16 = vld [vmem:[%s394_s0 + $0x18] sm:$0xff]  ;;  %v54_v19 = vld [vmem:[%s393_s1 + $0xb0] sm:$0xff]  ;;  %v49_v20 = vld [vmem:[%s393_s1 + $0x88] sm:$0xff]  ;;  %23 = vst.msk [vmem:[#allocation3 + $0x8] sm:$0xff] %vm19_vm0, %v238_v0 }
   0x6   :  { %82 = vmatprep.subr.bf16.mxu0 %v77_v8  ;;  %v31_v17 = vpack.c.bf16 %v29_v16, %v27_v15  ;;  %v51_v21 = vld [vmem:[%s393_s1 + $0x98] sm:$0xff]  ;;  %v74_v22 = vpack.c.bf16 %v54_v19, %v52_v18  ;;  %v48_v24 = vld [vmem:[%s393_s1 + $0x80] sm:$0xff]  ;;  %v50_v25 = vld [vmem:[%s393_s1 + $0x90] sm:$0xff]  ;;  %25 = vst.msk [vmem:[#allocation4 + $0x8] sm:$0xff] %vm19_vm0, %v238_v0 }
   0x7   :  { %v73_v23 = vpack.c.bf16 %v51_v21, %v49_v20  ;;  %v45_v26 = vld [vmem:[%s393_s1 + $0x68] sm:$0xff]  ;;  %v47_v27 = vld [vmem:[%s393_s1 + $0x78] sm:$0xff]  ;;  %v72_v28 = vpack.c.bf16 %v50_v25, %v48_v24  ;;  %v44_v30 = vld [vmem:[%s393_s1 + $0x60] sm:$0xff] }
   0x8   :  { %112 = vmatprep.mubr.bf16.mxu0 %v31_v17  ;;  %v71_v29 = vpack.c.bf16 %v47_v27, %v45_v26  ;;  %v46_v31 = vld [vmem:[%s393_s1 + $0x70] sm:$0xff]  ;;  %v41_v32 = vld [vmem:[%s393_s1 + $0x48] sm:$0xff]  ;;  %v43_v33 = vld [vmem:[%s393_s1 + $0x58] sm:$0xff] }
   0x9   :  { %v70_v34 = vpack.c.bf16 %v46_v31, %v44_v30  ;;  %v69_v35 = vpack.c.bf16 %v43_v33, %v41_v32  ;;  %v40_v36 = vld [vmem:[%s393_s1 + $0x40] sm:$0xff]  ;;  %v42_v37 = vld [vmem:[%s393_s1 + $0x50] sm:$0xff]  ;;  %v37_v38 = vld [vmem:[%s393_s1 + $0x28] sm:$0xff] }
   0xa   :  { %v39_v39 = vld [vmem:[%s393_s1 + $0x38] sm:$0xff]  ;;  %v68_v40 = vpack.c.bf16 %v42_v37, %v40_v36  ;;  %v36_v42 = vld [vmem:[%s393_s1 + $0x20] sm:$0xff]  ;;  %v38_v43 = vld [vmem:[%s393_s1 + $0x30] sm:$0xff] }
   0xb   :  { %v67_v41 = vpack.c.bf16 %v39_v39, %v37_v38  ;;  %v33_v44 = vld [vmem:[%s393_s1 + $0x8] sm:$0xff]  ;;  %v35_v45 = vld [vmem:[%s393_s1 + $0x18] sm:$0xff]  ;;  %v66_v46 = vpack.c.bf16 %v38_v43, %v36_v42  ;;  %v32_v48 = vld [vmem:[%s393_s1] sm:$0xff] }
   0xc   :  { %v65_v47 = vpack.c.bf16 %v35_v45, %v33_v44  ;;  %v34_v49 = vld [vmem:[%s393_s1 + $0x10] sm:$0xff]  ;;  %v26_v51 = vld [vmem:[%s394_s0] sm:$0xff]  ;;  %v153_v5 = vld [vmem:[#allocation2 + $0x8] sm:$0xff] }
   0xd   :  { %83 = vmatpush1.bf16.xpose.msra.mxu0 %v76_v13  ;;  %v64_v50 = vpack.c.bf16 %v34_v49, %v32_v48  ;;  %v28_v52 = vld [vmem:[%s394_s0 + $0x10] sm:$0xff]  ;;  %v129_v1 = vld [vmem:[%s395_s2] sm:$0xff]  ;;  %v130_v10 = vld [vmem:[%s395_s2 + $0x8] sm:$0xff] }
   0xe   :  { %84 = vmatprep.subr.bf16.mxu0 %v75_v14  ;;  %v30_v53 = vpack.c.bf16 %v28_v52, %v26_v51  ;;  %v152_v2 = vld [vmem:[#allocation2] sm:$0xff]  ;;  %v167_v33 = vld [vmem:[#allocation3 + $0x8] sm:$0xff]  ;;  %v132_v38 = vld [vmem:[#allocation4 + $0x8] sm:$0xff] }
  0x15   :  { %85 = vmatpush1.bf16.xpose.msra.mxu0 %v74_v22  ;;  %v131_v22 = vld [vmem:[#allocation4] sm:$0xff] }
  0x16   :  { %86 = vmatprep.subr.bf16.mxu0 %v73_v23 }
  0x1d   :  { %87 = vmatpush1.bf16.xpose.msra.mxu0 %v72_v28 }
  0x1e   :  { %88 = vmatprep.subr.bf16.mxu0 %v71_v29  ;;  %v166_v29 = vld [vmem:[#allocation3] sm:$0xff] }
  0x25   :  { %89 = vmatpush1.bf16.xpose.msra.mxu0 %v70_v34 }
  0x26   :  { %90 = vmatprep.subr.bf16.mxu0 %v69_v35 }
  0x2d   :  { %91 = vmatpush1.bf16.xpose.msra.mxu0 %v68_v40 }
  0x2e   :  { %92 = vmatprep.subr.bf16.mxu0 %v67_v41 }
  0x35   :  { %93 = vmatpush1.bf16.xpose.msra.mxu0 %v66_v46 }
  0x36   :  { %94 = vmatprep.subr.bf16.mxu0 %v65_v47 }
  0x3d   :  { %95 = vmatpush1.bf16.xpose.msra.mxu0 %v64_v50 }
  0x44   :  { %113 = vmatmul.mubr.bf16.vlgmr.msra.gmra.mxu0 %v30_v53 }
 0x104   :  { %v114_v58 = vpop.f32.mrf.mxu0 }
 0x105   :  { %v127_v59 = vsel %vm126_vm1, %v114_v58, -1e+30 }
 0x106   :  { %154 = vmax.xlane.f32.xlu0 %v127_v59  ;;  %v116_v60 = vpop.f32.mrf.mxu0 }
 0x108   :  { %v117_v61 = vpop.f32.mrf.mxu0 }
 0x109   :  { %v128_v62 = vsel %vm126_vm1, %v117_v61, -1e+30 }
 0x10a   :  { %156 = vmax.xlane.f32.xlu0 %v128_v62  ;;  %v119_v63 = vpop.f32.mrf.mxu0 }
 0x120   :  { %134 = vperm.xlu0 %223, %v129_v1  }
 0x18f   :  { %v155_v3 = vpop.xlane.xlu0 %154 }
 0x190   :  { %v158_v4 = vmax.f32 %v152_v2, %v155_v3 }
 0x192   :  { %v160_v6 = vsub.f32 %v152_v2, %v158_v4  ;;  %194 = vst.msk [vmem:[#allocation2] sm:$0xff] %vm19_vm0, %v158_v4  ;;  %172 = vperm.xlu1 %222, %v158_v4  }
 0x193   :  { %v157_v7 = vpop.xlane.xlu0 %156 }
 0x194   :  { %v159_v8 = vmax.f32 %v153_v5, %v157_v7  ;;  %v162_v26 = vmul.f32 1.442695, %v160_v6 }
 0x196   :  { %v161_v9 = vsub.f32 %v153_v5, %v159_v8  ;;  %195 = vst.msk [vmem:[#allocation2 + $0x8] sm:$0xff] %vm19_vm0, %v159_v8  ;;  %177 = vperm.xlu1 %222, %v159_v8  }
 0x198   :  { %v164_v27 = vmul.f32 1.442695, %v161_v9 }
 0x199   :  { %v199_v45 = vld [vmem:[#allocation2] sm:$0xff] }
 0x19a   :  { %137 = vperm.xlu1 %222, %v130_v10  }
 0x19b   :  { %v135_v11 = vpop.permute.xlu0 %134 }
 0x19c   :  { %vm139_vm2 = vcmp.eq.s32.totalorder %v123_v57, %v135_v11 }
 0x19d   :  { %v141_v12 = vsel %vm139_vm2, %v127_v59, 0.0  ;;  %v200_v51 = vld [vmem:[#allocation2 + $0x8] sm:$0xff] }
 0x19e   :  { %143 = vadd.xlane.f32.xlu0 %v141_v12 }
 0x20d   :  { %v173_v13 = vpop.permute.xlu1 %172 }
 0x20e   :  { %v180_v14 = vsub.f32 %v127_v59, %v173_v13 }
 0x210   :  { %v182_v15 = vmul.f32 1.442695, %v180_v14 }
 0x211   :  { %v178_v16 = vpop.permute.xlu1 %177 }
 0x212   :  { %224 = vpow2.f32 %v182_v15  ;;  %v181_v17 = vsub.f32 %v128_v62, %v178_v16 }
 0x214   :  { %v184_v18 = vmul.f32 1.442695, %v181_v17 }
 0x215   :  { %v138_v20 = vpop.permute.xlu1 %137 }
 0x216   :  { %226 = vpow2.f32 %v184_v18  ;;  %vm140_vm3 = vcmp.eq.s32.totalorder %v123_v57, %v138_v20 }
 0x217   :  { %v142_v24 = vsel %vm140_vm3, %v128_v62, 0.0  ;;  %228 = vpow2.f32 %v162_v26 }
 0x218   :  { %230 = vpow2.f32 %v164_v27 }
 0x21f   :  { %v225_v19 = vpop.eup %224 }
 0x220   :  { %186 = vadd.xlane.f32.xlu1 %v225_v19 }
 0x223   :  { %v227_v21 = vpop.eup %226 }
 0x224   :  { %188 = vadd.xlane.f32.xlu1 %v227_v21  ;;  %v229_v28 = vpop.eup %228 }
 0x225   :  { %v168_v30 = vmul.f32 %v229_v28, %v166_v29  ;;  %v231_v31 = vpop.eup %230 }
 0x226   :  { %v169_v35 = vmul.f32 %v231_v31, %v167_v33 }
 0x227   :  { %v144_v23 = vpop.xlane.xlu0 %143 }
 0x228   :  { %v147_v25 = vadd.f32 %v144_v23, %v131_v22  ;;  %145 = vadd.xlane.f32.xlu1 %v142_v24 }
 0x22a   :  { %150 = vst.msk [vmem:[#allocation4] sm:$0xff] %vm19_vm0, %v147_v25 }
 0x231   :  { %v209_v48 = vld [vmem:[#allocation4] sm:$0xff] }
 0x2a9   :  { %v187_v32 = vpop.xlane.xlu1 %186 }
 0x2aa   :  { %v190_v34 = vadd.f32 %v187_v32, %v168_v30 }
 0x2ac   :  { %192 = vst.msk [vmem:[#allocation3] sm:$0xff] %vm19_vm0, %v190_v34 }
 0x2ad   :  { %v189_v36 = vpop.xlane.xlu1 %188 }
 0x2ae   :  { %v191_v37 = vadd.f32 %v189_v36, %v169_v35 }
 0x2b0   :  { %193 = vst.msk [vmem:[#allocation3 + $0x8] sm:$0xff] %vm19_vm0, %v191_v37 }
 0x2b1   :  { %v146_v39 = vpop.xlane.xlu1 %145 }
 0x2b2   :  { %v148_v40 = vadd.f32 %v146_v39, %v132_v38 }
 0x2b3   :  { %v201_v41 = vld [vmem:[#allocation3] sm:$0xff] }
 0x2b4   :  { %232 = vlog2.f32 %v201_v41  ;;  %151 = vst.msk [vmem:[#allocation4 + $0x8] sm:$0xff] %vm19_vm0, %v148_v40 }
 0x2b7   :  { %v202_v42 = vld [vmem:[#allocation3 + $0x8] sm:$0xff] }
 0x2b8   :  { %234 = vlog2.f32 %v202_v42 }
 0x2bb   :  { %v210_v53 = vld [vmem:[#allocation4 + $0x8] sm:$0xff] }
 0x2c1   :  { %v233_v43 = vpop.eup %232 }
 0x2c2   :  { %v204_v44 = vmul.f32 0.6931472, %v233_v43 }
 0x2c4   :  { %v207_v46 = vadd.f32 %v204_v44, %v199_v45 }
 0x2c5   :  { %v235_v47 = vpop.eup %234 }
 0x2c6   :  { %v211_v49 = vsub.f32 %v207_v46, %v209_v48  ;;  %v206_v50 = vmul.f32 0.6931472, %v235_v47 }
 0x2c8   :  { %v208_v52 = vadd.f32 %v206_v50, %v200_v51  ;;  %213 = vst.msk [vmem:[%s396_s3] sm:$0xff] %vm19_vm0, %v211_v49 }
 0x2ca   :  { %v212_v54 = vsub.f32 %v208_v52, %v210_v53 }
 0x2cc   :  { %214 = vst.msk [vmem:[%s396_s3 + $0x8] sm:$0xff] %vm19_vm0, %v212_v54 }

</bundles_post_ra>
